<compile_context>
chip_gen: v5e
topology: v5e:2x2
jax: 0.10.0
libtpu: 0.0.40
codegen_flags: <defaults>
</compile_context>

<pallas_src>
import math

import jax
import jax.numpy as jnp
from jax.experimental import pallas as pl
from jax.experimental.pallas import tpu as pltpu

# ---- small synthetic DistilBERT config (deterministic, no checkpoint) -------
VOCAB = 64
MAX_POS = 32
H = 128           # hidden size (lane-aligned)
N_HEADS = 4
HEAD_DIM = H // N_HEADS
FFN = 256
N_LAYERS = 2
LN_EPS = 1e-12


# ------------------------------ in-kernel helpers ----------------------------
def _ln(x, g, b):
    mean = jnp.mean(x, axis=-1, keepdims=True)
    var = jnp.mean((x - mean) ** 2, axis=-1, keepdims=True)
    return (x - mean) * jax.lax.rsqrt(var + LN_EPS) * g + b


def _bf16_dot(a, b):
    # bf16 MXU inputs, f32 accumulation.
    return jnp.dot(a.astype(jnp.bfloat16), b.astype(jnp.bfloat16),
                   preferred_element_type=jnp.float32)


# ------------------------------ encoder kernel -------------------------------
def _encoder_kernel(x_ref, mask_ref,
                    emb_g_ref, emb_b_ref,
                    qkv_w_ref, qkv_b_ref, o_w_ref, o_b_ref,
                    ln1_g_ref, ln1_b_ref,
                    f1_w_ref, f1_b_ref, f2_w_ref, f2_b_ref,
                    ln2_g_ref, ln2_b_ref,
                    cls_ref):
    # One sequence per grid step: x is (L, H); mask is (1, L) with 1=keep.
    x = x_ref[0].astype(jnp.float32)
    mask = mask_ref[0].astype(jnp.float32)
    # TODO(synk): a fully-padded sequence would softmax uniformly over pads;
    # DistilBERT inputs always contain at least the CLS token, so this is safe.
    key_bias = (mask - 1.0) * 1e9                      # (1, L) additive mask

    x = _ln(x, emb_g_ref[...], emb_b_ref[...])         # embedding LayerNorm

    scale = 1.0 / math.sqrt(HEAD_DIM)
    for li in range(N_LAYERS):
        # ---- fused QKV projection: (L,H) @ (H,3H) ----
        qkv = _bf16_dot(x, qkv_w_ref[li]) + qkv_b_ref[li]          # (L, 3H)
        # ---- per-head attention, head split/merge stays in VMEM ----
        ctx_heads = []
        for h in range(N_HEADS):
            lo = h * HEAD_DIM
            q_h = qkv[:, lo:lo + HEAD_DIM]
            k_h = qkv[:, H + lo:H + lo + HEAD_DIM]
            v_h = qkv[:, 2 * H + lo:2 * H + lo + HEAD_DIM]
            s = jax.lax.dot_general(
                q_h.astype(jnp.bfloat16), k_h.astype(jnp.bfloat16),
                (((1,), (1,)), ((), ())),
                preferred_element_type=jnp.float32) * scale        # (L, L)
            s = s + key_bias
            s = s - jnp.max(s, axis=-1, keepdims=True)
            p = jnp.exp(s)
            p = p * pl.reciprocal(jnp.sum(p, axis=-1, keepdims=True),
                                  approx=True)
            ctx_heads.append(_bf16_dot(p, v_h))                    # (L, d)
        ctx = jnp.concatenate(ctx_heads, axis=1)                   # (L, H)
        # ---- output projection + residual + LN ----
        attn_out = _bf16_dot(ctx, o_w_ref[li]) + o_b_ref[li]
        x = _ln(x + attn_out, ln1_g_ref[li], ln1_b_ref[li])
        # ---- FFN + residual + LN ----
        # TODO(synk): HF DistilBERT uses exact erf-GELU; tanh approximation is
        # used here for guaranteed Mosaic lowering (numerically ~equivalent).
        h1 = jax.nn.gelu(_bf16_dot(x, f1_w_ref[li]) + f1_b_ref[li],
                         approximate=True)
        h2 = _bf16_dot(h1, f2_w_ref[li]) + f2_b_ref[li]
        x = _ln(x + h2, ln2_g_ref[li], ln2_b_ref[li])

    cls_ref[0] = x[0:1, :].astype(cls_ref.dtype)       # CLS row only (1, H)


# --------------------------- scores + loss kernel ----------------------------
def _score_loss_kernel(q_ref, p_ref, n_ref, s_ref, loss_ref):
    q = q_ref[...].astype(jnp.float32)                 # (B, H)
    pos = p_ref[...].astype(jnp.float32)
    neg = n_ref[...].astype(jnp.float32)
    dimnums = (((1,), (1,)), ((), ()))
    sp = jax.lax.dot_general(q, pos, dimnums,
                             preferred_element_type=jnp.float32)   # Q @ P^T
    sn = jax.lax.dot_general(q, neg, dimnums,
                             preferred_element_type=jnp.float32)   # Q @ N^T
    b = sp.shape[0]
    s_ref[:, 0:b] = sp.astype(s_ref.dtype)             # left half, no concat
    s_ref[:, b:2 * b] = sn.astype(s_ref.dtype)         # right half
    # cross_entropy(scores, arange(B)) with mean reduction, no concatenate
    m = jnp.maximum(jnp.max(sp, axis=-1, keepdims=True),
                    jnp.max(sn, axis=-1, keepdims=True))
    lse = jnp.log(jnp.sum(jnp.exp(sp - m), axis=-1, keepdims=True)
                  + jnp.sum(jnp.exp(sn - m), axis=-1, keepdims=True)) + m
    ri = jax.lax.broadcasted_iota(jnp.int32, (b, b), 0)
    ci = jax.lax.broadcasted_iota(jnp.int32, (b, b), 1)
    diag = jnp.sum(sp * (ri == ci).astype(jnp.float32), axis=-1, keepdims=True)
    loss_ref[0, 0] = jnp.mean(lse - diag)


# ------------------------------ kernel wrappers -------------------------------
def distilbert_encode_cls(params, ids, attn_mask):
    """Full DistilBERT encoder in ONE pallas_call; returns (nB, H) CLS vectors."""
    nb, seq = ids.shape
    # Embedding gather is plain-JAX glue.
    x = params["word_emb"][ids] + params["pos_emb"][jnp.arange(seq)][None, :, :]
    mask3 = attn_mask.reshape(nb, 1, seq).astype(jnp.float32)

    def wspec(shape):
        # Constant block index => weights DMA'd to VMEM once, reused every step.
        return pl.BlockSpec(shape, lambda i: (0,) * len(shape))

    cls = pl.pallas_call(
        _encoder_kernel,
        out_shape=jax.ShapeDtypeStruct((nb, 1, H), jnp.float32),
        grid=(nb,),
        in_specs=[
            pl.BlockSpec((1, seq, H), lambda i: (i, 0, 0)),
            pl.BlockSpec((1, 1, seq), lambda i: (i, 0, 0)),
            wspec((1, H)), wspec((1, H)),
            wspec((N_LAYERS, H, 3 * H)), wspec((N_LAYERS, 1, 3 * H)),
            wspec((N_LAYERS, H, H)), wspec((N_LAYERS, 1, H)),
            wspec((N_LAYERS, 1, H)), wspec((N_LAYERS, 1, H)),
            wspec((N_LAYERS, H, FFN)), wspec((N_LAYERS, 1, FFN)),
            wspec((N_LAYERS, FFN, H)), wspec((N_LAYERS, 1, H)),
            wspec((N_LAYERS, 1, H)), wspec((N_LAYERS, 1, H)),
        ],
        out_specs=pl.BlockSpec((1, 1, H), lambda i: (i, 0, 0)),
        compiler_params=pltpu.CompilerParams(
            dimension_semantics=("parallel",)),
    )(x, mask3,
      params["emb_ln_g"], params["emb_ln_b"],
      params["qkv_w"], params["qkv_b"], params["o_w"], params["o_b"],
      params["ln1_g"], params["ln1_b"],
      params["f1_w"], params["f1_b"], params["f2_w"], params["f2_b"],
      params["ln2_g"], params["ln2_b"])
    return cls.reshape(nb, H)


def score_and_loss(q_enc, p_enc, n_enc):
    b, d = q_enc.shape
    scores, loss = pl.pallas_call(
        _score_loss_kernel,
        out_shape=(jax.ShapeDtypeStruct((b, 2 * b), jnp.float32),
                   jax.ShapeDtypeStruct((1, 1), jnp.float32)),
        grid=(1,),
        in_specs=[pl.BlockSpec((b, d), lambda i: (0, 0))] * 3,
        out_specs=(pl.BlockSpec((b, 2 * b), lambda i: (0, 0)),
                   pl.BlockSpec((1, 1), lambda i: (0, 0))),
    )(q_enc, p_enc, n_enc)
    return scores, loss[0, 0]


def biencoder_forward(params, query_idx, query_mask, pos_idx, pos_mask,
                      neg_idx, neg_mask):
    b = query_idx.shape[0]
    # Shared encoder (use_separete_encoders=False): batch all three passes.
    ids = jnp.concatenate([query_idx, pos_idx, neg_idx], axis=0)
    masks = jnp.concatenate([query_mask, pos_mask, neg_mask], axis=0)
    cls = distilbert_encode_cls(params, ids, masks)            # (3B, H)
    # TODO(synk): nn.Dropout on the CLS vectors is stochastic; eval-mode
    # identity is used here for determinism.
    q_enc, p_enc, n_enc = cls[:b], cls[b:2 * b], cls[2 * b:]
    return score_and_loss(q_enc, p_enc, n_enc)


# ----------------------------- deterministic init -----------------------------
def init_params(key):
    std = 0.02
    ks = jax.random.split(key, 10)

    def nrm(k, shape):
        return jax.random.normal(k, shape, jnp.float32) * std

    return {
        "word_emb": nrm(ks[0], (VOCAB, H)),
        "pos_emb": nrm(ks[1], (MAX_POS, H)),
        "emb_ln_g": jnp.ones((1, H), jnp.float32),
        "emb_ln_b": jnp.zeros((1, H), jnp.float32),
        "qkv_w": nrm(ks[2], (N_LAYERS, H, 3 * H)),
        "qkv_b": nrm(ks[3], (N_LAYERS, 1, 3 * H)),
        "o_w": nrm(ks[4], (N_LAYERS, H, H)),
        "o_b": nrm(ks[5], (N_LAYERS, 1, H)),
        "ln1_g": jnp.ones((N_LAYERS, 1, H), jnp.float32),
        "ln1_b": jnp.zeros((N_LAYERS, 1, H), jnp.float32),
        "f1_w": nrm(ks[6], (N_LAYERS, H, FFN)),
        "f1_b": nrm(ks[7], (N_LAYERS, 1, FFN)),
        "f2_w": nrm(ks[8], (N_LAYERS, FFN, H)),
        "f2_b": nrm(ks[9], (N_LAYERS, 1, H)),
        "ln2_g": jnp.ones((N_LAYERS, 1, H), jnp.float32),
        "ln2_b": jnp.zeros((N_LAYERS, 1, H), jnp.float32),
    }


# ------------------------------------ main ------------------------------------
if __name__ == "__main__":
    B, L = 2, 16
    root = jax.random.PRNGKey(0)
    k_param, k_q, k_p, k_n = jax.random.split(root, 4)
    params = init_params(k_param)

    query_idx = jax.random.randint(k_q, (B, L), 0, VOCAB, dtype=jnp.int32)
    pos_idx = jax.random.randint(k_p, (B, L), 0, VOCAB, dtype=jnp.int32)
    neg_idx = jax.random.randint(k_n, (B, L), 0, VOCAB, dtype=jnp.int32)

    query_mask = jnp.ones((B, L), jnp.int32)
    pos_mask = jnp.ones((B, L), jnp.int32)
    # pad out the tail of one negative passage to exercise the attention mask
    neg_mask = jnp.ones((B, L), jnp.int32).at[1, L - 3:].set(0)

    scores, loss = biencoder_forward(params, query_idx, query_mask,
                                     pos_idx, pos_mask, neg_idx, neg_mask)
    jax.block_until_ready((scores, loss))
    assert scores.shape == (B, 2 * B)
    assert bool(jnp.isfinite(loss))
    print("KERNEL_OK")
</pallas_src>

<mosaic_0001>
module attributes {stable_mosaic.version = 11 : i64} {
  func.func @_encoder_kernel(%arg0: i32, %arg1: memref<1x16x128xf32, #tpu.memory_space<vmem>>, %arg2: memref<1x1x16xf32, #tpu.memory_space<vmem>>, %arg3: memref<1x128xf32, #tpu.memory_space<vmem>>, %arg4: memref<1x128xf32, #tpu.memory_space<vmem>>, %arg5: memref<2x128x384xf32, #tpu.memory_space<vmem>>, %arg6: memref<2x1x384xf32, #tpu.memory_space<vmem>>, %arg7: memref<2x128x128xf32, #tpu.memory_space<vmem>>, %arg8: memref<2x1x128xf32, #tpu.memory_space<vmem>>, %arg9: memref<2x1x128xf32, #tpu.memory_space<vmem>>, %arg10: memref<2x1x128xf32, #tpu.memory_space<vmem>>, %arg11: memref<2x128x256xf32, #tpu.memory_space<vmem>>, %arg12: memref<2x1x256xf32, #tpu.memory_space<vmem>>, %arg13: memref<2x256x128xf32, #tpu.memory_space<vmem>>, %arg14: memref<2x1x128xf32, #tpu.memory_space<vmem>>, %arg15: memref<2x1x128xf32, #tpu.memory_space<vmem>>, %arg16: memref<2x1x128xf32, #tpu.memory_space<vmem>>, %arg17: memref<1x1x128xf32, #tpu.memory_space<vmem>>) attributes {dimension_semantics = [#tpu.dimension_semantics<parallel>], iteration_bounds = array<i64: 6>, scalar_prefetch = 0 : i64, scratch_operands = 0 : i64, tpu.core_type = #tpu.core_type<tc>, window_params = [{transform_indices = @transform_0, window_bounds = array<i64: 1, 16, 128>}, {transform_indices = @transform_1, window_bounds = array<i64: 1, 1, 16>}, {pipeline_mode = #tpu.pipeline_mode<synchronous>, transform_indices = @transform_2, window_bounds = array<i64: 1, 128>}, {pipeline_mode = #tpu.pipeline_mode<synchronous>, transform_indices = @transform_3, window_bounds = array<i64: 1, 128>}, {pipeline_mode = #tpu.pipeline_mode<synchronous>, transform_indices = @transform_4, window_bounds = array<i64: 2, 128, 384>}, {pipeline_mode = #tpu.pipeline_mode<synchronous>, transform_indices = @transform_5, window_bounds = array<i64: 2, 1, 384>}, {pipeline_mode = #tpu.pipeline_mode<synchronous>, transform_indices = @transform_6, window_bounds = array<i64: 2, 128, 128>}, {pipeline_mode = #tpu.pipeline_mode<synchronous>, transform_indices = @transform_7, window_bounds = array<i64: 2, 1, 128>}, {pipeline_mode = #tpu.pipeline_mode<synchronous>, transform_indices = @transform_8, window_bounds = array<i64: 2, 1, 128>}, {pipeline_mode = #tpu.pipeline_mode<synchronous>, transform_indices = @transform_9, window_bounds = array<i64: 2, 1, 128>}, {pipeline_mode = #tpu.pipeline_mode<synchronous>, transform_indices = @transform_10, window_bounds = array<i64: 2, 128, 256>}, {pipeline_mode = #tpu.pipeline_mode<synchronous>, transform_indices = @transform_11, window_bounds = array<i64: 2, 1, 256>}, {pipeline_mode = #tpu.pipeline_mode<synchronous>, transform_indices = @transform_12, window_bounds = array<i64: 2, 256, 128>}, {pipeline_mode = #tpu.pipeline_mode<synchronous>, transform_indices = @transform_13, window_bounds = array<i64: 2, 1, 128>}, {pipeline_mode = #tpu.pipeline_mode<synchronous>, transform_indices = @transform_14, window_bounds = array<i64: 2, 1, 128>}, {pipeline_mode = #tpu.pipeline_mode<synchronous>, transform_indices = @transform_15, window_bounds = array<i64: 2, 1, 128>}, {transform_indices = @transform_16, window_bounds = array<i64: 1, 1, 128>}]} {
    %c0 = arith.constant 0 : index
    %c0_0 = arith.constant 0 : index
    %c0_1 = arith.constant 0 : index
    %0 = vector.load %arg1[%c0, %c0_0, %c0_1] : memref<1x16x128xf32, #tpu.memory_space<vmem>>, vector<1x16x128xf32>
    %1 = vector.shape_cast %0 : vector<1x16x128xf32> to vector<16x128xf32>
    %c0_2 = arith.constant 0 : index
    %c0_3 = arith.constant 0 : index
    %c0_4 = arith.constant 0 : index
    %2 = vector.load %arg2[%c0_2, %c0_3, %c0_4] : memref<1x1x16xf32, #tpu.memory_space<vmem>>, vector<1x1x16xf32>
    %3 = vector.shape_cast %2 : vector<1x1x16xf32> to vector<1x16xf32>
    %cst = arith.constant 1.000000e+00 : f32
    %4 = vector.broadcast %cst : f32 to vector<1x16xf32>
    %5 = arith.subf %3, %4 : vector<1x16xf32>
    %cst_5 = arith.constant 1.000000e+09 : f32
    %6 = vector.broadcast %cst_5 : f32 to vector<1x16xf32>
    %7 = arith.mulf %5, %6 : vector<1x16xf32>
    %c0_6 = arith.constant 0 : index
    %c0_7 = arith.constant 0 : index
    %8 = vector.load %arg3[%c0_6, %c0_7] : memref<1x128xf32, #tpu.memory_space<vmem>>, vector<1x128xf32>
    %c0_8 = arith.constant 0 : index
    %c0_9 = arith.constant 0 : index
    %9 = vector.load %arg4[%c0_8, %c0_9] : memref<1x128xf32, #tpu.memory_space<vmem>>, vector<1x128xf32>
    %cst_10 = arith.constant dense<0.000000e+00> : vector<16xf32>
    %10 = vector.multi_reduction <add>, %1, %cst_10 [1] : vector<16x128xf32> to vector<16xf32>
    %11 = vector.shape_cast %10 : vector<16xf32> to vector<16x1xf32>
    %cst_11 = arith.constant 1.280000e+02 : f32
    %12 = vector.broadcast %cst_11 : f32 to vector<16x1xf32>
    %13 = arith.divf %11, %12 : vector<16x1xf32>
    %14 = vector.broadcast %13 : vector<16x1xf32> to vector<16x128xf32>
    %15 = arith.subf %1, %14 : vector<16x128xf32>
    %16 = arith.mulf %15, %15 : vector<16x128xf32>
    %cst_12 = arith.constant dense<0.000000e+00> : vector<16xf32>
    %17 = vector.multi_reduction <add>, %16, %cst_12 [1] : vector<16x128xf32> to vector<16xf32>
    %18 = vector.shape_cast %17 : vector<16xf32> to vector<16x1xf32>
    %cst_13 = arith.constant 1.280000e+02 : f32
    %19 = vector.broadcast %cst_13 : f32 to vector<16x1xf32>
    %20 = arith.divf %18, %19 : vector<16x1xf32>
    %21 = vector.broadcast %13 : vector<16x1xf32> to vector<16x128xf32>
    %22 = arith.subf %1, %21 : vector<16x128xf32>
    %cst_14 = arith.constant 9.99999996E-13 : f32
    %23 = vector.broadcast %cst_14 : f32 to vector<16x1xf32>
    %24 = arith.addf %20, %23 : vector<16x1xf32>
    %25 = math.rsqrt %24 : vector<16x1xf32>
    %26 = vector.broadcast %25 : vector<16x1xf32> to vector<16x128xf32>
    %27 = arith.mulf %22, %26 : vector<16x128xf32>
    %28 = vector.broadcast %8 : vector<1x128xf32> to vector<16x128xf32>
    %29 = arith.mulf %27, %28 : vector<16x128xf32>
    %30 = vector.broadcast %9 : vector<1x128xf32> to vector<16x128xf32>
    %31 = arith.addf %29, %30 : vector<16x128xf32>
    %c0_15 = arith.constant 0 : index
    %c0_16 = arith.constant 0 : index
    %c0_17 = arith.constant 0 : index
    %32 = vector.load %arg5[%c0_15, %c0_16, %c0_17] : memref<2x128x384xf32, #tpu.memory_space<vmem>>, vector<1x128x384xf32>
    %33 = vector.shape_cast %32 : vector<1x128x384xf32> to vector<128x384xf32>
    %34 = arith.truncf %31 : vector<16x128xf32> to vector<16x128xbf16>
    %35 = arith.truncf %33 : vector<128x384xf32> to vector<128x384xbf16>
    %cst_18 = arith.constant dense<0.000000e+00> : vector<16x384xf32>
    %36 = tpu.matmul %34, %35, %cst_18 {dimension_numbers = #tpu.dot_dimension_numbers<[1], [0], [0], [1], [0, 0, 1, 1], [], []>} : vector<16x128xbf16>, vector<128x384xbf16>, vector<16x384xf32> -> vector<16x384xf32>
    %c0_19 = arith.constant 0 : index
    %c0_20 = arith.constant 0 : index
    %c0_21 = arith.constant 0 : index
    %37 = vector.load %arg6[%c0_19, %c0_20, %c0_21] : memref<2x1x384xf32, #tpu.memory_space<vmem>>, vector<1x1x384xf32>
    %38 = vector.shape_cast %37 : vector<1x1x384xf32> to vector<1x384xf32>
    %39 = vector.broadcast %38 : vector<1x384xf32> to vector<16x384xf32>
    %40 = arith.addf %36, %39 : vector<16x384xf32>
    %41 = vector.extract_strided_slice %40 {offsets = [0, 0], sizes = [16, 32], strides = [1, 1]} : vector<16x384xf32> to vector<16x32xf32>
    %42 = vector.extract_strided_slice %40 {offsets = [0, 128], sizes = [16, 32], strides = [1, 1]} : vector<16x384xf32> to vector<16x32xf32>
    %43 = vector.extract_strided_slice %40 {offsets = [0, 256], sizes = [16, 32], strides = [1, 1]} : vector<16x384xf32> to vector<16x32xf32>
    %44 = arith.truncf %41 : vector<16x32xf32> to vector<16x32xbf16>
    %45 = arith.truncf %42 : vector<16x32xf32> to vector<16x32xbf16>
    %cst_22 = arith.constant dense<0.000000e+00> : vector<16x16xf32>
    %46 = tpu.matmul %44, %45, %cst_22 {dimension_numbers = #tpu.dot_dimension_numbers<[1], [1], [0], [0], [0, 0, 1, 0], [], []>} : vector<16x32xbf16>, vector<16x32xbf16>, vector<16x16xf32> -> vector<16x16xf32>
    %cst_23 = arith.constant 0.176776692 : f32
    %47 = vector.broadcast %cst_23 : f32 to vector<16x16xf32>
    %48 = arith.mulf %46, %47 : vector<16x16xf32>
    %49 = vector.broadcast %7 : vector<1x16xf32> to vector<16x16xf32>
    %50 = arith.addf %48, %49 : vector<16x16xf32>
    %cst_24 = arith.constant dense<0xFF800000> : vector<16xf32>
    %51 = vector.multi_reduction <maximumf>, %50, %cst_24 [1] : vector<16x16xf32> to vector<16xf32>
    %52 = vector.shape_cast %51 : vector<16xf32> to vector<16x1xf32>
    %53 = vector.broadcast %52 : vector<16x1xf32> to vector<16x16xf32>
    %54 = arith.subf %50, %53 : vector<16x16xf32>
    %55 = math.exp %54 : vector<16x16xf32>
    %cst_25 = arith.constant dense<0.000000e+00> : vector<16xf32>
    %56 = vector.multi_reduction <add>, %55, %cst_25 [1] : vector<16x16xf32> to vector<16xf32>
    %57 = vector.shape_cast %56 : vector<16xf32> to vector<16x1xf32>
    %58 = tpu.reciprocal %57 {approx = true} : vector<16x1xf32> -> vector<16x1xf32>
    %59 = vector.broadcast %58 : vector<16x1xf32> to vector<16x16xf32>
    %60 = arith.mulf %55, %59 : vector<16x16xf32>
    %61 = arith.truncf %60 : vector<16x16xf32> to vector<16x16xbf16>
    %62 = arith.truncf %43 : vector<16x32xf32> to vector<16x32xbf16>
    %cst_26 = arith.constant dense<0.000000e+00> : vector<16x32xf32>
    %63 = tpu.matmul %61, %62, %cst_26 {dimension_numbers = #tpu.dot_dimension_numbers<[1], [0], [0], [1], [0, 0, 1, 1], [], []>} : vector<16x16xbf16>, vector<16x32xbf16>, vector<16x32xf32> -> vector<16x32xf32>
    %64 = vector.extract_strided_slice %40 {offsets = [0, 32], sizes = [16, 32], strides = [1, 1]} : vector<16x384xf32> to vector<16x32xf32>
    %65 = vector.extract_strided_slice %40 {offsets = [0, 160], sizes = [16, 32], strides = [1, 1]} : vector<16x384xf32> to vector<16x32xf32>
    %66 = vector.extract_strided_slice %40 {offsets = [0, 288], sizes = [16, 32], strides = [1, 1]} : vector<16x384xf32> to vector<16x32xf32>
    %67 = arith.truncf %64 : vector<16x32xf32> to vector<16x32xbf16>
    %68 = arith.truncf %65 : vector<16x32xf32> to vector<16x32xbf16>
    %cst_27 = arith.constant dense<0.000000e+00> : vector<16x16xf32>
    %69 = tpu.matmul %67, %68, %cst_27 {dimension_numbers = #tpu.dot_dimension_numbers<[1], [1], [0], [0], [0, 0, 1, 0], [], []>} : vector<16x32xbf16>, vector<16x32xbf16>, vector<16x16xf32> -> vector<16x16xf32>
    %cst_28 = arith.constant 0.176776692 : f32
    %70 = vector.broadcast %cst_28 : f32 to vector<16x16xf32>
    %71 = arith.mulf %69, %70 : vector<16x16xf32>
    %72 = vector.broadcast %7 : vector<1x16xf32> to vector<16x16xf32>
    %73 = arith.addf %71, %72 : vector<16x16xf32>
    %cst_29 = arith.constant dense<0xFF800000> : vector<16xf32>
    %74 = vector.multi_reduction <maximumf>, %73, %cst_29 [1] : vector<16x16xf32> to vector<16xf32>
    %75 = vector.shape_cast %74 : vector<16xf32> to vector<16x1xf32>
    %76 = vector.broadcast %75 : vector<16x1xf32> to vector<16x16xf32>
    %77 = arith.subf %73, %76 : vector<16x16xf32>
    %78 = math.exp %77 : vector<16x16xf32>
    %cst_30 = arith.constant dense<0.000000e+00> : vector<16xf32>
    %79 = vector.multi_reduction <add>, %78, %cst_30 [1] : vector<16x16xf32> to vector<16xf32>
    %80 = vector.shape_cast %79 : vector<16xf32> to vector<16x1xf32>
    %81 = tpu.reciprocal %80 {approx = true} : vector<16x1xf32> -> vector<16x1xf32>
    %82 = vector.broadcast %81 : vector<16x1xf32> to vector<16x16xf32>
    %83 = arith.mulf %78, %82 : vector<16x16xf32>
    %84 = arith.truncf %83 : vector<16x16xf32> to vector<16x16xbf16>
    %85 = arith.truncf %66 : vector<16x32xf32> to vector<16x32xbf16>
    %cst_31 = arith.constant dense<0.000000e+00> : vector<16x32xf32>
    %86 = tpu.matmul %84, %85, %cst_31 {dimension_numbers = #tpu.dot_dimension_numbers<[1], [0], [0], [1], [0, 0, 1, 1], [], []>} : vector<16x16xbf16>, vector<16x32xbf16>, vector<16x32xf32> -> vector<16x32xf32>
    %87 = vector.extract_strided_slice %40 {offsets = [0, 64], sizes = [16, 32], strides = [1, 1]} : vector<16x384xf32> to vector<16x32xf32>
    %88 = vector.extract_strided_slice %40 {offsets = [0, 192], sizes = [16, 32], strides = [1, 1]} : vector<16x384xf32> to vector<16x32xf32>
    %89 = vector.extract_strided_slice %40 {offsets = [0, 320], sizes = [16, 32], strides = [1, 1]} : vector<16x384xf32> to vector<16x32xf32>
    %90 = arith.truncf %87 : vector<16x32xf32> to vector<16x32xbf16>
    %91 = arith.truncf %88 : vector<16x32xf32> to vector<16x32xbf16>
    %cst_32 = arith.constant dense<0.000000e+00> : vector<16x16xf32>
    %92 = tpu.matmul %90, %91, %cst_32 {dimension_numbers = #tpu.dot_dimension_numbers<[1], [1], [0], [0], [0, 0, 1, 0], [], []>} : vector<16x32xbf16>, vector<16x32xbf16>, vector<16x16xf32> -> vector<16x16xf32>
    %cst_33 = arith.constant 0.176776692 : f32
    %93 = vector.broadcast %cst_33 : f32 to vector<16x16xf32>
    %94 = arith.mulf %92, %93 : vector<16x16xf32>
    %95 = vector.broadcast %7 : vector<1x16xf32> to vector<16x16xf32>
    %96 = arith.addf %94, %95 : vector<16x16xf32>
    %cst_34 = arith.constant dense<0xFF800000> : vector<16xf32>
    %97 = vector.multi_reduction <maximumf>, %96, %cst_34 [1] : vector<16x16xf32> to vector<16xf32>
    %98 = vector.shape_cast %97 : vector<16xf32> to vector<16x1xf32>
    %99 = vector.broadcast %98 : vector<16x1xf32> to vector<16x16xf32>
    %100 = arith.subf %96, %99 : vector<16x16xf32>
    %101 = math.exp %100 : vector<16x16xf32>
    %cst_35 = arith.constant dense<0.000000e+00> : vector<16xf32>
    %102 = vector.multi_reduction <add>, %101, %cst_35 [1] : vector<16x16xf32> to vector<16xf32>
    %103 = vector.shape_cast %102 : vector<16xf32> to vector<16x1xf32>
    %104 = tpu.reciprocal %103 {approx = true} : vector<16x1xf32> -> vector<16x1xf32>
    %105 = vector.broadcast %104 : vector<16x1xf32> to vector<16x16xf32>
    %106 = arith.mulf %101, %105 : vector<16x16xf32>
    %107 = arith.truncf %106 : vector<16x16xf32> to vector<16x16xbf16>
    %108 = arith.truncf %89 : vector<16x32xf32> to vector<16x32xbf16>
    %cst_36 = arith.constant dense<0.000000e+00> : vector<16x32xf32>
    %109 = tpu.matmul %107, %108, %cst_36 {dimension_numbers = #tpu.dot_dimension_numbers<[1], [0], [0], [1], [0, 0, 1, 1], [], []>} : vector<16x16xbf16>, vector<16x32xbf16>, vector<16x32xf32> -> vector<16x32xf32>
    %110 = vector.extract_strided_slice %40 {offsets = [0, 96], sizes = [16, 32], strides = [1, 1]} : vector<16x384xf32> to vector<16x32xf32>
    %111 = vector.extract_strided_slice %40 {offsets = [0, 224], sizes = [16, 32], strides = [1, 1]} : vector<16x384xf32> to vector<16x32xf32>
    %112 = vector.extract_strided_slice %40 {offsets = [0, 352], sizes = [16, 32], strides = [1, 1]} : vector<16x384xf32> to vector<16x32xf32>
    %113 = arith.truncf %110 : vector<16x32xf32> to vector<16x32xbf16>
    %114 = arith.truncf %111 : vector<16x32xf32> to vector<16x32xbf16>
    %cst_37 = arith.constant dense<0.000000e+00> : vector<16x16xf32>
    %115 = tpu.matmul %113, %114, %cst_37 {dimension_numbers = #tpu.dot_dimension_numbers<[1], [1], [0], [0], [0, 0, 1, 0], [], []>} : vector<16x32xbf16>, vector<16x32xbf16>, vector<16x16xf32> -> vector<16x16xf32>
    %cst_38 = arith.constant 0.176776692 : f32
    %116 = vector.broadcast %cst_38 : f32 to vector<16x16xf32>
    %117 = arith.mulf %115, %116 : vector<16x16xf32>
    %118 = vector.broadcast %7 : vector<1x16xf32> to vector<16x16xf32>
    %119 = arith.addf %117, %118 : vector<16x16xf32>
    %cst_39 = arith.constant dense<0xFF800000> : vector<16xf32>
    %120 = vector.multi_reduction <maximumf>, %119, %cst_39 [1] : vector<16x16xf32> to vector<16xf32>
    %121 = vector.shape_cast %120 : vector<16xf32> to vector<16x1xf32>
    %122 = vector.broadcast %121 : vector<16x1xf32> to vector<16x16xf32>
    %123 = arith.subf %119, %122 : vector<16x16xf32>
    %124 = math.exp %123 : vector<16x16xf32>
    %cst_40 = arith.constant dense<0.000000e+00> : vector<16xf32>
    %125 = vector.multi_reduction <add>, %124, %cst_40 [1] : vector<16x16xf32> to vector<16xf32>
    %126 = vector.shape_cast %125 : vector<16xf32> to vector<16x1xf32>
    %127 = tpu.reciprocal %126 {approx = true} : vector<16x1xf32> -> vector<16x1xf32>
    %128 = vector.broadcast %127 : vector<16x1xf32> to vector<16x16xf32>
    %129 = arith.mulf %124, %128 : vector<16x16xf32>
    %130 = arith.truncf %129 : vector<16x16xf32> to vector<16x16xbf16>
    %131 = arith.truncf %112 : vector<16x32xf32> to vector<16x32xbf16>
    %cst_41 = arith.constant dense<0.000000e+00> : vector<16x32xf32>
    %132 = tpu.matmul %130, %131, %cst_41 {dimension_numbers = #tpu.dot_dimension_numbers<[1], [0], [0], [1], [0, 0, 1, 1], [], []>} : vector<16x16xbf16>, vector<16x32xbf16>, vector<16x32xf32> -> vector<16x32xf32>
    %133 = tpu.concatenate %63, %86, %109, %132 in 1 : vector<16x32xf32>, vector<16x32xf32>, vector<16x32xf32>, vector<16x32xf32> -> vector<16x128xf32>
    %c0_42 = arith.constant 0 : index
    %c0_43 = arith.constant 0 : index
    %c0_44 = arith.constant 0 : index
    %134 = vector.load %arg7[%c0_42, %c0_43, %c0_44] : memref<2x128x128xf32, #tpu.memory_space<vmem>>, vector<1x128x128xf32>
    %135 = vector.shape_cast %134 : vector<1x128x128xf32> to vector<128x128xf32>
    %136 = arith.truncf %133 : vector<16x128xf32> to vector<16x128xbf16>
    %137 = arith.truncf %135 : vector<128x128xf32> to vector<128x128xbf16>
    %cst_45 = arith.constant dense<0.000000e+00> : vector<16x128xf32>
    %138 = tpu.matmul %136, %137, %cst_45 {dimension_numbers = #tpu.dot_dimension_numbers<[1], [0], [0], [1], [0, 0, 1, 1], [], []>} : vector<16x128xbf16>, vector<128x128xbf16>, vector<16x128xf32> -> vector<16x128xf32>
    %c0_46 = arith.constant 0 : index
    %c0_47 = arith.constant 0 : index
    %c0_48 = arith.constant 0 : index
    %139 = vector.load %arg8[%c0_46, %c0_47, %c0_48] : memref<2x1x128xf32, #tpu.memory_space<vmem>>, vector<1x1x128xf32>
    %140 = vector.shape_cast %139 : vector<1x1x128xf32> to vector<1x128xf32>
    %141 = vector.broadcast %140 : vector<1x128xf32> to vector<16x128xf32>
    %142 = arith.addf %138, %141 : vector<16x128xf32>
    %143 = arith.addf %31, %142 : vector<16x128xf32>
    %c0_49 = arith.constant 0 : index
    %c0_50 = arith.constant 0 : index
    %c0_51 = arith.constant 0 : index
    %144 = vector.load %arg9[%c0_49, %c0_50, %c0_51] : memref<2x1x128xf32, #tpu.memory_space<vmem>>, vector<1x1x128xf32>
    %145 = vector.shape_cast %144 : vector<1x1x128xf32> to vector<1x128xf32>
    %c0_52 = arith.constant 0 : index
    %c0_53 = arith.constant 0 : index
    %c0_54 = arith.constant 0 : index
    %146 = vector.load %arg10[%c0_52, %c0_53, %c0_54] : memref<2x1x128xf32, #tpu.memory_space<vmem>>, vector<1x1x128xf32>
    %147 = vector.shape_cast %146 : vector<1x1x128xf32> to vector<1x128xf32>
    %cst_55 = arith.constant dense<0.000000e+00> : vector<16xf32>
    %148 = vector.multi_reduction <add>, %143, %cst_55 [1] : vector<16x128xf32> to vector<16xf32>
    %149 = vector.shape_cast %148 : vector<16xf32> to vector<16x1xf32>
    %cst_56 = arith.constant 1.280000e+02 : f32
    %150 = vector.broadcast %cst_56 : f32 to vector<16x1xf32>
    %151 = arith.divf %149, %150 : vector<16x1xf32>
    %152 = vector.broadcast %151 : vector<16x1xf32> to vector<16x128xf32>
    %153 = arith.subf %143, %152 : vector<16x128xf32>
    %154 = arith.mulf %153, %153 : vector<16x128xf32>
    %cst_57 = arith.constant dense<0.000000e+00> : vector<16xf32>
    %155 = vector.multi_reduction <add>, %154, %cst_57 [1] : vector<16x128xf32> to vector<16xf32>
    %156 = vector.shape_cast %155 : vector<16xf32> to vector<16x1xf32>
    %cst_58 = arith.constant 1.280000e+02 : f32
    %157 = vector.broadcast %cst_58 : f32 to vector<16x1xf32>
    %158 = arith.divf %156, %157 : vector<16x1xf32>
    %159 = vector.broadcast %151 : vector<16x1xf32> to vector<16x128xf32>
    %160 = arith.subf %143, %159 : vector<16x128xf32>
    %cst_59 = arith.constant 9.99999996E-13 : f32
    %161 = vector.broadcast %cst_59 : f32 to vector<16x1xf32>
    %162 = arith.addf %158, %161 : vector<16x1xf32>
    %163 = math.rsqrt %162 : vector<16x1xf32>
    %164 = vector.broadcast %163 : vector<16x1xf32> to vector<16x128xf32>
    %165 = arith.mulf %160, %164 : vector<16x128xf32>
    %166 = vector.broadcast %145 : vector<1x128xf32> to vector<16x128xf32>
    %167 = arith.mulf %165, %166 : vector<16x128xf32>
    %168 = vector.broadcast %147 : vector<1x128xf32> to vector<16x128xf32>
    %169 = arith.addf %167, %168 : vector<16x128xf32>
    %c0_60 = arith.constant 0 : index
    %c0_61 = arith.constant 0 : index
    %c0_62 = arith.constant 0 : index
    %170 = vector.load %arg11[%c0_60, %c0_61, %c0_62] : memref<2x128x256xf32, #tpu.memory_space<vmem>>, vector<1x128x256xf32>
    %171 = vector.shape_cast %170 : vector<1x128x256xf32> to vector<128x256xf32>
    %172 = arith.truncf %169 : vector<16x128xf32> to vector<16x128xbf16>
    %173 = arith.truncf %171 : vector<128x256xf32> to vector<128x256xbf16>
    %cst_63 = arith.constant dense<0.000000e+00> : vector<16x256xf32>
    %174 = tpu.matmul %172, %173, %cst_63 {dimension_numbers = #tpu.dot_dimension_numbers<[1], [0], [0], [1], [0, 0, 1, 1], [], []>} : vector<16x128xbf16>, vector<128x256xbf16>, vector<16x256xf32> -> vector<16x256xf32>
    %c0_64 = arith.constant 0 : index
    %c0_65 = arith.constant 0 : index
    %c0_66 = arith.constant 0 : index
    %175 = vector.load %arg12[%c0_64, %c0_65, %c0_66] : memref<2x1x256xf32, #tpu.memory_space<vmem>>, vector<1x1x256xf32>
    %176 = vector.shape_cast %175 : vector<1x1x256xf32> to vector<1x256xf32>
    %177 = vector.broadcast %176 : vector<1x256xf32> to vector<16x256xf32>
    %178 = arith.addf %174, %177 : vector<16x256xf32>
    %179 = arith.mulf %178, %178 : vector<16x256xf32>
    %180 = arith.mulf %178, %179 : vector<16x256xf32>
    %cst_67 = arith.constant 4.471500e-02 : f32
    %181 = vector.broadcast %cst_67 : f32 to vector<16x256xf32>
    %182 = arith.mulf %181, %180 : vector<16x256xf32>
    %183 = arith.addf %178, %182 : vector<16x256xf32>
    %cst_68 = arith.constant 0.797884583 : f32
    %184 = vector.broadcast %cst_68 : f32 to vector<16x256xf32>
    %185 = arith.mulf %184, %183 : vector<16x256xf32>
    %186 = math.tanh %185 : vector<16x256xf32>
    %cst_69 = arith.constant 1.000000e+00 : f32
    %187 = vector.broadcast %cst_69 : f32 to vector<16x256xf32>
    %188 = arith.addf %187, %186 : vector<16x256xf32>
    %cst_70 = arith.constant 5.000000e-01 : f32
    %189 = vector.broadcast %cst_70 : f32 to vector<16x256xf32>
    %190 = arith.mulf %189, %188 : vector<16x256xf32>
    %191 = arith.mulf %178, %190 : vector<16x256xf32>
    %c0_71 = arith.constant 0 : index
    %c0_72 = arith.constant 0 : index
    %c0_73 = arith.constant 0 : index
    %192 = vector.load %arg13[%c0_71, %c0_72, %c0_73] : memref<2x256x128xf32, #tpu.memory_space<vmem>>, vector<1x256x128xf32>
    %193 = vector.shape_cast %192 : vector<1x256x128xf32> to vector<256x128xf32>
    %194 = arith.truncf %191 : vector<16x256xf32> to vector<16x256xbf16>
    %195 = arith.truncf %193 : vector<256x128xf32> to vector<256x128xbf16>
    %cst_74 = arith.constant dense<0.000000e+00> : vector<16x128xf32>
    %196 = tpu.matmul %194, %195, %cst_74 {dimension_numbers = #tpu.dot_dimension_numbers<[1], [0], [0], [1], [0, 0, 1, 1], [], []>} : vector<16x256xbf16>, vector<256x128xbf16>, vector<16x128xf32> -> vector<16x128xf32>
    %c0_75 = arith.constant 0 : index
    %c0_76 = arith.constant 0 : index
    %c0_77 = arith.constant 0 : index
    %197 = vector.load %arg14[%c0_75, %c0_76, %c0_77] : memref<2x1x128xf32, #tpu.memory_space<vmem>>, vector<1x1x128xf32>
    %198 = vector.shape_cast %197 : vector<1x1x128xf32> to vector<1x128xf32>
    %199 = vector.broadcast %198 : vector<1x128xf32> to vector<16x128xf32>
    %200 = arith.addf %196, %199 : vector<16x128xf32>
    %201 = arith.addf %169, %200 : vector<16x128xf32>
    %c0_78 = arith.constant 0 : index
    %c0_79 = arith.constant 0 : index
    %c0_80 = arith.constant 0 : index
    %202 = vector.load %arg15[%c0_78, %c0_79, %c0_80] : memref<2x1x128xf32, #tpu.memory_space<vmem>>, vector<1x1x128xf32>
    %203 = vector.shape_cast %202 : vector<1x1x128xf32> to vector<1x128xf32>
    %c0_81 = arith.constant 0 : index
    %c0_82 = arith.constant 0 : index
    %c0_83 = arith.constant 0 : index
    %204 = vector.load %arg16[%c0_81, %c0_82, %c0_83] : memref<2x1x128xf32, #tpu.memory_space<vmem>>, vector<1x1x128xf32>
    %205 = vector.shape_cast %204 : vector<1x1x128xf32> to vector<1x128xf32>
    %cst_84 = arith.constant dense<0.000000e+00> : vector<16xf32>
    %206 = vector.multi_reduction <add>, %201, %cst_84 [1] : vector<16x128xf32> to vector<16xf32>
    %207 = vector.shape_cast %206 : vector<16xf32> to vector<16x1xf32>
    %cst_85 = arith.constant 1.280000e+02 : f32
    %208 = vector.broadcast %cst_85 : f32 to vector<16x1xf32>
    %209 = arith.divf %207, %208 : vector<16x1xf32>
    %210 = vector.broadcast %209 : vector<16x1xf32> to vector<16x128xf32>
    %211 = arith.subf %201, %210 : vector<16x128xf32>
    %212 = arith.mulf %211, %211 : vector<16x128xf32>
    %cst_86 = arith.constant dense<0.000000e+00> : vector<16xf32>
    %213 = vector.multi_reduction <add>, %212, %cst_86 [1] : vector<16x128xf32> to vector<16xf32>
    %214 = vector.shape_cast %213 : vector<16xf32> to vector<16x1xf32>
    %cst_87 = arith.constant 1.280000e+02 : f32
    %215 = vector.broadcast %cst_87 : f32 to vector<16x1xf32>
    %216 = arith.divf %214, %215 : vector<16x1xf32>
    %217 = vector.broadcast %209 : vector<16x1xf32> to vector<16x128xf32>
    %218 = arith.subf %201, %217 : vector<16x128xf32>
    %cst_88 = arith.constant 9.99999996E-13 : f32
    %219 = vector.broadcast %cst_88 : f32 to vector<16x1xf32>
    %220 = arith.addf %216, %219 : vector<16x1xf32>
    %221 = math.rsqrt %220 : vector<16x1xf32>
    %222 = vector.broadcast %221 : vector<16x1xf32> to vector<16x128xf32>
    %223 = arith.mulf %218, %222 : vector<16x128xf32>
    %224 = vector.broadcast %203 : vector<1x128xf32> to vector<16x128xf32>
    %225 = arith.mulf %223, %224 : vector<16x128xf32>
    %226 = vector.broadcast %205 : vector<1x128xf32> to vector<16x128xf32>
    %227 = arith.addf %225, %226 : vector<16x128xf32>
    %c1 = arith.constant 1 : index
    %c0_89 = arith.constant 0 : index
    %c0_90 = arith.constant 0 : index
    %228 = vector.load %arg5[%c1, %c0_89, %c0_90] : memref<2x128x384xf32, #tpu.memory_space<vmem>>, vector<1x128x384xf32>
    %229 = vector.shape_cast %228 : vector<1x128x384xf32> to vector<128x384xf32>
    %230 = arith.truncf %227 : vector<16x128xf32> to vector<16x128xbf16>
    %231 = arith.truncf %229 : vector<128x384xf32> to vector<128x384xbf16>
    %cst_91 = arith.constant dense<0.000000e+00> : vector<16x384xf32>
    %232 = tpu.matmul %230, %231, %cst_91 {dimension_numbers = #tpu.dot_dimension_numbers<[1], [0], [0], [1], [0, 0, 1, 1], [], []>} : vector<16x128xbf16>, vector<128x384xbf16>, vector<16x384xf32> -> vector<16x384xf32>
    %c1_92 = arith.constant 1 : index
    %c0_93 = arith.constant 0 : index
    %c0_94 = arith.constant 0 : index
    %233 = vector.load %arg6[%c1_92, %c0_93, %c0_94] : memref<2x1x384xf32, #tpu.memory_space<vmem>>, vector<1x1x384xf32>
    %234 = vector.shape_cast %233 : vector<1x1x384xf32> to vector<1x384xf32>
    %235 = vector.broadcast %234 : vector<1x384xf32> to vector<16x384xf32>
    %236 = arith.addf %232, %235 : vector<16x384xf32>
    %237 = vector.extract_strided_slice %236 {offsets = [0, 0], sizes = [16, 32], strides = [1, 1]} : vector<16x384xf32> to vector<16x32xf32>
    %238 = vector.extract_strided_slice %236 {offsets = [0, 128], sizes = [16, 32], strides = [1, 1]} : vector<16x384xf32> to vector<16x32xf32>
    %239 = vector.extract_strided_slice %236 {offsets = [0, 256], sizes = [16, 32], strides = [1, 1]} : vector<16x384xf32> to vector<16x32xf32>
    %240 = arith.truncf %237 : vector<16x32xf32> to vector<16x32xbf16>
    %241 = arith.truncf %238 : vector<16x32xf32> to vector<16x32xbf16>
    %cst_95 = arith.constant dense<0.000000e+00> : vector<16x16xf32>
    %242 = tpu.matmul %240, %241, %cst_95 {dimension_numbers = #tpu.dot_dimension_numbers<[1], [1], [0], [0], [0, 0, 1, 0], [], []>} : vector<16x32xbf16>, vector<16x32xbf16>, vector<16x16xf32> -> vector<16x16xf32>
    %cst_96 = arith.constant 0.176776692 : f32
    %243 = vector.broadcast %cst_96 : f32 to vector<16x16xf32>
    %244 = arith.mulf %242, %243 : vector<16x16xf32>
    %245 = vector.broadcast %7 : vector<1x16xf32> to vector<16x16xf32>
    %246 = arith.addf %244, %245 : vector<16x16xf32>
    %cst_97 = arith.constant dense<0xFF800000> : vector<16xf32>
    %247 = vector.multi_reduction <maximumf>, %246, %cst_97 [1] : vector<16x16xf32> to vector<16xf32>
    %248 = vector.shape_cast %247 : vector<16xf32> to vector<16x1xf32>
    %249 = vector.broadcast %248 : vector<16x1xf32> to vector<16x16xf32>
    %250 = arith.subf %246, %249 : vector<16x16xf32>
    %251 = math.exp %250 : vector<16x16xf32>
    %cst_98 = arith.constant dense<0.000000e+00> : vector<16xf32>
    %252 = vector.multi_reduction <add>, %251, %cst_98 [1] : vector<16x16xf32> to vector<16xf32>
    %253 = vector.shape_cast %252 : vector<16xf32> to vector<16x1xf32>
    %254 = tpu.reciprocal %253 {approx = true} : vector<16x1xf32> -> vector<16x1xf32>
    %255 = vector.broadcast %254 : vector<16x1xf32> to vector<16x16xf32>
    %256 = arith.mulf %251, %255 : vector<16x16xf32>
    %257 = arith.truncf %256 : vector<16x16xf32> to vector<16x16xbf16>
    %258 = arith.truncf %239 : vector<16x32xf32> to vector<16x32xbf16>
    %cst_99 = arith.constant dense<0.000000e+00> : vector<16x32xf32>
    %259 = tpu.matmul %257, %258, %cst_99 {dimension_numbers = #tpu.dot_dimension_numbers<[1], [0], [0], [1], [0, 0, 1, 1], [], []>} : vector<16x16xbf16>, vector<16x32xbf16>, vector<16x32xf32> -> vector<16x32xf32>
    %260 = vector.extract_strided_slice %236 {offsets = [0, 32], sizes = [16, 32], strides = [1, 1]} : vector<16x384xf32> to vector<16x32xf32>
    %261 = vector.extract_strided_slice %236 {offsets = [0, 160], sizes = [16, 32], strides = [1, 1]} : vector<16x384xf32> to vector<16x32xf32>
    %262 = vector.extract_strided_slice %236 {offsets = [0, 288], sizes = [16, 32], strides = [1, 1]} : vector<16x384xf32> to vector<16x32xf32>
    %263 = arith.truncf %260 : vector<16x32xf32> to vector<16x32xbf16>
    %264 = arith.truncf %261 : vector<16x32xf32> to vector<16x32xbf16>
    %cst_100 = arith.constant dense<0.000000e+00> : vector<16x16xf32>
    %265 = tpu.matmul %263, %264, %cst_100 {dimension_numbers = #tpu.dot_dimension_numbers<[1], [1], [0], [0], [0, 0, 1, 0], [], []>} : vector<16x32xbf16>, vector<16x32xbf16>, vector<16x16xf32> -> vector<16x16xf32>
    %cst_101 = arith.constant 0.176776692 : f32
    %266 = vector.broadcast %cst_101 : f32 to vector<16x16xf32>
    %267 = arith.mulf %265, %266 : vector<16x16xf32>
    %268 = vector.broadcast %7 : vector<1x16xf32> to vector<16x16xf32>
    %269 = arith.addf %267, %268 : vector<16x16xf32>
    %cst_102 = arith.constant dense<0xFF800000> : vector<16xf32>
    %270 = vector.multi_reduction <maximumf>, %269, %cst_102 [1] : vector<16x16xf32> to vector<16xf32>
    %271 = vector.shape_cast %270 : vector<16xf32> to vector<16x1xf32>
    %272 = vector.broadcast %271 : vector<16x1xf32> to vector<16x16xf32>
    %273 = arith.subf %269, %272 : vector<16x16xf32>
    %274 = math.exp %273 : vector<16x16xf32>
    %cst_103 = arith.constant dense<0.000000e+00> : vector<16xf32>
    %275 = vector.multi_reduction <add>, %274, %cst_103 [1] : vector<16x16xf32> to vector<16xf32>
    %276 = vector.shape_cast %275 : vector<16xf32> to vector<16x1xf32>
    %277 = tpu.reciprocal %276 {approx = true} : vector<16x1xf32> -> vector<16x1xf32>
    %278 = vector.broadcast %277 : vector<16x1xf32> to vector<16x16xf32>
    %279 = arith.mulf %274, %278 : vector<16x16xf32>
    %280 = arith.truncf %279 : vector<16x16xf32> to vector<16x16xbf16>
    %281 = arith.truncf %262 : vector<16x32xf32> to vector<16x32xbf16>
    %cst_104 = arith.constant dense<0.000000e+00> : vector<16x32xf32>
    %282 = tpu.matmul %280, %281, %cst_104 {dimension_numbers = #tpu.dot_dimension_numbers<[1], [0], [0], [1], [0, 0, 1, 1], [], []>} : vector<16x16xbf16>, vector<16x32xbf16>, vector<16x32xf32> -> vector<16x32xf32>
    %283 = vector.extract_strided_slice %236 {offsets = [0, 64], sizes = [16, 32], strides = [1, 1]} : vector<16x384xf32> to vector<16x32xf32>
    %284 = vector.extract_strided_slice %236 {offsets = [0, 192], sizes = [16, 32], strides = [1, 1]} : vector<16x384xf32> to vector<16x32xf32>
    %285 = vector.extract_strided_slice %236 {offsets = [0, 320], sizes = [16, 32], strides = [1, 1]} : vector<16x384xf32> to vector<16x32xf32>
    %286 = arith.truncf %283 : vector<16x32xf32> to vector<16x32xbf16>
    %287 = arith.truncf %284 : vector<16x32xf32> to vector<16x32xbf16>
    %cst_105 = arith.constant dense<0.000000e+00> : vector<16x16xf32>
    %288 = tpu.matmul %286, %287, %cst_105 {dimension_numbers = #tpu.dot_dimension_numbers<[1], [1], [0], [0], [0, 0, 1, 0], [], []>} : vector<16x32xbf16>, vector<16x32xbf16>, vector<16x16xf32> -> vector<16x16xf32>
    %cst_106 = arith.constant 0.176776692 : f32
    %289 = vector.broadcast %cst_106 : f32 to vector<16x16xf32>
    %290 = arith.mulf %288, %289 : vector<16x16xf32>
    %291 = vector.broadcast %7 : vector<1x16xf32> to vector<16x16xf32>
    %292 = arith.addf %290, %291 : vector<16x16xf32>
    %cst_107 = arith.constant dense<0xFF800000> : vector<16xf32>
    %293 = vector.multi_reduction <maximumf>, %292, %cst_107 [1] : vector<16x16xf32> to vector<16xf32>
    %294 = vector.shape_cast %293 : vector<16xf32> to vector<16x1xf32>
    %295 = vector.broadcast %294 : vector<16x1xf32> to vector<16x16xf32>
    %296 = arith.subf %292, %295 : vector<16x16xf32>
    %297 = math.exp %296 : vector<16x16xf32>
    %cst_108 = arith.constant dense<0.000000e+00> : vector<16xf32>
    %298 = vector.multi_reduction <add>, %297, %cst_108 [1] : vector<16x16xf32> to vector<16xf32>
    %299 = vector.shape_cast %298 : vector<16xf32> to vector<16x1xf32>
    %300 = tpu.reciprocal %299 {approx = true} : vector<16x1xf32> -> vector<16x1xf32>
    %301 = vector.broadcast %300 : vector<16x1xf32> to vector<16x16xf32>
    %302 = arith.mulf %297, %301 : vector<16x16xf32>
    %303 = arith.truncf %302 : vector<16x16xf32> to vector<16x16xbf16>
    %304 = arith.truncf %285 : vector<16x32xf32> to vector<16x32xbf16>
    %cst_109 = arith.constant dense<0.000000e+00> : vector<16x32xf32>
    %305 = tpu.matmul %303, %304, %cst_109 {dimension_numbers = #tpu.dot_dimension_numbers<[1], [0], [0], [1], [0, 0, 1, 1], [], []>} : vector<16x16xbf16>, vector<16x32xbf16>, vector<16x32xf32> -> vector<16x32xf32>
    %306 = vector.extract_strided_slice %236 {offsets = [0, 96], sizes = [16, 32], strides = [1, 1]} : vector<16x384xf32> to vector<16x32xf32>
    %307 = vector.extract_strided_slice %236 {offsets = [0, 224], sizes = [16, 32], strides = [1, 1]} : vector<16x384xf32> to vector<16x32xf32>
    %308 = vector.extract_strided_slice %236 {offsets = [0, 352], sizes = [16, 32], strides = [1, 1]} : vector<16x384xf32> to vector<16x32xf32>
    %309 = arith.truncf %306 : vector<16x32xf32> to vector<16x32xbf16>
    %310 = arith.truncf %307 : vector<16x32xf32> to vector<16x32xbf16>
    %cst_110 = arith.constant dense<0.000000e+00> : vector<16x16xf32>
    %311 = tpu.matmul %309, %310, %cst_110 {dimension_numbers = #tpu.dot_dimension_numbers<[1], [1], [0], [0], [0, 0, 1, 0], [], []>} : vector<16x32xbf16>, vector<16x32xbf16>, vector<16x16xf32> -> vector<16x16xf32>
    %cst_111 = arith.constant 0.176776692 : f32
    %312 = vector.broadcast %cst_111 : f32 to vector<16x16xf32>
    %313 = arith.mulf %311, %312 : vector<16x16xf32>
    %314 = vector.broadcast %7 : vector<1x16xf32> to vector<16x16xf32>
    %315 = arith.addf %313, %314 : vector<16x16xf32>
    %cst_112 = arith.constant dense<0xFF800000> : vector<16xf32>
    %316 = vector.multi_reduction <maximumf>, %315, %cst_112 [1] : vector<16x16xf32> to vector<16xf32>
    %317 = vector.shape_cast %316 : vector<16xf32> to vector<16x1xf32>
    %318 = vector.broadcast %317 : vector<16x1xf32> to vector<16x16xf32>
    %319 = arith.subf %315, %318 : vector<16x16xf32>
    %320 = math.exp %319 : vector<16x16xf32>
    %cst_113 = arith.constant dense<0.000000e+00> : vector<16xf32>
    %321 = vector.multi_reduction <add>, %320, %cst_113 [1] : vector<16x16xf32> to vector<16xf32>
    %322 = vector.shape_cast %321 : vector<16xf32> to vector<16x1xf32>
    %323 = tpu.reciprocal %322 {approx = true} : vector<16x1xf32> -> vector<16x1xf32>
    %324 = vector.broadcast %323 : vector<16x1xf32> to vector<16x16xf32>
    %325 = arith.mulf %320, %324 : vector<16x16xf32>
    %326 = arith.truncf %325 : vector<16x16xf32> to vector<16x16xbf16>
    %327 = arith.truncf %308 : vector<16x32xf32> to vector<16x32xbf16>
    %cst_114 = arith.constant dense<0.000000e+00> : vector<16x32xf32>
    %328 = tpu.matmul %326, %327, %cst_114 {dimension_numbers = #tpu.dot_dimension_numbers<[1], [0], [0], [1], [0, 0, 1, 1], [], []>} : vector<16x16xbf16>, vector<16x32xbf16>, vector<16x32xf32> -> vector<16x32xf32>
    %329 = tpu.concatenate %259, %282, %305, %328 in 1 : vector<16x32xf32>, vector<16x32xf32>, vector<16x32xf32>, vector<16x32xf32> -> vector<16x128xf32>
    %c1_115 = arith.constant 1 : index
    %c0_116 = arith.constant 0 : index
    %c0_117 = arith.constant 0 : index
    %330 = vector.load %arg7[%c1_115, %c0_116, %c0_117] : memref<2x128x128xf32, #tpu.memory_space<vmem>>, vector<1x128x128xf32>
    %331 = vector.shape_cast %330 : vector<1x128x128xf32> to vector<128x128xf32>
    %332 = arith.truncf %329 : vector<16x128xf32> to vector<16x128xbf16>
    %333 = arith.truncf %331 : vector<128x128xf32> to vector<128x128xbf16>
    %cst_118 = arith.constant dense<0.000000e+00> : vector<16x128xf32>
    %334 = tpu.matmul %332, %333, %cst_118 {dimension_numbers = #tpu.dot_dimension_numbers<[1], [0], [0], [1], [0, 0, 1, 1], [], []>} : vector<16x128xbf16>, vector<128x128xbf16>, vector<16x128xf32> -> vector<16x128xf32>
    %c1_119 = arith.constant 1 : index
    %c0_120 = arith.constant 0 : index
    %c0_121 = arith.constant 0 : index
    %335 = vector.load %arg8[%c1_119, %c0_120, %c0_121] : memref<2x1x128xf32, #tpu.memory_space<vmem>>, vector<1x1x128xf32>
    %336 = vector.shape_cast %335 : vector<1x1x128xf32> to vector<1x128xf32>
    %337 = vector.broadcast %336 : vector<1x128xf32> to vector<16x128xf32>
    %338 = arith.addf %334, %337 : vector<16x128xf32>
    %339 = arith.addf %227, %338 : vector<16x128xf32>
    %c1_122 = arith.constant 1 : index
    %c0_123 = arith.constant 0 : index
    %c0_124 = arith.constant 0 : index
    %340 = vector.load %arg9[%c1_122, %c0_123, %c0_124] : memref<2x1x128xf32, #tpu.memory_space<vmem>>, vector<1x1x128xf32>
    %341 = vector.shape_cast %340 : vector<1x1x128xf32> to vector<1x128xf32>
    %c1_125 = arith.constant 1 : index
    %c0_126 = arith.constant 0 : index
    %c0_127 = arith.constant 0 : index
    %342 = vector.load %arg10[%c1_125, %c0_126, %c0_127] : memref<2x1x128xf32, #tpu.memory_space<vmem>>, vector<1x1x128xf32>
    %343 = vector.shape_cast %342 : vector<1x1x128xf32> to vector<1x128xf32>
    %cst_128 = arith.constant dense<0.000000e+00> : vector<16xf32>
    %344 = vector.multi_reduction <add>, %339, %cst_128 [1] : vector<16x128xf32> to vector<16xf32>
    %345 = vector.shape_cast %344 : vector<16xf32> to vector<16x1xf32>
    %cst_129 = arith.constant 1.280000e+02 : f32
    %346 = vector.broadcast %cst_129 : f32 to vector<16x1xf32>
    %347 = arith.divf %345, %346 : vector<16x1xf32>
    %348 = vector.broadcast %347 : vector<16x1xf32> to vector<16x128xf32>
    %349 = arith.subf %339, %348 : vector<16x128xf32>
    %350 = arith.mulf %349, %349 : vector<16x128xf32>
    %cst_130 = arith.constant dense<0.000000e+00> : vector<16xf32>
    %351 = vector.multi_reduction <add>, %350, %cst_130 [1] : vector<16x128xf32> to vector<16xf32>
    %352 = vector.shape_cast %351 : vector<16xf32> to vector<16x1xf32>
    %cst_131 = arith.constant 1.280000e+02 : f32
    %353 = vector.broadcast %cst_131 : f32 to vector<16x1xf32>
    %354 = arith.divf %352, %353 : vector<16x1xf32>
    %355 = vector.broadcast %347 : vector<16x1xf32> to vector<16x128xf32>
    %356 = arith.subf %339, %355 : vector<16x128xf32>
    %cst_132 = arith.constant 9.99999996E-13 : f32
    %357 = vector.broadcast %cst_132 : f32 to vector<16x1xf32>
    %358 = arith.addf %354, %357 : vector<16x1xf32>
    %359 = math.rsqrt %358 : vector<16x1xf32>
    %360 = vector.broadcast %359 : vector<16x1xf32> to vector<16x128xf32>
    %361 = arith.mulf %356, %360 : vector<16x128xf32>
    %362 = vector.broadcast %341 : vector<1x128xf32> to vector<16x128xf32>
    %363 = arith.mulf %361, %362 : vector<16x128xf32>
    %364 = vector.broadcast %343 : vector<1x128xf32> to vector<16x128xf32>
    %365 = arith.addf %363, %364 : vector<16x128xf32>
    %c1_133 = arith.constant 1 : index
    %c0_134 = arith.constant 0 : index
    %c0_135 = arith.constant 0 : index
    %366 = vector.load %arg11[%c1_133, %c0_134, %c0_135] : memref<2x128x256xf32, #tpu.memory_space<vmem>>, vector<1x128x256xf32>
    %367 = vector.shape_cast %366 : vector<1x128x256xf32> to vector<128x256xf32>
    %368 = arith.truncf %365 : vector<16x128xf32> to vector<16x128xbf16>
    %369 = arith.truncf %367 : vector<128x256xf32> to vector<128x256xbf16>
    %cst_136 = arith.constant dense<0.000000e+00> : vector<16x256xf32>
    %370 = tpu.matmul %368, %369, %cst_136 {dimension_numbers = #tpu.dot_dimension_numbers<[1], [0], [0], [1], [0, 0, 1, 1], [], []>} : vector<16x128xbf16>, vector<128x256xbf16>, vector<16x256xf32> -> vector<16x256xf32>
    %c1_137 = arith.constant 1 : index
    %c0_138 = arith.constant 0 : index
    %c0_139 = arith.constant 0 : index
    %371 = vector.load %arg12[%c1_137, %c0_138, %c0_139] : memref<2x1x256xf32, #tpu.memory_space<vmem>>, vector<1x1x256xf32>
    %372 = vector.shape_cast %371 : vector<1x1x256xf32> to vector<1x256xf32>
    %373 = vector.broadcast %372 : vector<1x256xf32> to vector<16x256xf32>
    %374 = arith.addf %370, %373 : vector<16x256xf32>
    %375 = arith.mulf %374, %374 : vector<16x256xf32>
    %376 = arith.mulf %374, %375 : vector<16x256xf32>
    %cst_140 = arith.constant 4.471500e-02 : f32
    %377 = vector.broadcast %cst_140 : f32 to vector<16x256xf32>
    %378 = arith.mulf %377, %376 : vector<16x256xf32>
    %379 = arith.addf %374, %378 : vector<16x256xf32>
    %cst_141 = arith.constant 0.797884583 : f32
    %380 = vector.broadcast %cst_141 : f32 to vector<16x256xf32>
    %381 = arith.mulf %380, %379 : vector<16x256xf32>
    %382 = math.tanh %381 : vector<16x256xf32>
    %cst_142 = arith.constant 1.000000e+00 : f32
    %383 = vector.broadcast %cst_142 : f32 to vector<16x256xf32>
    %384 = arith.addf %383, %382 : vector<16x256xf32>
    %cst_143 = arith.constant 5.000000e-01 : f32
    %385 = vector.broadcast %cst_143 : f32 to vector<16x256xf32>
    %386 = arith.mulf %385, %384 : vector<16x256xf32>
    %387 = arith.mulf %374, %386 : vector<16x256xf32>
    %c1_144 = arith.constant 1 : index
    %c0_145 = arith.constant 0 : index
    %c0_146 = arith.constant 0 : index
    %388 = vector.load %arg13[%c1_144, %c0_145, %c0_146] : memref<2x256x128xf32, #tpu.memory_space<vmem>>, vector<1x256x128xf32>
    %389 = vector.shape_cast %388 : vector<1x256x128xf32> to vector<256x128xf32>
    %390 = arith.truncf %387 : vector<16x256xf32> to vector<16x256xbf16>
    %391 = arith.truncf %389 : vector<256x128xf32> to vector<256x128xbf16>
    %cst_147 = arith.constant dense<0.000000e+00> : vector<16x128xf32>
    %392 = tpu.matmul %390, %391, %cst_147 {dimension_numbers = #tpu.dot_dimension_numbers<[1], [0], [0], [1], [0, 0, 1, 1], [], []>} : vector<16x256xbf16>, vector<256x128xbf16>, vector<16x128xf32> -> vector<16x128xf32>
    %c1_148 = arith.constant 1 : index
    %c0_149 = arith.constant 0 : index
    %c0_150 = arith.constant 0 : index
    %393 = vector.load %arg14[%c1_148, %c0_149, %c0_150] : memref<2x1x128xf32, #tpu.memory_space<vmem>>, vector<1x1x128xf32>
    %394 = vector.shape_cast %393 : vector<1x1x128xf32> to vector<1x128xf32>
    %395 = vector.broadcast %394 : vector<1x128xf32> to vector<16x128xf32>
    %396 = arith.addf %392, %395 : vector<16x128xf32>
    %397 = arith.addf %365, %396 : vector<16x128xf32>
    %c1_151 = arith.constant 1 : index
    %c0_152 = arith.constant 0 : index
    %c0_153 = arith.constant 0 : index
    %398 = vector.load %arg15[%c1_151, %c0_152, %c0_153] : memref<2x1x128xf32, #tpu.memory_space<vmem>>, vector<1x1x128xf32>
    %399 = vector.shape_cast %398 : vector<1x1x128xf32> to vector<1x128xf32>
    %c1_154 = arith.constant 1 : index
    %c0_155 = arith.constant 0 : index
    %c0_156 = arith.constant 0 : index
    %400 = vector.load %arg16[%c1_154, %c0_155, %c0_156] : memref<2x1x128xf32, #tpu.memory_space<vmem>>, vector<1x1x128xf32>
    %401 = vector.shape_cast %400 : vector<1x1x128xf32> to vector<1x128xf32>
    %cst_157 = arith.constant dense<0.000000e+00> : vector<16xf32>
    %402 = vector.multi_reduction <add>, %397, %cst_157 [1] : vector<16x128xf32> to vector<16xf32>
    %403 = vector.shape_cast %402 : vector<16xf32> to vector<16x1xf32>
    %cst_158 = arith.constant 1.280000e+02 : f32
    %404 = vector.broadcast %cst_158 : f32 to vector<16x1xf32>
    %405 = arith.divf %403, %404 : vector<16x1xf32>
    %406 = vector.broadcast %405 : vector<16x1xf32> to vector<16x128xf32>
    %407 = arith.subf %397, %406 : vector<16x128xf32>
    %408 = arith.mulf %407, %407 : vector<16x128xf32>
    %cst_159 = arith.constant dense<0.000000e+00> : vector<16xf32>
    %409 = vector.multi_reduction <add>, %408, %cst_159 [1] : vector<16x128xf32> to vector<16xf32>
    %410 = vector.shape_cast %409 : vector<16xf32> to vector<16x1xf32>
    %cst_160 = arith.constant 1.280000e+02 : f32
    %411 = vector.broadcast %cst_160 : f32 to vector<16x1xf32>
    %412 = arith.divf %410, %411 : vector<16x1xf32>
    %413 = vector.broadcast %405 : vector<16x1xf32> to vector<16x128xf32>
    %414 = arith.subf %397, %413 : vector<16x128xf32>
    %cst_161 = arith.constant 9.99999996E-13 : f32
    %415 = vector.broadcast %cst_161 : f32 to vector<16x1xf32>
    %416 = arith.addf %412, %415 : vector<16x1xf32>
    %417 = math.rsqrt %416 : vector<16x1xf32>
    %418 = vector.broadcast %417 : vector<16x1xf32> to vector<16x128xf32>
    %419 = arith.mulf %414, %418 : vector<16x128xf32>
    %420 = vector.broadcast %399 : vector<1x128xf32> to vector<16x128xf32>
    %421 = arith.mulf %419, %420 : vector<16x128xf32>
    %422 = vector.broadcast %401 : vector<1x128xf32> to vector<16x128xf32>
    %423 = arith.addf %421, %422 : vector<16x128xf32>
    %424 = vector.extract_strided_slice %423 {offsets = [0, 0], sizes = [1, 128], strides = [1, 1]} : vector<16x128xf32> to vector<1x128xf32>
    %c0_162 = arith.constant 0 : index
    %c0_163 = arith.constant 0 : index
    %c0_164 = arith.constant 0 : index
    %425 = vector.load %arg17[%c0_162, %c0_163, %c0_164] : memref<1x1x128xf32, #tpu.memory_space<vmem>>, vector<1x1x128xf32>
    %426 = vector.shape_cast %425 : vector<1x1x128xf32> to vector<1x128xf32>
    %427 = vector.shape_cast %424 : vector<1x128xf32> to vector<1x1x128xf32>
    tpu.vector_store %arg17[%c0_162, %c0_163, %c0_164], %427 {strides = array<i32>} : memref<1x1x128xf32, #tpu.memory_space<vmem>>, vector<1x1x128xf32>,
    return
  }
  func.func @transform_0(%arg0: i32) -> (i32, i32, i32) {
    %c0_i32 = arith.constant 0 : i32
    %c0_i32_0 = arith.constant 0 : i32
    %c0_i32_1 = arith.constant 0 : i32
    return %arg0, %c0_i32, %c0_i32_0 : i32, i32, i32
  }
  func.func @transform_1(%arg0: i32) -> (i32, i32, i32) {
    %c0_i32 = arith.constant 0 : i32
    %c0_i32_0 = arith.constant 0 : i32
    %c0_i32_1 = arith.constant 0 : i32
    return %arg0, %c0_i32, %c0_i32_0 : i32, i32, i32
  }
  func.func @transform_2(%arg0: i32) -> (i32, i32) {
    %c0_i32 = arith.constant 0 : i32
    %c0_i32_0 = arith.constant 0 : i32
    %c0_i32_1 = arith.constant 0 : i32
    return %c0_i32, %c0_i32_0 : i32, i32
  }
  func.func @transform_3(%arg0: i32) -> (i32, i32) {
    %c0_i32 = arith.constant 0 : i32
    %c0_i32_0 = arith.constant 0 : i32
    %c0_i32_1 = arith.constant 0 : i32
    return %c0_i32, %c0_i32_0 : i32, i32
  }
  func.func @transform_4(%arg0: i32) -> (i32, i32, i32) {
    %c0_i32 = arith.constant 0 : i32
    %c0_i32_0 = arith.constant 0 : i32
    %c0_i32_1 = arith.constant 0 : i32
    %c0_i32_2 = arith.constant 0 : i32
    return %c0_i32, %c0_i32_0, %c0_i32_1 : i32, i32, i32
  }
  func.func @transform_5(%arg0: i32) -> (i32, i32, i32) {
    %c0_i32 = arith.constant 0 : i32
    %c0_i32_0 = arith.constant 0 : i32
    %c0_i32_1 = arith.constant 0 : i32
    %c0_i32_2 = arith.constant 0 : i32
    return %c0_i32, %c0_i32_0, %c0_i32_1 : i32, i32, i32
  }
  func.func @transform_6(%arg0: i32) -> (i32, i32, i32) {
    %c0_i32 = arith.constant 0 : i32
    %c0_i32_0 = arith.constant 0 : i32
    %c0_i32_1 = arith.constant 0 : i32
    %c0_i32_2 = arith.constant 0 : i32
    return %c0_i32, %c0_i32_0, %c0_i32_1 : i32, i32, i32
  }
  func.func @transform_7(%arg0: i32) -> (i32, i32, i32) {
    %c0_i32 = arith.constant 0 : i32
    %c0_i32_0 = arith.constant 0 : i32
    %c0_i32_1 = arith.constant 0 : i32
    %c0_i32_2 = arith.constant 0 : i32
    return %c0_i32, %c0_i32_0, %c0_i32_1 : i32, i32, i32
  }
  func.func @transform_8(%arg0: i32) -> (i32, i32, i32) {
    %c0_i32 = arith.constant 0 : i32
    %c0_i32_0 = arith.constant 0 : i32
    %c0_i32_1 = arith.constant 0 : i32
    %c0_i32_2 = arith.constant 0 : i32
    return %c0_i32, %c0_i32_0, %c0_i32_1 : i32, i32, i32
  }
  func.func @transform_9(%arg0: i32) -> (i32, i32, i32) {
    %c0_i32 = arith.constant 0 : i32
    %c0_i32_0 = arith.constant 0 : i32
    %c0_i32_1 = arith.constant 0 : i32
    %c0_i32_2 = arith.constant 0 : i32
    return %c0_i32, %c0_i32_0, %c0_i32_1 : i32, i32, i32
  }
  func.func @transform_10(%arg0: i32) -> (i32, i32, i32) {
    %c0_i32 = arith.constant 0 : i32
    %c0_i32_0 = arith.constant 0 : i32
    %c0_i32_1 = arith.constant 0 : i32
    %c0_i32_2 = arith.constant 0 : i32
    return %c0_i32, %c0_i32_0, %c0_i32_1 : i32, i32, i32
  }
  func.func @transform_11(%arg0: i32) -> (i32, i32, i32) {
    %c0_i32 = arith.constant 0 : i32
    %c0_i32_0 = arith.constant 0 : i32
    %c0_i32_1 = arith.constant 0 : i32
    %c0_i32_2 = arith.constant 0 : i32
    return %c0_i32, %c0_i32_0, %c0_i32_1 : i32, i32, i32
  }
  func.func @transform_12(%arg0: i32) -> (i32, i32, i32) {
    %c0_i32 = arith.constant 0 : i32
    %c0_i32_0 = arith.constant 0 : i32
    %c0_i32_1 = arith.constant 0 : i32
    %c0_i32_2 = arith.constant 0 : i32
    return %c0_i32, %c0_i32_0, %c0_i32_1 : i32, i32, i32
  }
  func.func @transform_13(%arg0: i32) -> (i32, i32, i32) {
    %c0_i32 = arith.constant 0 : i32
    %c0_i32_0 = arith.constant 0 : i32
    %c0_i32_1 = arith.constant 0 : i32
    %c0_i32_2 = arith.constant 0 : i32
    return %c0_i32, %c0_i32_0, %c0_i32_1 : i32, i32, i32
  }
  func.func @transform_14(%arg0: i32) -> (i32, i32, i32) {
    %c0_i32 = arith.constant 0 : i32
    %c0_i32_0 = arith.constant 0 : i32
    %c0_i32_1 = arith.constant 0 : i32
    %c0_i32_2 = arith.constant 0 : i32
    return %c0_i32, %c0_i32_0, %c0_i32_1 : i32, i32, i32
  }
  func.func @transform_15(%arg0: i32) -> (i32, i32, i32) {
    %c0_i32 = arith.constant 0 : i32
    %c0_i32_0 = arith.constant 0 : i32
    %c0_i32_1 = arith.constant 0 : i32
    %c0_i32_2 = arith.constant 0 : i32
    return %c0_i32, %c0_i32_0, %c0_i32_1 : i32, i32, i32
  }
  func.func @transform_16(%arg0: i32) -> (i32, i32, i32) {
    %c0_i32 = arith.constant 0 : i32
    %c0_i32_0 = arith.constant 0 : i32
    %c0_i32_1 = arith.constant 0 : i32
    return %arg0, %c0_i32, %c0_i32_0 : i32, i32, i32
  }
}

</mosaic_0001>

<bundles_post_ra>
// kernel: tpu_custom_call.1
= control target key start
LH: loop header
LB: loop body
LE: loop exit
PB: predicated region body
PF: predicated region fallthrough
CT: control target
= control target key end

     0   :  { %s3850_s0 = inlined_call_operand.hbm [shape: f32[6,16,128], index: 0, kind: input, shape index: {}]   ;;  %s3851_s1 = inlined_call_operand.hbm [shape: f32[6,1,16], index: 1, kind: input, shape index: {}]   ;;  %s3852_s2 = inlined_call_operand.hbm [shape: f32[1,128], index: 2, kind: input, shape index: {}]   ;;  %s3853_s3 = inlined_call_operand.hbm [shape: f32[1,128], index: 3, kind: input, shape index: {}]   ;;  %s3854_s4 = inlined_call_operand.hbm [shape: f32[2,128,384], index: 4, kind: input, shape index: {}]   ;;  %s3855_s5 = inlined_call_operand.hbm [shape: f32[2,1,384], index: 5, kind: input, shape index: {}]   ;;  %s3856_s6 = inlined_call_operand.hbm [shape: f32[2,128,128], index: 6, kind: input, shape index: {}]   ;;  %s3857_s7 = inlined_call_operand.vmem [shape: f32[2,1,128], index: 7, kind: input, shape index: {}]   ;;  %s3858_s8 = inlined_call_operand.hbm [shape: f32[2,1,128], index: 8, kind: input, shape index: {}]   ;;  %s3859_s9 = inlined_call_operand.vmem [shape: f32[2,1,128], index: 9, kind: input, shape index: {}]   ;;  %s3860_s10 = inlined_call_operand.hbm [shape: f32[2,128,256], index: 10, kind: input, shape index: {}]   ;;  %s3861_s11 = inlined_call_operand.vmem [shape: f32[2,1,256], index: 11, kind: input, shape index: {}]   ;;  %s3862_s12 = inlined_call_operand.hbm [shape: f32[2,256,128], index: 12, kind: input, shape index: {}]   ;;  %s3863_s13 = inlined_call_operand.vmem [shape: f32[2,1,128], index: 13, kind: input, shape index: {}]   ;;  %s3864_s14 = inlined_call_operand.vmem [shape: f32[2,1,128], index: 14, kind: input, shape index: {}]   ;;  %s3865_s15 = inlined_call_operand.vmem [shape: f32[2,1,128], index: 15, kind: input, shape index: {}]   ;;  %s3866_s16 = inlined_call_operand.hbm [shape: f32[6,1,128], index: 16, kind: output, shape index: {}]  }
   0x1   :  { %3878 = sst [smem:[#allocation31_spill]] %s3850_s0 }
   0x2   :  { %3879 = sst [smem:[#allocation32_spill]] %s3852_s2 }
   0x3   :  { %3880 = sst [smem:[#allocation33_spill]] %s3853_s3 }
   0x4   :  { %3881 = sst [smem:[#allocation34_spill]] %s3854_s4 }
   0x5   :  { %3882 = sst [smem:[#allocation35_spill]] %s3855_s5 }
   0x6   :  { %3883 = sst [smem:[#allocation36_spill]] %s3856_s6 }
   0x7   :  { %3884 = sst [smem:[#allocation37_spill]] %s3858_s8 }
   0x8   :  { %3885 = sst [smem:[#allocation38_spill]] %s3860_s10 }
   0x9   :  { %3886 = sst [smem:[#allocation39_spill]] %s3862_s12 }
   0xa   :  { %3887 = sst [smem:[#allocation40_spill]] %s3863_s13 }
   0xb   :  { %3888 = sst [smem:[#allocation41_spill]] %s3864_s14 }
   0xc   :  { %3889 = sst [smem:[#allocation42_spill]] %s3865_s15 }
   0xd   :  { %3890 = sst [smem:[#allocation43_spill]] %s3866_s16 }
   0xe   :  { %21 = vsyncpa [#allocation3], 0 }
   0xf   :  { %23 = vsyncpa [#allocation3 + $0x1], 0 }
  0x10   :  { %24 = vsyncpa [#allocation6], 0 }
  0x11   :  { %26 = vsyncpa [#allocation6 + $0x1], 0 }
  0x12   :  { %27 = vsyncpa [#allocation9], 0 }
  0x13   :  { %28 = vsyncpa [#allocation12], 0 }
  0x14   :  { %29 = vsyncpa [#allocation15], 0 }
  0x15   :  { %30 = vsyncpa [#allocation18], 0 }
  0x16   :  { %31 = vsyncpa [#allocation4], 0 }
  0x17   :  { %33 = vsyncpa [#allocation4 + $0x1], 0  ;;  %s3351_s21 = smov 0   ;;  %s3353_s22 = smov 0  }
  0x18   :  { %s3355_s23 = smov 0   ;;  %s3357_s24 = smov 0  }
  0x19 LB: > { %3891 = sst [smem:[#allocation28_spill]] %s3239_s23  ;;  %s3375_s28 = sadd.s32 4294967295, %s3243_s24   ;;  %s3243_s24 = sphi %s3357_s24, %s3917_s24   ;;  %s3239_s23 = sphi %s3355_s23, %s3919_s23   ;;  %s3235_s22 = sphi %s3353_s22, %s3921_s22   ;;  %s3231_s21 = sphi %s3351_s21, %s3920_s21  }
  0x1a   : > { %s3892_s2 = sld [smem:[#allocation32_spill]]  ;;  %p2515_p0 = scmp.ge.s32.totalorder %s3243_s24, 1 }
  0x1b   : > { %p60_p1 = scmp.eq.s32.totalorder %s3375_s28, 0  ;;  %p416_p2 = scmp.lt.s32.totalorder %s3243_s24, 7 }
  0x1c   : > { %s3245_s30 = smov [#allocation7]   ;;  %s3894_s3 = sld [smem:[#allocation33_spill]] }
  0x1d   : > { %p3380_p3 = pnand %p2515_p0, %p416_p2  ;;  %s430_s0 = sshll.u32 %s3245_s30, 4  ;;  %s431_s0 = int_to_ptr.vmem [resolvable:$true] %s430_s0 }
  0x1e   : > { %s3246_s25 = smov [#allocation8]   ;;  %s3896_s5 = sld [smem:[#allocation35_spill]] }
  0x1f   : > { %p2602_p4 = pneg %p3380_p3  ;;  %s442_s26 = sshll.u32 %s3246_s25, 4  ;;  %s443_s26 = int_to_ptr.vmem [resolvable:$true] %s442_s26 }
  0x20   : > { %s428_s27 = sshll.u32 %s3892_s2, 4  ;;  %s3247_s17 = smov [#allocation11]   ;;  %s429_s27 = int_to_ptr.hbm [resolvable:$true] %s428_s27 }
  0x21   : > { %p3391_p5 = pnand %p2602_p4, %p60_p1  ;;  %s467_s18 = sshll.u32 %s3247_s17, 4  ;;  %s468_s18 = int_to_ptr.vmem [resolvable:$true] %s467_s18 }
  0x22   : > { %s440_s19 = sshll.u32 %s3894_s3, 4  ;;  %s3897_s8 = sld [smem:[#allocation37_spill]]  ;;  %s441_s19 = int_to_ptr.hbm [resolvable:$true] %s440_s19 }
  0x23   : > { %2605 = dma.hbm_to_vmem [thread:$0]  (!%p3391_p5), %s429_s27, 16, %s431_s0, [#allocation6]  }
  0x24   : > { %s465_s16 = sshll.u32 %s3896_s5, 4  ;;  %s3248_s13 = smov 48   ;;  %s466_s16 = int_to_ptr.hbm [resolvable:$true] %s465_s16 }
  0x25   : > { %2608 = dma.hbm_to_vmem [thread:$0]  (!%p3391_p5), %s441_s19, 16, %s443_s26, [#allocation9]  }
  0x26   : > { %s3249_s25 = smov 3   ;;  %s3250_s2 = smov [#allocation14]  }
  0x27   : > { %2614 = dma.hbm_to_vmem [thread:$0]  (!%p3391_p5), %s466_s16, 96, %s468_s18, [#allocation12], %s3248_s13, %s3248_s13, %s3249_s25  }
  0x28   : > { %s496_s14 = sshll.u32 %s3897_s8, 4  ;;  %s498_s30 = sshll.u32 %s3250_s2, 4  ;;  %s497_s14 = int_to_ptr.hbm [resolvable:$true] %s496_s14  ;;  %s499_s30 = int_to_ptr.vmem [resolvable:$true] %s498_s30 }
  0x29   : > { %s3251_s5 = smov 16   ;;  %s3252_s27 = smov 1  }
  0x2a   : > { %2620 = dma.hbm_to_vmem [thread:$0]  (!%p3391_p5), %s497_s14, 32, %s499_s30, [#allocation15], %s3251_s5, %s3251_s5, %s3252_s27  }
  0x2b   : > { %s3898_s4 = sld [smem:[#allocation34_spill]]  ;;  %s3253_s3 = smov [#allocation10]  }
  0x2c   : > { %s453_s15 = sshll.u32 %s3253_s3, 4  ;;  %s3899_s6 = sld [smem:[#allocation36_spill]]  ;;  %s454_s15 = int_to_ptr.vmem [resolvable:$true] %s453_s15 }
  0x2d   : > { %s3254_s18 = smov 384   ;;  %s3255_s25 = smov 24  }
  0x2e   : > { %s3256_s14 = smov [#allocation13]   ;;  %s3872_s30 = smov 128  }
  0x2f   : > { %s481_s2 = sshll.u32 %s3256_s14, 4  ;;  %s3873_s27 = smov 8   ;;  %s482_s2 = int_to_ptr.vmem [resolvable:$true] %s481_s2 }
  0x30   : > { %s3900_s10 = sld [smem:[#allocation38_spill]]  ;;  %s3260_s17 = smov 256  }
  0x31   : > { %s451_s26 = sshll.u32 %s3898_s4, 4  ;;  %s3901_s12 = sld [smem:[#allocation39_spill]]  ;;  %s452_s26 = int_to_ptr.hbm [resolvable:$true] %s451_s26 }
  0x32   : > { %s479_s16 = sshll.u32 %s3899_s6, 4  ;;  %s3437_s0 = sadd.s32 1, %s3243_s24   ;;  %s480_s16 = int_to_ptr.hbm [resolvable:$true] %s479_s16 }
  0x33   : > { %2611 = dma.hbm_to_vmem [thread:$0]  (!%p3391_p5), %s452_s26, 12288, %s454_s15, [#allocation9], %s3254_s18, %s3254_s18, %s3255_s25  }
  0x34   : > { %2617 = dma.hbm_to_vmem [thread:$0]  (!%p3391_p5), %s480_s16, 4096, %s482_s2, [#allocation12], %s3872_s30, %s3872_s30, %s3873_s27  }
  0x35   : > { %s3259_s26 = smov [#allocation16]   ;;  %s3261_s25 = smov [#allocation17]  }
  0x36   : > { %s513_s3 = sshll.u32 %s3900_s10, 4  ;;  %s515_s15 = sshll.u32 %s3259_s26, 4  ;;  %s514_s3 = int_to_ptr.hbm [resolvable:$true] %s513_s3  ;;  %s516_s15 = int_to_ptr.vmem [resolvable:$true] %s515_s15 }
  0x37   : > { %2623 = dma.hbm_to_vmem [thread:$0]  (!%p3391_p5), %s514_s3, 8192, %s516_s15, [#allocation15], %s3260_s17, %s3260_s17, %s3251_s5  }
  0x38   : > { %s530_s18 = sshll.u32 %s3901_s12, 4  ;;  %s532_s14 = sshll.u32 %s3261_s25, 4  ;;  %s531_s18 = int_to_ptr.hbm [resolvable:$true] %s530_s18  ;;  %s533_s14 = int_to_ptr.vmem [resolvable:$true] %s532_s14 }
  0x39   : > { %2626 = dma.hbm_to_vmem [thread:$0]  (!%p3391_p5), %s531_s18, 8192, %s533_s14, [#allocation18], %s3872_s30, %s3872_s30, %s3873_s27  }
  0x3a   : > { %s2514_s2 = sadd.s32 4294967294, %s3243_s24   ;;  %3902 = sst [smem:[#allocation29_spill]] %s3437_s0 }
  0x3b   : > { %s46_s5 = sadd.s32 1, %s3239_s23  ;;  %s43_s19 = ssub.s32 %s3243_s24, %s3437_s0 }
  0x3c   : > { %p53_p6 = scmp.ne.s32.totalorder %s3239_s23, %s3235_s22  ;;  %p44_p7 = scmp.eq.s32.totalorder %s43_s19, 0 }
  0x3d   : > { %p54_p8 = scmp.eq.s32.totalorder %s3243_s24, 0  ;;  %p59_p9 = scmp.ne.s32.totalorder %s3235_s22, %s3231_s21 }
  0x3e   : > { %p403_p10 = scmp.eq.s32.totalorder %s3375_s28, 5  ;;  %p409_p0 = scmp.eq.s32.totalorder %s2514_s2, 5 }
  0x3f   : > { %s3449_s3 = scalar_select %p44_p7, %s3239_s23, %s46_s5  }
  0x40   : > { %p3451_p11 = por %p54_p8, %p53_p6  ;;  %p3457_p12 = por %p60_p1, %p59_p9 }
  0x41   : > { %3903 = sst [smem:[#allocation30_spill]] %s3449_s3  ;;  %p3461_p13 = por %p403_p10, %p53_p6 }
  0x42   : > { %p2646_p2 = scmp.lt.s32.totalorder %s3243_s24, 6  ;;  %s3467_s17 = sand.u32 1, %s3239_s23  }
  0x43   : > { %p3469_p4 = por %p409_p0, %p59_p9  ;;  %s2525_s16 = sshll.u32 %s3467_s17, 4 }
  0x44   : > { %s2563_s18 = sshll.u32 %s3243_s24, 4  ;;  %s3908_s5 = sld [smem:[#allocation31_spill]] }
  0x45   : > { %s559_s27 = scalar_lea.vmem [#allocation2], %s2525_s16  ;;  %p3480_p5 = pnand %p2646_p2, %p3451_p11 }
  0x46   : > { %s567_s4 = sshll.u32 %s559_s27, 4  ;;  %s577_s6 = sand.u32 1, %s3243_s24   ;;  %s568_s4 = int_to_ptr.vmem [resolvable:$true] %s567_s4 }
  0x47   : > { %s583_s12 = scalar_lea.hbm %s3851_s1, %s3243_s24  ;;  %s556_s3 = scalar_lea.sflag [#allocation3], %s3467_s17 }
  0x48   : > { %p3097_p7 = pneg %p3480_p5 }
  0x4a   : > { %s564_s19 = scalar_lea.hbm %s3908_s5, %s2563_s18  ;;  %s3100_s16 = scalar_lea.hbm %s3908_s5, 96 }
  0x4b   : > { %s565_s30 = sshll.u32 %s564_s19, 4  ;;  %s566_s30 = int_to_ptr.hbm [resolvable:$true] %s565_s30 }
  0x4c   : > { %s3093_s25 = sshra.s32 %s566_s30, 4  ;;  %s3094_s25 = int_to_ptr.hbm [resolvable:$true] %s3093_s25 }
  0x4d   : > { %s3095_s18 = scalar_lea.hbm %s3094_s25, 16  ;;  %p3101_p10 = scmp.lt.s32.totalorder %s3094_s25, %s3908_s5 }
  0x4e   : > { %p3096_p6 = scmp.ne.s32.totalorder %s3094_s25, %s3095_s18  ;;  %p3102_p11 = scmp.lt.s32.totalorder %s3100_s16, %s3095_s18 }
  0x50   : > { %p3098_p8 = pnand %p3097_p7, %p3096_p6  ;;  %p3103_p0 = por %p3102_p11, %p3101_p10 }
  0x52   : > { %p3099_p9 = pneg %p3098_p8 }
  0x54   : > { %p3104_p2 = pnand %p3103_p0, %p3099_p9 }
  0x56   : > { %3107 = shalt.err (!%p3104_p2)
}
  0x57   : > { %s3910_s8 = smov 8   ;;  %s3911_s10 = smov 128  }
  0x58   : > { %2630 = dma.hbm_to_vmem [thread:$0]  (!%p3480_p5), %s566_s30, 256, %s568_s4, %s556_s3, %s3911_s10, %s3911_s10, %s3910_s8  }
  0x59   : > { %s585_s23 = sshll.u32 %s583_s12, 4  ;;  %s580_s0 = scalar_lea.vmem [#allocation5], %s3467_s17  ;;  %s586_s23 = int_to_ptr.hbm [resolvable:$true] %s585_s23 }
  0x5a   : > { %s587_s27 = sshll.u32 %s580_s0, 4  ;;  %s578_s20 = scalar_lea.sflag [#allocation6], %s577_s6  ;;  %s588_s27 = int_to_ptr.vmem [resolvable:$true] %s587_s27 }
  0x5b   : > { %s3123_s14 = sshra.s32 %s586_s23, 4  ;;  %s3130_s19 = scalar_lea.hbm %s3851_s1, 6  ;;  %s3124_s14 = int_to_ptr.hbm [resolvable:$true] %s3123_s14 }
  0x5c   : > { %s3125_s25 = scalar_lea.hbm %s3124_s14, 1  ;;  %p3131_p10 = scmp.lt.s32.totalorder %s3124_s14, %s3851_s1 }
  0x5d   : > { %p3126_p6 = scmp.ne.s32.totalorder %s3124_s14, %s3125_s25  ;;  %p3132_p11 = scmp.lt.s32.totalorder %s3130_s19, %s3125_s25 }
  0x5f   : > { %p3128_p8 = pnand %p3126_p6, %p3097_p7  ;;  %p3133_p0 = por %p3132_p11, %p3131_p10 }
  0x61   : > { %p3129_p9 = pneg %p3128_p8 }
  0x63   : > { %p3134_p2 = pnand %p3133_p0, %p3129_p9 }
  0x65   : > { %3137 = shalt.err (!%p3134_p2)
}
  0x66   : > { %2633 = dma.hbm_to_vmem [thread:$0]  (!%p3480_p5), %s586_s23, 16, %s588_s27, %s578_s20  }
  0x67   : > { %596 = sbr.rel (%p3380_p3) target bundleno = 4538 (0x11ba), region = 84  ;;  %s3521_s6 = sand.u32 (!%p3380_p3), 1, %s3235_s22  }
  0x68   : > { %s2529_s12 = sshll.u32 (!%p3380_p3), %s3521_s6, 4  ;;  %s599_s30 = scalar_lea.sflag (!%p3380_p3), [#allocation3], %s3521_s6 }
  0x69   : > { %s602_s0 = scalar_lea.vmem (!%p3380_p3), [#allocation2], %s2529_s12 }
  0x6c   : > { %3198 = dma.done.wait (%p3457_p12), %s599_s30, 256  }
  0x6d   : > { %3200 = vsyncadd (%p3457_p12), %s599_s30, 4294967040  ;;  %s608_s23 = sand.u32 1, %s3375_s28   ;;  %s611_s3 = scalar_lea.vmem [#allocation5], %s3521_s6 }
  0x6e   : > { %s609_s29 = scalar_lea.sflag [#allocation6], %s608_s23 }
  0x6f   : > { %3202 = dma.done.wait (%p3457_p12), %s609_s29, 16  }
  0x70   : > { %3204 = vsyncadd (%p3457_p12), %s609_s29, 4294967280 }
  0x71   : > { %3206 = dma.done.wait (%p60_p1), [#allocation6], 16  }
  0x72   : > { %3208 = vsyncadd (%p60_p1), [#allocation6], 4294967280 }
  0x73   : > { %3210 = dma.done.wait (%p60_p1), [#allocation9], 12304  }
  0x74   : > { %3212 = vsyncadd (%p60_p1), [#allocation9], 4294954992 }
  0x75   : > { %3214 = dma.done.wait (%p60_p1), [#allocation12], 4192  }
  0x76   : > { %3216 = vsyncadd (%p60_p1), [#allocation12], 4294963104 }
  0x77   : > { %3218 = dma.done.wait (%p60_p1), [#allocation15], 8224  }
  0x78   : > { %3220 = vsyncadd (%p60_p1), [#allocation15], 4294959072 }
  0x79   : > { %3222 = dma.done.wait (%p60_p1), [#allocation18], 8192  }
  0x7a   : > { %3224 = vsyncadd (%p60_p1), [#allocation18], 4294959104  ;;  %v705_v0 = vld [vmem:[%s602_s0] sm:$0xff]  ;;  %v706_v1 = vld [vmem:[%s602_s0 + $0x8] sm:$0xff]  ;;  %v3262_v2 = vmov 128.0   ;;  %vm894_vm7 = vcmask 261120  }
  0x7b   : > { %712 = vadd.xlane.f32.xlu0 %v705_v0  ;;  %2753 = vrcp.f32 %v3262_v2  ;;  %v811_v17 = vld [vmem:[#allocation10 + $0x150] sm:$0xff]  ;;  %v814_v18 = vld [vmem:[#allocation10 + $0x168] sm:$0xff]  ;;  %v812_v19 = vld [vmem:[#allocation10 + $0x158] sm:$0xff]  ;;  %s3263_s26 = smov 96   ;;  %vm922_vm8 = vcmask 130048   ;;  %s3264_s17 = smov 32  }
  0x7c   : > { %v839_v20 = vpack.c.bf16 %v814_v18, %v811_v17  ;;  %v815_v21 = vld [vmem:[#allocation10 + $0x170] sm:$0xff]  ;;  %v813_v22 = vld [vmem:[#allocation10 + $0x160] sm:$0xff]  ;;  %v816_v23 = vld [vmem:[#allocation10 + $0x178] sm:$0xff]  ;;  %s3265_s5 = smov 64   ;;  %vm1206_vm9 = vcmask 523264   ;;  %vm1209_vm10 = vcmask 785408  }
  0x7d   : > { %v840_v24 = vpack.c.bf16 %v815_v21, %v812_v19  ;;  %v841_v25 = vpack.c.bf16 %v816_v23, %v813_v22  ;;  %v805_v26 = vld [vmem:[#allocation10 + $0x120] sm:$0xff]  ;;  %v808_v27 = vld [vmem:[#allocation10 + $0x138] sm:$0xff]  ;;  %v806_v28 = vld [vmem:[#allocation10 + $0x128] sm:$0xff]  ;;  %s3912_s16 = sld [smem:[#allocation40_spill]] }
  0x7e   : > { %850 = vmatpush.bf16.msra.mxu0 %v839_v20  ;;  %v836_v29 = vpack.c.bf16 %v808_v27, %v805_v26  ;;  %v809_v30 = vld [vmem:[#allocation10 + $0x140] sm:$0xff]  ;;  %v807_v31 = vld [vmem:[#allocation10 + $0x130] sm:$0xff]  ;;  %v810_v32 = vld [vmem:[#allocation10 + $0x148] sm:$0xff]  ;;  %s3913_s12 = sld [smem:[#allocation41_spill]] }
  0x7f   : > { %864 = vmatpush.bf16.msra.mxu1 %v840_v24  ;;  %878 = vmatpush.bf16.msra.mxu2 %v841_v25  ;;  %v837_v33 = vpack.c.bf16 %v809_v30, %v806_v28  ;;  %v838_v34 = vpack.c.bf16 %v810_v32, %v807_v31  ;;  %v799_v35 = vld [vmem:[#allocation10 + $0xf0] sm:$0xff]  ;;  %v802_v36 = vld [vmem:[#allocation10 + $0x108] sm:$0xff]  ;;  %v800_v37 = vld [vmem:[#allocation10 + $0xf8] sm:$0xff]  ;;  %s3914_s23 = sld [smem:[#allocation42_spill]] }
  0x80   : > { %v833_v38 = vpack.c.bf16 %v802_v36, %v799_v35  ;;  %v803_v39 = vld [vmem:[#allocation10 + $0x110] sm:$0xff]  ;;  %v801_v40 = vld [vmem:[#allocation10 + $0x100] sm:$0xff]  ;;  %v804_v41 = vld [vmem:[#allocation10 + $0x118] sm:$0xff]  ;;  %s3916_s19 = sld [smem:[#allocation43_spill]] }
  0x81   : > { %v2754_v3 = vpop.eup %2753  ;;  %v834_v42 = vpack.c.bf16 %v803_v39, %v800_v37  ;;  %v835_v43 = vpack.c.bf16 %v804_v41, %v801_v40  ;;  %v793_v44 = vld [vmem:[#allocation10 + $0xc0] sm:$0xff]  ;;  %v796_v45 = vld [vmem:[#allocation10 + $0xd8] sm:$0xff]  ;;  %v794_v46 = vld [vmem:[#allocation10 + $0xc8] sm:$0xff] }
  0x82   : > { %v717_v4 = vmul.f32 128.0, %v2754_v3  ;;  %vm721_vm0 = vweird.f32 %v2754_v3  ;;  %851 = vmatpush.bf16.msra.mxu0 %v836_v29  ;;  %v830_v47 = vpack.c.bf16 %v796_v45, %v793_v44  ;;  %v797_v48 = vld [vmem:[#allocation10 + $0xe0] sm:$0xff]  ;;  %v795_v49 = vld [vmem:[#allocation10 + $0xd0] sm:$0xff]  ;;  %v798_v50 = vld [vmem:[#allocation10 + $0xe8] sm:$0xff] }
  0x83   : > { %714 = vadd.xlane.f32.xlu0 %v706_v1  ;;  %865 = vmatpush.bf16.msra.mxu1 %v837_v33  ;;  %v831_v51 = vpack.c.bf16 %v797_v48, %v794_v46  ;;  %v832_v52 = vpack.c.bf16 %v798_v50, %v795_v49  ;;  %v787_v53 = vld [vmem:[#allocation10 + $0x90] sm:$0xff]  ;;  %v790_v54 = vld [vmem:[#allocation10 + $0xa8] sm:$0xff]  ;;  %v788_v55 = vld [vmem:[#allocation10 + $0x98] sm:$0xff] }
  0x84   : > { %v718_v5 = vsub.f32 1.0, %v717_v4  ;;  %879 = vmatpush.bf16.msra.mxu2 %v838_v34  ;;  %v827_v56 = vpack.c.bf16 %v790_v54, %v787_v53  ;;  %v791_v57 = vld [vmem:[#allocation10 + $0xb0] sm:$0xff]  ;;  %v789_v58 = vld [vmem:[#allocation10 + $0xa0] sm:$0xff]  ;;  %v792_v59 = vld [vmem:[#allocation10 + $0xb8] sm:$0xff] }
  0x85   : > { %v828_v60 = vpack.c.bf16 %v791_v57, %v788_v55  ;;  %v829_v61 = vpack.c.bf16 %v792_v59, %v789_v58  ;;  %v781_v62 = vld [vmem:[#allocation10 + $0x60] sm:$0xff]  ;;  %v784_v63 = vld [vmem:[#allocation10 + $0x78] sm:$0xff]  ;;  %v786_v4 = vld [vmem:[#allocation10 + $0x88] sm:$0xff]  ;;  %s3915_s29 = smov %s3914_s23 }
  0x86   : > { %v719_v6 = vmul.f32 %v2754_v3, %v718_v5  ;;  %852 = vmatpush.bf16.msra.mxu0 %v833_v38  ;;  %v785_v2 = vld [vmem:[#allocation10 + $0x80] sm:$0xff]  ;;  %v772_v20 = vld [vmem:[#allocation10 + $0x18] sm:$0xff]  ;;  %v770_v21 = vld [vmem:[#allocation10 + $0x8] sm:$0xff]  ;;  %s2349_s4 = scalar_lea.hbm %s3916_s19, %s3375_s28  ;;  %s3173_s10 = scalar_lea.hbm %s3916_s19, 6 }
  0x87   : > { %866 = vmatpush.bf16.msra.mxu1 %v834_v42  ;;  %v769_v19 = vld [vmem:[#allocation10] sm:$0xff]  ;;  %v771_v25 = vld [vmem:[#allocation10 + $0x10] sm:$0xff]  ;;  %v774_v26 = vld [vmem:[#allocation10 + $0x28] sm:$0xff] }
  0x88   : > { %v720_v7 = vadd.f32 %v2754_v3, %v719_v6  ;;  %880 = vmatpush.bf16.msra.mxu2 %v835_v43  ;;  %v818_v23 = vpack.c.bf16 %v772_v20, %v769_v19  ;;  %v773_v24 = vld [vmem:[#allocation10 + $0x20] sm:$0xff]  ;;  %v820_v29 = vpack.c.bf16 %v774_v26, %v771_v25 }
  0x89   : > { %v819_v28 = vpack.c.bf16 %v773_v24, %v770_v21  ;;  %v842_v58 = vld [vmem:[#allocation11] sm:$0x7] }
  0x8a   : > { %v3555_v8 = vsel %vm721_vm0, %v2754_v3, %v720_v7  ;;  %853 = vmatpush.bf16.msra.mxu0 %v830_v47  ;;  %v783_v3 = vld [vmem:[#allocation10 + $0x70] sm:$0xff]  ;;  %v2739_v47 = vld [vmem:[#allocation7] ss:$0 sm:$0xff]  ;;  %v844_v59 = vperm.slane %v842_v58, 0 }
  0x8b   : > { %867 = vmatpush.bf16.msra.mxu1 %v831_v51  ;;  %v826_v6 = vpack.c.bf16 %v786_v4, %v783_v3  ;;  %v775_v7 = vld [vmem:[#allocation10 + $0x30] sm:$0xff] }
  0x8c   : > { %881 = vmatpush.bf16.msra.mxu2 %v832_v52  ;;  %v2740_v52 = vld [vmem:[#allocation8] ss:$0 sm:$0xff] }
  0x8e   : > { %854 = vmatpush.bf16.msra.mxu0 %v827_v56 }
  0x8f   : > { %868 = vmatpush.bf16.msra.mxu1 %v828_v60  ;;  %v845_v60 = vperm.slane %v842_v58, 1 }
  0x90   : > { %882 = vmatpush.bf16.msra.mxu2 %v829_v61 }
  0x94   : > { %883 = vmatpush.bf16.msra.mxu2 %v826_v6 }
  0xee   : > { %v713_v9 = vpop.xlane.xlu0 %712 }
  0xef   : > { %v723_v10 = vmul.f32 %v3555_v8, %v713_v9  ;;  %v778_v9 = vld [vmem:[#allocation10 + $0x48] sm:$0xff] }
  0xf1   : > { %v3558_v11 = vsub.f32 %v705_v0, %v723_v10  ;;  %v782_v0 = vld [vmem:[#allocation10 + $0x68] sm:$0xff]  ;;  %v776_v10 = vld [vmem:[#allocation10 + $0x38] sm:$0xff] }
  0xf2   : > { %v825_v5 = vpack.c.bf16 %v785_v2, %v782_v0 }
  0xf3   : > { %v727_v12 = vmul.f32 %v3558_v11, %v3558_v11 }
  0xf4   : > { %869 = vmatpush.bf16.msra.mxu1 %v825_v5  ;;  %v846_v5 = vperm.slane %v842_v58, 2 }
  0xf5   : > { %729 = vadd.xlane.f32.xlu1 %v727_v12  ;;  %v821_v12 = vpack.c.bf16 %v778_v9, %v775_v7 }
  0xf6   : > { %v715_v13 = vpop.xlane.xlu0 %714 }
  0xf7   : > { %v724_v14 = vmul.f32 %v3555_v8, %v715_v13  ;;  %v779_v13 = vld [vmem:[#allocation10 + $0x50] sm:$0xff] }
  0xf8   : > { %v822_v17 = vpack.c.bf16 %v779_v13, %v776_v10  ;;  %v707_v13 = vld [vmem:[%s611_s3] sm:$0x1] }
  0xf9   : > { %v3563_v15 = vsub.f32 %v706_v1, %v724_v14  ;;  %v824_v1 = vpack.c.bf16 %v784_v63, %v781_v62  ;;  %v777_v14 = vld [vmem:[#allocation10 + $0x40] sm:$0xff] }
  0xfa   : > { %870 = vmatpush.bf16.msra.mxu1 %v822_v17 }
  0xfb   : > { %v728_v16 = vmul.f32 %v3563_v15, %v3563_v15  ;;  %855 = vmatpush.bf16.msra.mxu0 %v824_v1 }
  0xfd   : > { %731 = vadd.xlane.f32.xlu1 %v728_v16  ;;  %v780_v16 = vld [vmem:[#allocation10 + $0x58] sm:$0xff] }
  0xfe   : > { %v823_v18 = vpack.c.bf16 %v780_v16, %v777_v14  ;;  %871 = vmatpush.bf16.msra.mxu1 %v819_v28  ;;  %v2538_v14 = vadd.f32 -1.0, %v707_v13 }
  0xff   : > { %856 = vmatpush.bf16.msra.mxu0 %v821_v12 }
 0x100   : > { %884 = vmatpush.bf16.msra.mxu2 %v823_v18  ;;  %v709_v16 = vmul.f32 1e+09, %v2538_v14 }
 0x102   : > { %v3585_v17 = vperm.slane %v709_v16, 0 }
 0x103   : > { %857 = vmatpush.bf16.msra.mxu0 %v818_v23 }
 0x104   : > { %885 = vmatpush.bf16.msra.mxu2 %v820_v29 }
 0x168   : > { %v730_v22 = vpop.xlane.xlu1 %729 }
 0x169   : > { %v733_v27 = vmul.f32 %v730_v22, %v3555_v8 }
 0x16b   : > { %v735_v30 = vadd.f32 1e-12, %v733_v27 }
 0x16d   : > { %2755 = vrsqrt.f32 %v735_v30  ;;  %vm743_vm2 = vweird.f32 %v735_v30 }
 0x170   : > { %v732_v31 = vpop.xlane.xlu1 %731 }
 0x171   : > { %v734_v32 = vmul.f32 %v732_v31, %v3555_v8 }
 0x173   : > { %v2756_v33 = vpop.eup %2755  ;;  %v736_v34 = vadd.f32 1e-12, %v734_v32 }
 0x174   : > { %v738_v35 = vmul.f32 %v2756_v33, %v735_v30  ;;  %vm744_vm1 = vweird.f32 %v2756_v33 }
 0x175   : > { %2757 = vrsqrt.f32 %v736_v34  ;;  %vm745_vm3 = vmor %vm743_vm2, %vm744_vm1  ;;  %vm753_vm5 = vweird.f32 %v736_v34 }
 0x176   : > { %v739_v36 = vmul.f32 %v2756_v33, %v738_v35 }
 0x178   : > { %v740_v37 = vmul.f32 0.5, %v739_v36 }
 0x17a   : > { %v741_v38 = vsub.f32 1.5, %v740_v37 }
 0x17b   : > { %v2758_v39 = vpop.eup %2757 }
 0x17c   : > { %v742_v40 = vmul.f32 %v2756_v33, %v741_v38  ;;  %v748_v41 = vmul.f32 %v2758_v39, %v736_v34  ;;  %vm754_vm4 = vweird.f32 %v2758_v39 }
 0x17d   : > { %vm755_vm6 = vmor %vm753_vm5, %vm754_vm4 }
 0x17e   : > { %v749_v42 = vmul.f32 %v2758_v39, %v748_v41  ;;  %v746_v43 = vsel %vm745_vm3, %v2756_v33, %v742_v40 }
 0x17f   : > { %v757_v46 = vmul.f32 %v746_v43, %v3558_v11 }
 0x180   : > { %v750_v44 = vmul.f32 0.5, %v749_v42 }
 0x181   : > { %v762_v51 = vmul.f32 %v2739_v47, %v757_v46 }
 0x182   : > { %v751_v45 = vsub.f32 1.5, %v750_v44 }
 0x183   : > { %v3571_v54 = vadd.f32 %v2740_v52, %v762_v51 }
 0x184   : > { %v752_v48 = vmul.f32 %v2758_v39, %v751_v45 }
 0x186   : > { %v756_v49 = vsel %vm755_vm6, %v2758_v39, %v752_v48 }
 0x187   : > { %v758_v50 = vmul.f32 %v756_v49, %v3563_v15 }
 0x189   : > { %v763_v53 = vmul.f32 %v2739_v47, %v758_v50 }
 0x18b   : > { %v3573_v55 = vadd.f32 %v2740_v52, %v763_v53 }
 0x18d   : > { %v817_v56 = vpack.c.bf16 %v3573_v55, %v3571_v54 }
 0x18f   : > { %858 = vmatmul.bf16.vlgmr.msra.gmra.mxu0 %v817_v56  ;;  %872 = vmatmul.bf16.vlgmr.msra.gmra.mxu1 %v817_v56 }
 0x190   : > { %886 = vmatmul.bf16.vlgmr.msra.gmra.mxu2 %v817_v56 }
 0x20c   : > { %v859_v11 = vpop.f32.mrf.mxu0  ;;  %v873_v57 = vpop.f32.mrf.mxu1 }
 0x20d   : > { %v860_v63 = vadd.f32 %v859_v11, %v844_v59  ;;  %v874_v0 = vadd.f32 %v873_v57, %v845_v60 }
 0x213   : > { %v887_v61 = vpop.f32.mrf.mxu2 }
 0x214   : > { %v861_v15 = vpop.f32.mrf.mxu0  ;;  %v875_v62 = vpop.f32.mrf.mxu1  ;;  %v888_v9 = vadd.f32 %v887_v61, %v846_v5 }
 0x215   : > { %v862_v1 = vadd.f32 %v861_v15, %v844_v59  ;;  %v876_v2 = vadd.f32 %v875_v62, %v845_v60 }
 0x217   : > { %v892_v3 = vpack.c.bf16 %v862_v1, %v860_v63  ;;  %v893_v4 = vpack.c.bf16 %v876_v2, %v874_v0 }
 0x219   : > { %965 = vrot.lane.b32.xlu0 %v892_v3, %s3263_s26  ;;  %v899_v6 = vsel %vm894_vm7, %v893_v4, 0 }
 0x21a   : > { %908 = vmatpush.bf16.xpose.msra.mxu3 %v899_v6 }
 0x21b   : > { %v889_v7 = vpop.f32.mrf.mxu2 }
 0x21c   : > { %v890_v10 = vadd.f32 %v889_v7, %v846_v5 }
 0x21e   : > { %v3579_v12 = vpack.c.bf16 %v890_v10, %v888_v9 }
 0x221   : > { %2539 = vmatmul.msk.bf16.vlgmr.msra.gmra.mxu3 %vm894_vm7, %v892_v3 }
 0x222   : > { %957 = vmatpush.bf16.msrb.mxu3 %v3579_v12 }
 0x28b   : > { %v966_v38 = vpop.permute.xlu0 %965 }
 0x2a4   : > { %v910_v18 = vpop.f32.mrf.mxu3 }
 0x2a5   : > { %v915_v19 = vmul.f32 0.17677669, %v910_v18 }
 0x2a7   : > { %v920_v20 = vadd.f32 %v3585_v17, %v915_v19 }
 0x2a9   : > { %v923_v21 = vsel %vm922_vm8, %v920_v20, -inf }
 0x2aa   : > { %924 = vmax.xlane.f32.xlu2 %v923_v21 }
 0x2ac   : > { %v912_v22 = vpop.f32.mrf.mxu3 }
 0x2ad   : > { %v916_v23 = vmul.f32 0.17677669, %v912_v22 }
 0x2af   : > { %v921_v24 = vadd.f32 %v3585_v17, %v916_v23 }
 0x2b1   : > { %v926_v25 = vsel %vm922_vm8, %v921_v24, -inf }
 0x2b2   : > { %927 = vmax.xlane.f32.xlu2 %v926_v25 }
 0x2ca   : > { %968 = vrot.lane.b32.xlu2 %v893_v4, %s3263_s26 }
 0x2d2   : > { %1111 = vrot.lane.b32.xlu2 %v893_v4, %s3264_s17 }
 0x2da   : > { %1109 = vrot.lane.b32.xlu2 %v892_v3, %s3264_s17 }
 0x31d   : > { %v925_v26 = vpop.xlane.xlu2 %924 }
 0x31e   : > { %v929_v27 = vsub.f32 %v920_v20, %v925_v26 }
 0x320   : > { %v931_v28 = vmul.f32 1.442695, %v929_v27 }
 0x322   : > { %2759 = vpow2.f32 %v931_v28 }
 0x325   : > { %v928_v29 = vpop.xlane.xlu2 %927 }
 0x326   : > { %v930_v30 = vsub.f32 %v921_v24, %v928_v29 }
 0x328   : > { %v2760_v31 = vpop.eup %2759  ;;  %v933_v32 = vmul.f32 1.442695, %v930_v30 }
 0x329   : > { %v935_v33 = vsel %vm922_vm8, %v2760_v31, 0.0 }
 0x32a   : > { %2761 = vpow2.f32 %v933_v32  ;;  %936 = vadd.xlane.f32.xlu0 %v935_v33 }
 0x32d   : > { %v969_v34 = vpop.permute.xlu2 %968 }
 0x32e   : > { %v974_v35 = vsel %vm894_vm7, %v969_v34, 0 }
 0x32f   : > { %983 = vmatpush.bf16.xpose.msra.mxu3 %v974_v35 }
 0x330   : > { %v2762_v36 = vpop.eup %2761 }
 0x331   : > { %v938_v37 = vsel %vm922_vm8, %v2762_v36, 0.0 }
 0x332   : > { %939 = vadd.xlane.f32.xlu1 %v938_v37 }
 0x335   : > { %v1112_v45 = vpop.permute.xlu2 %1111 }
 0x336   : > { %v1117_v47 = vsel %vm894_vm7, %v1112_v45, 0 }
 0x33d   : > { %v1110_v51 = vpop.permute.xlu2 %1109 }
 0x33e   : > { %1038 = vrot.lane.b32.xlu0 %v892_v3, %s3265_s5 }
 0x34b   : > { %1040 = vrot.lane.b32.xlu1 %v893_v4, %s3265_s5 }
 0x39d   : > { %v937_v39 = vpop.xlane.xlu0 %936 }
 0x39e   : > { %2763 = vrcp.f32 %v937_v39 }
 0x3a4   : > { %v2764_v41 = vpop.eup %2763 }
 0x3a5   : > { %v940_v40 = vpop.xlane.xlu1 %939  ;;  %v943_v43 = vmul.f32 %v2764_v41, %v2760_v31 }
 0x3a6   : > { %2765 = vrcp.f32 %v940_v40 }
 0x3ac   : > { %v2766_v42 = vpop.eup %2765 }
 0x3ad   : > { %v944_v44 = vmul.f32 %v2766_v42, %v2762_v36 }
 0x3af   : > { %v945_v46 = vpack.c.bf16 %v944_v44, %v943_v43 }
 0x3b0   : > { %v1039_v50 = vpop.permute.xlu0 %1038 }
 0x3b1   : > { %2540 = vmatmul.msk.bf16.vlgmr.msrb.gmra.mxu3 %vm922_vm8, %v945_v46 }
 0x3b2   : > { %1126 = vmatpush.bf16.xpose.msrb.mxu3 %v1117_v47 }
 0x3bd   : > { %v1041_v48 = vpop.permute.xlu1 %1040 }
 0x3be   : > { %v1046_v49 = vsel %vm894_vm7, %v1041_v48, 0 }
 0x3bf   : > { %1055 = vmatpush.bf16.xpose.msrb.mxu2 %v1046_v49 }
 0x3c1   : > { %2541 = vmatmul.msk.bf16.vlgmr.msra.gmra.mxu3 %vm894_vm7, %v966_v38 }
 0x3c6   : > { %2543 = vmatmul.msk.bf16.vlgmr.msrb.gmra.mxu2 %vm894_vm7, %v1039_v50 }
 0x3d1   : > { %2545 = vmatmul.msk.bf16.vlgmr.msrb.gmra.mxu3 %vm894_vm7, %v1110_v51 }
 0x434   : > { %v3605_v52 = vpop.f32.mrf.mxu3 }
 0x43c   : > { %v3607_v53 = vpop.f32.mrf.mxu3 }
 0x444   : > { %v985_v56 = vpop.f32.mrf.mxu3 }
 0x445   : > { %v990_v11 = vmul.f32 0.17677669, %v985_v56 }
 0x447   : > { %v992_v57 = vadd.f32 %v990_v11, %v3585_v17 }
 0x449   : > { %v1057_v58 = vpop.f32.mrf.mxu2  ;;  %v994_v59 = vsel %vm922_vm8, %v992_v57, -inf }
 0x44a   : > { %v1062_v60 = vmul.f32 0.17677669, %v1057_v58  ;;  %995 = vmax.xlane.f32.xlu1 %v994_v59 }
 0x44c   : > { %v987_v61 = vpop.f32.mrf.mxu3  ;;  %v1064_v15 = vadd.f32 %v1062_v60, %v3585_v17 }
 0x44d   : > { %v991_v62 = vmul.f32 0.17677669, %v987_v61 }
 0x44e   : > { %v1066_v63 = vsel %vm922_vm8, %v1064_v15, -inf }
 0x44f   : > { %1067 = vmax.xlane.f32.xlu2 %v1066_v63  ;;  %v993_v0 = vadd.f32 %v991_v62, %v3585_v17 }
 0x451   : > { %v1059_v1 = vpop.f32.mrf.mxu2  ;;  %v997_v2 = vsel %vm922_vm8, %v993_v0, -inf }
 0x452   : > { %v1063_v3 = vmul.f32 0.17677669, %v1059_v1  ;;  %998 = vmax.xlane.f32.xlu0 %v997_v2 }
 0x454   : > { %v1128_v4 = vpop.f32.mrf.mxu3  ;;  %v1065_v5 = vadd.f32 %v1063_v3, %v3585_v17 }
 0x455   : > { %v1133_v6 = vmul.f32 0.17677669, %v1128_v4 }
 0x456   : > { %v1069_v7 = vsel %vm922_vm8, %v1065_v5, -inf }
 0x457   : > { %1070 = vmax.xlane.f32.xlu1 %v1069_v7  ;;  %v1135_v9 = vadd.f32 %v1133_v6, %v3585_v17 }
 0x459   : > { %v1137_v10 = vsel %vm922_vm8, %v1135_v9, -inf }
 0x45a   : > { %1138 = vmax.xlane.f32.xlu0 %v1137_v10 }
 0x45c   : > { %v1130_v13 = vpop.f32.mrf.mxu3 }
 0x45d   : > { %v1134_v14 = vmul.f32 0.17677669, %v1130_v13 }
 0x45f   : > { %v1136_v16 = vadd.f32 %v1134_v14, %v3585_v17  ;;  %v1226_v14 = vld [vmem:[#allocation13 + $0x70] sm:$0xff] }
 0x461   : > { %v1140_v18 = vsel %vm922_vm8, %v1136_v16, -inf }
 0x462   : > { %1141 = vmax.xlane.f32.xlu2 %v1140_v18  ;;  %v1224_v18 = vld [vmem:[#allocation13 + $0x60] sm:$0xff] }
 0x47a   : > { %1018 = vrot.lane.b32.xlu2 %v3579_v12, %s3263_s26 }
 0x4bd   : > { %v996_v19 = vpop.xlane.xlu1 %995 }
 0x4be   : > { %v1000_v22 = vsub.f32 %v992_v57, %v996_v19 }
 0x4c0   : > { %v1002_v25 = vmul.f32 1.442695, %v1000_v22  ;;  %v1222_v22 = vld [vmem:[#allocation13 + $0x50] sm:$0xff] }
 0x4c2   : > { %v1068_v20 = vpop.xlane.xlu2 %1067 }
 0x4c3   : > { %v1072_v21 = vsub.f32 %v1064_v15, %v1068_v20  ;;  %v1225_v20 = vld [vmem:[#allocation13 + $0x68] sm:$0xff] }
 0x4c5   : > { %v1074_v23 = vmul.f32 1.442695, %v1072_v21  ;;  %v999_v24 = vpop.xlane.xlu0 %998  ;;  %v1235_v21 = vpack.c.bf16 %v1225_v20, %v1224_v18  ;;  %v1339_v18 = vld [vmem:[#allocation16 + $0xf0] sm:$0xff] }
 0x4c6   : > { %v1001_v28 = vsub.f32 %v993_v0, %v999_v24 }
 0x4c7   : > { %2767 = vpow2.f32 %v1074_v23  ;;  %v1223_v23 = vld [vmem:[#allocation13 + $0x58] sm:$0xff] }
 0x4c8   : > { %2769 = vpow2.f32 %v1002_v25  ;;  %v1004_v34 = vmul.f32 1.442695, %v1001_v28  ;;  %v1234_v25 = vpack.c.bf16 %v1223_v23, %v1222_v22  ;;  %v1333_v23 = vld [vmem:[#allocation16 + $0xc0] sm:$0xff] }
 0x4ca   : > { %v1071_v26 = vpop.xlane.xlu1 %1070 }
 0x4cb   : > { %v1073_v27 = vsub.f32 %v1065_v5, %v1071_v26 }
 0x4cd   : > { %v2768_v29 = vpop.eup %2767  ;;  %v1076_v30 = vmul.f32 1.442695, %v1073_v27  ;;  %v1139_v31 = vpop.xlane.xlu0 %1138 }
 0x4ce   : > { %v1143_v32 = vsub.f32 %v1135_v9, %v1139_v31  ;;  %v1078_v33 = vsel %vm922_vm8, %v2768_v29, 0.0  ;;  %v2770_v36 = vpop.eup %2769 }
 0x4cf   : > { %2771 = vpow2.f32 %v1076_v30  ;;  %1079 = vadd.xlane.f32.xlu1 %v1078_v33  ;;  %v1006_v41 = vsel %vm922_vm8, %v2770_v36, 0.0  ;;  %v1220_v33 = vld [vmem:[#allocation13 + $0x40] sm:$0xff] }
 0x4d0   : > { %v1145_v35 = vmul.f32 1.442695, %v1143_v32  ;;  %2773 = vpow2.f32 %v1004_v34  ;;  %v1221_v34 = vld [vmem:[#allocation13 + $0x48] sm:$0xff] }
 0x4d2   : > { %2775 = vpow2.f32 %v1145_v35  ;;  %v1218_v35 = vld [vmem:[#allocation13 + $0x30] sm:$0xff] }
 0x4d5   : > { %v2772_v37 = vpop.eup %2771  ;;  %v1142_v38 = vpop.xlane.xlu2 %1141 }
 0x4d6   : > { %v1144_v39 = vsub.f32 %v1136_v16, %v1142_v38  ;;  %v1081_v40 = vsel %vm922_vm8, %v2772_v37, 0.0  ;;  %v2774_v43 = vpop.eup %2773  ;;  %v1227_v16 = vld [vmem:[#allocation13 + $0x78] sm:$0xff] }
 0x4d7   : > { %1082 = vadd.xlane.f32.xlu0 %v1081_v40  ;;  %1007 = vadd.xlane.f32.xlu1 %v1006_v41  ;;  %v1009_v46 = vsel %vm922_vm8, %v2774_v43, 0.0  ;;  %v1236_v19 = vpack.c.bf16 %v1227_v16, %v1226_v14  ;;  %v1217_v40 = vld [vmem:[#allocation13 + $0x28] sm:$0xff] }
 0x4d8   : > { %v1147_v42 = vmul.f32 1.442695, %v1144_v39  ;;  %v2776_v44 = vpop.eup %2775  ;;  %v1216_v39 = vld [vmem:[#allocation13 + $0x20] sm:$0xff] }
 0x4d9   : > { %v1149_v47 = vsel %vm922_vm8, %v2776_v44, 0.0  ;;  %1241 = vmatpush.bf16.msrb.mxu1 %v1236_v19  ;;  %v1231_v41 = vpack.c.bf16 %v1217_v40, %v1216_v39  ;;  %v1338_v19 = vld [vmem:[#allocation16 + $0xe8] sm:$0xff]  ;;  %v1328_v39 = vld [vmem:[#allocation16 + $0x98] sm:$0xff] }
 0x4da   : > { %2777 = vpow2.f32 %v1147_v42  ;;  %v1214_v42 = vld [vmem:[#allocation13 + $0x10] sm:$0xff] }
 0x4dd   : > { %v1019_v45 = vpop.permute.xlu2 %1018  ;;  %1242 = vmatpush.bf16.msrb.mxu1 %v1235_v21  ;;  %v1340_v21 = vld [vmem:[#allocation16 + $0xf8] sm:$0xff] }
 0x4de   : > { %1031 = vmatpush.bf16.msrb.mxu0 %v1019_v45  ;;  %v1212_v45 = vld [vmem:[#allocation13] sm:$0xff]  ;;  %v1357_v22 = vpack.c.bf16 %v1340_v21, %v1338_v19 }
 0x4df   : > { %1010 = vadd.xlane.f32.xlu0 %v1009_v46  ;;  %1150 = vadd.xlane.f32.xlu1 %v1149_v47  ;;  %v1213_v46 = vld [vmem:[#allocation13 + $0x8] sm:$0xff] }
 0x4e0   : > { %v2778_v48 = vpop.eup %2777  ;;  %v1229_v47 = vpack.c.bf16 %v1213_v46, %v1212_v45  ;;  %1378 = vmatpush.bf16.msra.mxu3 %v1357_v22  ;;  %v1324_v45 = vld [vmem:[#allocation16 + $0x78] sm:$0xff] }
 0x4e1   : > { %v1152_v49 = vsel %vm922_vm8, %v2778_v48, 0.0  ;;  %1243 = vmatpush.bf16.msrb.mxu1 %v1234_v25  ;;  %v1334_v25 = vld [vmem:[#allocation16 + $0xc8] sm:$0xff] }
 0x4e7   : > { %1153 = vadd.xlane.f32.xlu0 %v1152_v49 }
 0x4f8   : > { %1089 = vrot.lane.b32.xlu1 %v3579_v12, %s3265_s5 }
 0x4fb   : > { %1160 = vrot.lane.b32.xlu0 %v3579_v12, %s3264_s17 }
 0x542   : > { %v1080_v50 = vpop.xlane.xlu1 %1079 }
 0x54a   : > { %v1083_v51 = vpop.xlane.xlu0 %1082  ;;  %v1008_v56 = vpop.xlane.xlu1 %1007 }
 0x54b   : > { %2779 = vrcp.f32 %v1008_v56 }
 0x551   : > { %v2780_v57 = vpop.eup %2779 }
 0x552   : > { %v1011_v11 = vpop.xlane.xlu0 %1010  ;;  %v1014_v59 = vmul.f32 %v2780_v57, %v2770_v36  ;;  %v1151_v62 = vpop.xlane.xlu1 %1150  ;;  %v1233_v36 = vpack.c.bf16 %v1221_v34, %v1220_v33  ;;  %v1332_v33 = vld [vmem:[#allocation16 + $0xb8] sm:$0xff] }
 0x553   : > { %2781 = vrcp.f32 %v1011_v11 }
 0x554   : > { %2783 = vrcp.f32 %v1083_v51  ;;  %1244 = vmatpush.bf16.msrb.mxu1 %v1233_v36  ;;  %v1327_v36 = vld [vmem:[#allocation16 + $0x90] sm:$0xff] }
 0x555   : > { %2785 = vrcp.f32 %v1080_v50 }
 0x559   : > { %v2782_v58 = vpop.eup %2781 }
 0x55a   : > { %v1015_v60 = vmul.f32 %v2782_v58, %v2774_v43  ;;  %v1154_v15 = vpop.xlane.xlu0 %1153  ;;  %v2784_v12 = vpop.eup %2783  ;;  %v1215_v43 = vld [vmem:[#allocation13 + $0x18] sm:$0xff] }
 0x55b   : > { %2787 = vrcp.f32 %v1154_v15  ;;  %v2786_v63 = vpop.eup %2785  ;;  %v1087_v1 = vmul.f32 %v2784_v12, %v2772_v37  ;;  %v1219_v37 = vld [vmem:[#allocation13 + $0x38] sm:$0xff] }
 0x55c   : > { %v1016_v61 = vpack.c.bf16 %v1015_v60, %v1014_v59  ;;  %2789 = vrcp.f32 %v1151_v62  ;;  %v1086_v3 = vmul.f32 %v2786_v63, %v2768_v29  ;;  %v1232_v38 = vpack.c.bf16 %v1219_v37, %v1218_v35  ;;  %v1325_v35 = vld [vmem:[#allocation16 + $0x80] sm:$0xff]  ;;  %v1326_v37 = vld [vmem:[#allocation16 + $0x88] sm:$0xff] }
 0x55d   : > { %v1351_v40 = vpack.c.bf16 %v1328_v39, %v1326_v37  ;;  %v1441_v39 = vld [vmem:[#allocation17 + $0x68] sm:$0xff] }
 0x55e   : > { %2542 = vmatmul.msk.bf16.vlgmr.msrb.gmra.mxu0 %vm922_vm8, %v1016_v61  ;;  %v1088_v6 = vpack.c.bf16 %v1087_v1, %v1086_v3  ;;  %1245 = vmatpush.bf16.msrb.mxu1 %v1232_v38  ;;  %v1350_v38 = vpack.c.bf16 %v1327_v36, %v1325_v35  ;;  %v1458_v35 = vld [vmem:[#allocation17 + $0xf0] sm:$0xff] }
 0x561   : > { %v2788_v0 = vpop.eup %2787 }
 0x562   : > { %v2790_v2 = vpop.eup %2789  ;;  %v1158_v5 = vmul.f32 %v2788_v0, %v2778_v48  ;;  %1246 = vmatpush.bf16.msrb.mxu1 %v1231_v41  ;;  %v1321_v41 = vld [vmem:[#allocation16 + $0x60] sm:$0xff] }
 0x563   : > { %v1157_v7 = vmul.f32 %v2790_v2, %v2776_v44  ;;  %v1230_v44 = vpack.c.bf16 %v1215_v43, %v1214_v42  ;;  %v1323_v42 = vld [vmem:[#allocation16 + $0x70] sm:$0xff]  ;;  %v1322_v43 = vld [vmem:[#allocation16 + $0x68] sm:$0xff] }
 0x564   : > { %v1349_v46 = vpack.c.bf16 %v1324_v45, %v1322_v43  ;;  %v1439_v45 = vld [vmem:[#allocation17 + $0x58] sm:$0xff] }
 0x565   : > { %v1159_v10 = vpack.c.bf16 %v1158_v5, %v1157_v7 }
 0x566   : > { %1247 = vmatpush.bf16.msrb.mxu1 %v1230_v44  ;;  %v1348_v44 = vpack.c.bf16 %v1323_v42, %v1321_v41  ;;  %v1457_v42 = vld [vmem:[#allocation17 + $0xe8] sm:$0xff] }
 0x56a   : > { %v1090_v4 = vpop.permute.xlu1 %1089  ;;  %1248 = vmatpush.bf16.msrb.mxu1 %v1229_v47  ;;  %v1317_v47 = vld [vmem:[#allocation16 + $0x40] sm:$0xff] }
 0x56b   : > { %1102 = vmatpush.bf16.msra.mxu2 %v1090_v4 }
 0x56d   : > { %v1161_v9 = vpop.permute.xlu0 %1160 }
 0x56e   : > { %2544 = vmatmul.msk.bf16.vlgmr.msra.gmra.mxu2 %vm922_vm8, %v1088_v6  ;;  %1173 = vmatpush.bf16.msra.mxu0 %v1161_v9 }
 0x571   : > { %2546 = vmatmul.msk.bf16.vlgmr.msra.gmra.mxu0 %vm922_vm8, %v1159_v10 }
 0x5db   : > { %v1033_v13 = vpop.f32.mrf.mxu0 }
 0x5e3   : > { %v1035_v26 = vpop.f32.mrf.mxu0 }
 0x5e4   : > { %v2714_v30 = vpack.i.bf16 %v1035_v26, %v1033_v13 }
 0x5ee   : > { %v1175_v29 = vpop.f32.mrf.mxu0 }
 0x5f1   : > { %v1104_v24 = vpop.f32.mrf.mxu2 }
 0x5f6   : > { %v1177_v31 = vpop.f32.mrf.mxu0 }
 0x5f7   : > { %v2719_v32 = vpack.i.bf16 %v1177_v31, %v1175_v29  ;;  %v1329_v29 = vld [vmem:[#allocation16 + $0xa0] sm:$0xff]  ;;  %v1330_v31 = vld [vmem:[#allocation16 + $0xa8] sm:$0xff] }
 0x5f8   : > { %v1353_v34 = vpack.c.bf16 %v1332_v33, %v1330_v31  ;;  %v1442_v33 = vld [vmem:[#allocation17 + $0x70] sm:$0xff] }
 0x5f9   : > { %v1106_v27 = vpop.f32.mrf.mxu2 }
 0x5fa   : > { %v2709_v28 = vpack.i.bf16 %v1106_v27, %v1104_v24  ;;  %v1335_v24 = vld [vmem:[#allocation16 + $0xd0] sm:$0xff]  ;;  %v1336_v27 = vld [vmem:[#allocation16 + $0xd8] sm:$0xff] }
 0x5fb   : > { %v1354_v26 = vpack.c.bf16 %v1335_v24, %v1333_v23  ;;  %v2742_v24 = vld [vmem:[#allocation14] ss:$0 sm:$0xff] }
 0x5fc   : > { %2710 = vrot.lane.b32.xlu2 %v2709_v28, %s3265_s5  ;;  %v1355_v28 = vpack.c.bf16 %v1336_v27, %v1334_v25 }
 0x5fe   : > { %1379 = vmatpush.bf16.msra.mxu3 %v1355_v28 }
 0x602   : > { %1380 = vmatpush.bf16.msra.mxu3 %v1353_v34  ;;  %v1443_v34 = vld [vmem:[#allocation17 + $0x78] sm:$0xff] }
 0x603   : > { %v1469_v36 = vpack.c.bf16 %v1443_v34, %v1442_v33 }
 0x604   : > { %2715 = vrot.lane.b32.xlu2 %v2714_v30, %s3264_s17  ;;  %v1331_v30 = vld [vmem:[#allocation16 + $0xb0] sm:$0xff] }
 0x605   : > { %1482 = vmatpush.bf16.msrb.mxu0 %v1469_v36 }
 0x606   : > { %1381 = vmatpush.bf16.msra.mxu3 %v1351_v40  ;;  %v1456_v40 = vld [vmem:[#allocation17 + $0xe0] sm:$0xff] }
 0x607   : > { %v1476_v43 = vpack.c.bf16 %v1457_v42, %v1456_v40 }
 0x60a   : > { %1382 = vmatpush.bf16.msra.mxu3 %v1349_v46  ;;  %v1454_v46 = vld [vmem:[#allocation17 + $0xd0] sm:$0xff] }
 0x60c   : > { %2720 = vrot.lane.b32.xlu2 %v2719_v32, %s3263_s26  ;;  %v1352_v32 = vpack.c.bf16 %v1331_v30, %v1329_v29  ;;  %v2743_v29 = vld [vmem:[%s3859_s9] ss:$0 sm:$0xff] }
 0x656   : > { %v2711_v48 = vpop.permute.xlu2 %2710 }
 0x657   : > { %v2713_v57 = vunpack.i.h.bf16 %v2711_v48  ;;  %v2712_v58 = vunpack.i.l.bf16 %v2711_v48  ;;  %v1319_v48 = vld [vmem:[#allocation16 + $0x50] sm:$0xff] }
 0x65e   : > { %v2716_v49 = vpop.permute.xlu2 %2715 }
 0x65f   : > { %v2718_v50 = vunpack.i.h.bf16 %v2716_v49  ;;  %v2717_v51 = vunpack.i.l.bf16 %v2716_v49  ;;  %v1318_v49 = vld [vmem:[#allocation16 + $0x48] sm:$0xff] }
 0x661   : > { %v1205_v56 = vsel %vm894_vm7, %v3607_v53, %v2718_v50  ;;  %v1204_v11 = vsel %vm894_vm7, %v3605_v52, %v2717_v51  ;;  %v2741_v52 = vld [vmem:[%s3857_s7] ss:$0 sm:$0xff]  ;;  %v1346_v50 = vpack.c.bf16 %v1319_v48, %v1317_v47  ;;  %v1320_v51 = vld [vmem:[#allocation16 + $0x58] sm:$0xff] }
 0x662   : > { %v1207_v15 = vsel %vm1206_vm9, %v1204_v11, %v2712_v58  ;;  %v1208_v62 = vsel %vm1206_vm9, %v1205_v56, %v2713_v57  ;;  %v1347_v56 = vpack.c.bf16 %v1320_v51, %v1318_v49  ;;  %v1313_v11 = vld [vmem:[#allocation16 + $0x20] sm:$0xff]  ;;  %v1315_v57 = vld [vmem:[#allocation16 + $0x30] sm:$0xff]  ;;  %v1314_v58 = vld [vmem:[#allocation16 + $0x28] sm:$0xff] }
 0x663   : > { %v1455_v48 = vld [vmem:[#allocation17 + $0xd8] sm:$0xff]  ;;  %v1437_v51 = vld [vmem:[#allocation17 + $0x48] sm:$0xff] }
 0x664   : > { %1383 = vmatpush.bf16.msra.mxu3 %v1347_v56  ;;  %v1475_v49 = vpack.c.bf16 %v1455_v48, %v1454_v46  ;;  %v1452_v56 = vld [vmem:[#allocation17 + $0xc0] sm:$0xff] }
 0x666   : > { %v2721_v59 = vpop.permute.xlu2 %2720 }
 0x667   : > { %v2723_v60 = vunpack.i.h.bf16 %v2721_v59  ;;  %v2722_v61 = vunpack.i.l.bf16 %v2721_v59  ;;  %v1344_v59 = vpack.c.bf16 %v1315_v57, %v1313_v11  ;;  %v1453_v57 = vld [vmem:[#allocation17 + $0xc8] sm:$0xff] }
 0x669   : > { %v1210_v12 = vsel %vm1209_vm10, %v1207_v15, %v2722_v61  ;;  %v1211_v63 = vsel %vm1209_vm10, %v1208_v62, %v2723_v60  ;;  %v1316_v60 = vld [vmem:[#allocation16 + $0x38] sm:$0xff]  ;;  %v1309_v61 = vld [vmem:[#allocation16] sm:$0xff]  ;;  %v1311_v15 = vld [vmem:[#allocation16 + $0x10] sm:$0xff] }
 0x66a   : > { %v1228_v0 = vpack.c.bf16 %v1211_v63, %v1210_v12  ;;  %v1345_v12 = vpack.c.bf16 %v1316_v60, %v1314_v58  ;;  %v1310_v63 = vld [vmem:[#allocation16 + $0x8] sm:$0xff]  ;;  %v1474_v58 = vpack.c.bf16 %v1453_v57, %v1452_v56  ;;  %v1435_v60 = vld [vmem:[#allocation17 + $0x38] sm:$0xff] }
 0x66c   : > { %1249 = vmatmul.bf16.vlgmr.msrb.gmra.mxu1 %v1228_v0  ;;  %v1312_v0 = vld [vmem:[#allocation16 + $0x18] sm:$0xff]  ;;  %1384 = vmatpush.bf16.msra.mxu3 %v1345_v12 }
 0x6e9   : > { %v1250_v53 = vpop.f32.mrf.mxu1 }
 0x6ea   : > { %v1251_v1 = vadd.f32 %v2741_v52, %v1250_v53  ;;  %v1342_v53 = vpack.c.bf16 %v1311_v15, %v1309_v61  ;;  %v1450_v61 = vld [vmem:[#allocation17 + $0xb0] sm:$0xff] }
 0x6ec   : > { %v1255_v2 = vadd.f32 %v1251_v1, %v3571_v54  ;;  %v1343_v1 = vpack.c.bf16 %v1312_v0, %v1310_v63  ;;  %v1432_v63 = vld [vmem:[#allocation17 + $0x20] sm:$0xff]  ;;  %v1433_v0 = vld [vmem:[#allocation17 + $0x28] sm:$0xff] }
 0x6ee   : > { %1259 = vadd.xlane.f32.xlu0 %v1255_v2  ;;  %1385 = vmatpush.bf16.msra.mxu3 %v1343_v1  ;;  %v1449_v1 = vld [vmem:[#allocation17 + $0xa8] sm:$0xff] }
 0x6f1   : > { %v1252_v3 = vpop.f32.mrf.mxu1 }
 0x6f2   : > { %v1253_v4 = vadd.f32 %v2741_v52, %v1252_v3 }
 0x6f4   : > { %v1256_v5 = vadd.f32 %v1253_v4, %v3573_v55  ;;  %v1337_v55 = vld [vmem:[#allocation16 + $0xe0] sm:$0xff] }
 0x6f5   : > { %v1356_v20 = vpack.c.bf16 %v1339_v18, %v1337_v55 }
 0x6f6   : > { %1261 = vadd.xlane.f32.xlu1 %v1256_v5 }
 0x6f7   : > { %1364 = vmatpush.bf16.msrb.mxu2 %v1356_v20 }
 0x6fb   : > { %1365 = vmatpush.bf16.msrb.mxu2 %v1354_v26 }
 0x6ff   : > { %1366 = vmatpush.bf16.msrb.mxu2 %v1352_v32 }
 0x703   : > { %1367 = vmatpush.bf16.msrb.mxu2 %v1350_v38  ;;  %v1440_v38 = vld [vmem:[#allocation17 + $0x60] sm:$0xff] }
 0x704   : > { %v1468_v41 = vpack.c.bf16 %v1441_v39, %v1440_v38 }
 0x706   : > { %1483 = vmatpush.bf16.msrb.mxu0 %v1468_v41 }
 0x707   : > { %1368 = vmatpush.bf16.msrb.mxu2 %v1348_v44  ;;  %v1438_v44 = vld [vmem:[#allocation17 + $0x50] sm:$0xff] }
 0x708   : > { %v1467_v47 = vpack.c.bf16 %v1439_v45, %v1438_v44 }
 0x70a   : > { %1484 = vmatpush.bf16.msrb.mxu0 %v1467_v47 }
 0x70b   : > { %1369 = vmatpush.bf16.msrb.mxu2 %v1346_v50  ;;  %v1436_v50 = vld [vmem:[#allocation17 + $0x40] sm:$0xff] }
 0x70c   : > { %v1466_v11 = vpack.c.bf16 %v1437_v51, %v1436_v50 }
 0x70e   : > { %1485 = vmatpush.bf16.msrb.mxu0 %v1466_v11 }
 0x70f   : > { %1370 = vmatpush.bf16.msrb.mxu2 %v1344_v59  ;;  %v1434_v59 = vld [vmem:[#allocation17 + $0x30] sm:$0xff] }
 0x710   : > { %v1465_v15 = vpack.c.bf16 %v1435_v60, %v1434_v59 }
 0x712   : > { %1486 = vmatpush.bf16.msrb.mxu0 %v1465_v15 }
 0x713   : > { %1371 = vmatpush.bf16.msrb.mxu2 %v1342_v53  ;;  %v1464_v53 = vpack.c.bf16 %v1433_v0, %v1432_v63 }
 0x716   : > { %1487 = vmatpush.bf16.msrb.mxu0 %v1464_v53 }
 0x761   : > { %v1260_v6 = vpop.xlane.xlu0 %1259 }
 0x762   : > { %v1263_v7 = vmul.f32 %v1260_v6, %v3555_v8 }
 0x764   : > { %v3653_v9 = vsub.f32 %v1255_v2, %v1263_v7 }
 0x766   : > { %v1267_v10 = vmul.f32 %v3653_v9, %v3653_v9 }
 0x768   : > { %1269 = vadd.xlane.f32.xlu2 %v1267_v10 }
 0x769   : > { %v1262_v13 = vpop.xlane.xlu1 %1261 }
 0x76a   : > { %v1264_v14 = vmul.f32 %v1262_v13, %v3555_v8 }
 0x76c   : > { %v3658_v16 = vsub.f32 %v1256_v5, %v1264_v14 }
 0x76e   : > { %v1268_v54 = vmul.f32 %v3658_v16, %v3658_v16 }
 0x770   : > { %1271 = vadd.xlane.f32.xlu0 %v1268_v54 }
 0x7db   : > { %v1270_v62 = vpop.xlane.xlu2 %1269 }
 0x7dc   : > { %v1273_v52 = vmul.f32 %v1270_v62, %v3555_v8  ;;  %v1451_v62 = vld [vmem:[#allocation17 + $0xb8] sm:$0xff] }
 0x7dd   : > { %v1473_v12 = vpack.c.bf16 %v1451_v62, %v1450_v61 }
 0x7de   : > { %v1275_v2 = vadd.f32 1e-12, %v1273_v52  ;;  %v1448_v52 = vld [vmem:[#allocation17 + $0xa0] sm:$0xff] }
 0x7e0   : > { %2791 = vrsqrt.f32 %v1275_v2  ;;  %vm1283_vm12 = vweird.f32 %v1275_v2 }
 0x7e3   : > { %v1272_v3 = vpop.xlane.xlu0 %1271 }
 0x7e4   : > { %v1274_v4 = vmul.f32 %v1272_v3, %v3555_v8  ;;  %v1358_v3 = vld [vmem:[%s3861_s11] sm:$0x3] }
 0x7e6   : > { %v2792_v5 = vpop.eup %2791  ;;  %v1276_v6 = vadd.f32 1e-12, %v1274_v4  ;;  %v1430_v4 = vld [vmem:[#allocation17 + $0x10] sm:$0xff] }
 0x7e7   : > { %v1278_v7 = vmul.f32 %v2792_v5, %v1275_v2  ;;  %vm1284_vm11 = vweird.f32 %v2792_v5  ;;  %v1472_v2 = vpack.c.bf16 %v1449_v1, %v1448_v52 }
 0x7e8   : > { %2793 = vrsqrt.f32 %v1276_v6  ;;  %vm1285_vm13 = vmor %vm1283_vm12, %vm1284_vm11  ;;  %vm1293_vm15 = vweird.f32 %v1276_v6 }
 0x7e9   : > { %v1279_v10 = vmul.f32 %v2792_v5, %v1278_v7 }
 0x7eb   : > { %v1280_v13 = vmul.f32 0.5, %v1279_v10  ;;  %v1447_v10 = vld [vmem:[#allocation17 + $0x98] sm:$0xff] }
 0x7ed   : > { %v1281_v14 = vsub.f32 1.5, %v1280_v13  ;;  %v1360_v13 = vperm.slane %v1358_v3, 0 }
 0x7ee   : > { %v2794_v54 = vpop.eup %2793 }
 0x7ef   : > { %v1282_v55 = vmul.f32 %v2792_v5, %v1281_v14  ;;  %v1288_v18 = vmul.f32 %v2794_v54, %v1276_v6  ;;  %vm1294_vm14 = vweird.f32 %v2794_v54  ;;  %v1446_v6 = vld [vmem:[#allocation17 + $0x90] sm:$0xff]  ;;  %v1361_v14 = vperm.slane %v1358_v3, 1 }
 0x7f0   : > { %vm1295_vm0 = vmor %vm1293_vm15, %vm1294_vm14 }
 0x7f1   : > { %v1289_v19 = vmul.f32 %v2794_v54, %v1288_v18  ;;  %v1286_v20 = vsel %vm1285_vm13, %v2792_v5, %v1282_v55  ;;  %v1431_v5 = vld [vmem:[#allocation17 + $0x18] sm:$0xff]  ;;  %v1428_v55 = vld [vmem:[#allocation17] sm:$0xff]  ;;  %v1429_v18 = vld [vmem:[#allocation17 + $0x8] sm:$0xff] }
 0x7f2   : > { %v1297_v23 = vmul.f32 %v1286_v20, %v3653_v9  ;;  %v1463_v7 = vpack.c.bf16 %v1431_v5, %v1430_v4  ;;  %v2744_v4 = vld [vmem:[%s3912_s16] ss:$0 sm:$0xff] }
 0x7f3   : > { %v1290_v21 = vmul.f32 0.5, %v1289_v19  ;;  %v1444_v19 = vld [vmem:[#allocation17 + $0x80] sm:$0xff] }
 0x7f4   : > { %v1302_v28 = vmul.f32 %v2742_v24, %v1297_v23  ;;  %1488 = vmatpush.bf16.msrb.mxu0 %v1463_v7  ;;  %v1445_v23 = vld [vmem:[#allocation17 + $0x88] sm:$0xff] }
 0x7f5   : > { %v1291_v22 = vsub.f32 1.5, %v1290_v21 }
 0x7f6   : > { %v3669_v31 = vadd.f32 %v2743_v29, %v1302_v28 }
 0x7f7   : > { %v1292_v25 = vmul.f32 %v2794_v54, %v1291_v22  ;;  %v1462_v22 = vpack.c.bf16 %v1429_v18, %v1428_v55 }
 0x7f9   : > { %v1296_v26 = vsel %vm1295_vm0, %v2794_v54, %v1292_v25  ;;  %v1471_v54 = vpack.c.bf16 %v1447_v10, %v1446_v6  ;;  %1489 = vmatpush.bf16.msrb.mxu0 %v1462_v22 }
 0x7fa   : > { %v1298_v27 = vmul.f32 %v1296_v26, %v3658_v16  ;;  %v1459_v16 = vld [vmem:[#allocation17 + $0xf8] sm:$0xff]  ;;  %v1470_v26 = vpack.c.bf16 %v1445_v23, %v1444_v19 }
 0x7fb   : > { %v1477_v37 = vpack.c.bf16 %v1459_v16, %v1458_v35 }
 0x7fc   : > { %v1303_v30 = vmul.f32 %v2742_v24, %v1298_v27 }
 0x7fd   : > { %1496 = vmatpush.bf16.msra.mxu1 %v1477_v37 }
 0x7fe   : > { %v3671_v32 = vadd.f32 %v2743_v29, %v1303_v30 }
 0x800   : > { %v1341_v9 = vpack.c.bf16 %v3671_v32, %v3669_v31 }
 0x801   : > { %1497 = vmatpush.bf16.msra.mxu1 %v1476_v43 }
 0x802   : > { %1372 = vmatmul.bf16.vlgmr.msrb.gmra.mxu2 %v1341_v9  ;;  %1386 = vmatmul.bf16.vlgmr.msra.gmra.mxu3 %v1341_v9 }
 0x805   : > { %1498 = vmatpush.bf16.msra.mxu1 %v1475_v49 }
 0x809   : > { %1499 = vmatpush.bf16.msra.mxu1 %v1474_v58 }
 0x80d   : > { %1500 = vmatpush.bf16.msra.mxu1 %v1473_v12 }
 0x811   : > { %1501 = vmatpush.bf16.msra.mxu1 %v1472_v2 }
 0x815   : > { %1502 = vmatpush.bf16.msra.mxu1 %v1471_v54 }
 0x819   : > { %1503 = vmatpush.bf16.msra.mxu1 %v1470_v26 }
 0x885   : > { %v1373_v20 = vpop.f32.mrf.mxu2  ;;  %v1387_v21 = vpop.f32.mrf.mxu3 }
 0x886   : > { %v1374_v24 = vadd.f32 %v1373_v20, %v1360_v13  ;;  %v1388_v25 = vadd.f32 %v1387_v21, %v1361_v14 }
 0x888   : > { %v1392_v27 = vmul.f32 %v1374_v24, %v1374_v24  ;;  %v1393_v28 = vmul.f32 %v1388_v25, %v1388_v25 }
 0x88a   : > { %v1396_v29 = vmul.f32 %v1392_v27, %v1374_v24  ;;  %v1397_v30 = vmul.f32 %v1393_v28, %v1388_v25  ;;  %v1610_v27 = vld [vmem:[#allocation10 + $0x2e8] sm:$0xff]  ;;  %v1608_v28 = vld [vmem:[#allocation10 + $0x2d8] sm:$0xff] }
 0x88c   : > { %v1400_v9 = vmul.f32 0.044715, %v1396_v29  ;;  %v1401_v33 = vmul.f32 0.044715, %v1397_v30  ;;  %v1611_v30 = vld [vmem:[#allocation10 + $0x2f0] sm:$0xff] }
 0x88d   : > { %v1375_v34 = vpop.f32.mrf.mxu2  ;;  %v1389_v35 = vpop.f32.mrf.mxu3 }
 0x88e   : > { %v1404_v36 = vadd.f32 %v1400_v9, %v1374_v24  ;;  %v1405_v16 = vadd.f32 %v1401_v33, %v1388_v25  ;;  %v1376_v37 = vadd.f32 %v1375_v34, %v1360_v13  ;;  %v1390_v38 = vadd.f32 %v1389_v35, %v1361_v14  ;;  %v1609_v9 = vld [vmem:[#allocation10 + $0x2e0] sm:$0xff]  ;;  %v1612_v33 = vld [vmem:[#allocation10 + $0x2f8] sm:$0xff] }
 0x88f   : > { %v1636_v34 = vpack.c.bf16 %v1611_v30, %v1608_v28  ;;  %v1637_v35 = vpack.c.bf16 %v1612_v33, %v1609_v9  ;;  %v1565_v30 = vld [vmem:[#allocation10 + $0x180] sm:$0xff]  ;;  %v1568_v9 = vld [vmem:[#allocation10 + $0x198] sm:$0xff]  ;;  %v1566_v33 = vld [vmem:[#allocation10 + $0x188] sm:$0xff] }
 0x890   : > { %v1408_v39 = vmul.f32 0.7978846, %v1404_v36  ;;  %v1394_v40 = vmul.f32 %v1376_v37, %v1376_v37  ;;  %v1395_v41 = vmul.f32 %v1390_v38, %v1390_v38  ;;  %v1409_v42 = vmul.f32 0.7978846, %v1405_v16  ;;  %v1601_v36 = vld [vmem:[#allocation10 + $0x2a0] sm:$0xff]  ;;  %v1604_v16 = vld [vmem:[#allocation10 + $0x2b8] sm:$0xff] }
 0x891   : > { %1661 = vmatpush.bf16.msrb.mxu3 %v1636_v34  ;;  %1675 = vmatpush.bf16.msra.mxu0 %v1637_v35  ;;  %v1614_v35 = vpack.c.bf16 %v1568_v9, %v1565_v30 }
 0x892   : > { %v1398_v43 = vmul.f32 %v1394_v40, %v1376_v37  ;;  %v1399_v44 = vmul.f32 %v1395_v41, %v1390_v38  ;;  %2795 = vtanh.f32 %v1408_v39  ;;  %v1605_v39 = vld [vmem:[#allocation10 + $0x2c0] sm:$0xff]  ;;  %v1603_v40 = vld [vmem:[#allocation10 + $0x2b0] sm:$0xff]  ;;  %v1606_v41 = vld [vmem:[#allocation10 + $0x2c8] sm:$0xff] }
 0x893   : > { %2797 = vtanh.f32 %v1409_v42 }
 0x894   : > { %v1402_v45 = vmul.f32 0.044715, %v1398_v43  ;;  %v1403_v46 = vmul.f32 0.044715, %v1399_v44  ;;  %v1634_v43 = vpack.c.bf16 %v1606_v41, %v1603_v40  ;;  %v1595_v44 = vld [vmem:[#allocation10 + $0x270] sm:$0xff] }
 0x896   : > { %v1406_v47 = vadd.f32 %v1402_v45, %v1376_v37  ;;  %v1407_v48 = vadd.f32 %v1403_v46, %v1390_v38  ;;  %1676 = vmatpush.bf16.msra.mxu0 %v1634_v43  ;;  %v1598_v45 = vld [vmem:[#allocation10 + $0x288] sm:$0xff]  ;;  %v1596_v46 = vld [vmem:[#allocation10 + $0x278] sm:$0xff] }
 0x898   : > { %v1410_v49 = vmul.f32 0.7978846, %v1406_v47  ;;  %v1411_v50 = vmul.f32 0.7978846, %v1407_v48  ;;  %v2796_v51 = vpop.eup %2795  ;;  %v1629_v47 = vpack.c.bf16 %v1598_v45, %v1595_v44  ;;  %v1599_v48 = vld [vmem:[#allocation10 + $0x290] sm:$0xff] }
 0x899   : > { %v2798_v56 = vpop.eup %2797  ;;  %v1416_v11 = vadd.f32 1.0, %v2796_v51  ;;  %v1630_v51 = vpack.c.bf16 %v1599_v48, %v1596_v46 }
 0x89a   : > { %2799 = vtanh.f32 %v1410_v49  ;;  %v1417_v57 = vadd.f32 1.0, %v2798_v56  ;;  %v1597_v49 = vld [vmem:[#allocation10 + $0x280] sm:$0xff] }
 0x89b   : > { %2801 = vtanh.f32 %v1411_v50  ;;  %v1420_v60 = vmul.f32 0.5, %v1416_v11  ;;  %v1600_v50 = vld [vmem:[#allocation10 + $0x298] sm:$0xff]  ;;  %v1589_v11 = vld [vmem:[#allocation10 + $0x240] sm:$0xff] }
 0x89c   : > { %v1421_v15 = vmul.f32 0.5, %v1417_v57  ;;  %v1631_v56 = vpack.c.bf16 %v1600_v50, %v1597_v49  ;;  %v1592_v57 = vld [vmem:[#allocation10 + $0x258] sm:$0xff] }
 0x89d   : > { %v1424_v0 = vmul.f32 %v1420_v60, %v1374_v24  ;;  %v1593_v60 = vld [vmem:[#allocation10 + $0x260] sm:$0xff] }
 0x89e   : > { %v1425_v53 = vmul.f32 %v1421_v15, %v1388_v25  ;;  %1677 = vmatpush.bf16.msra.mxu0 %v1631_v56  ;;  %v1594_v15 = vld [vmem:[#allocation10 + $0x268] sm:$0xff] }
 0x8a0   : > { %v2800_v58 = vpop.eup %2799 }
 0x8a1   : > { %v2802_v59 = vpop.eup %2801  ;;  %v1418_v61 = vadd.f32 1.0, %v2800_v58  ;;  %v1590_v58 = vld [vmem:[#allocation10 + $0x248] sm:$0xff] }
 0x8a2   : > { %v1419_v62 = vadd.f32 1.0, %v2802_v59  ;;  %v1626_v59 = vpack.c.bf16 %v1592_v57, %v1589_v11 }
 0x8a3   : > { %v1422_v12 = vmul.f32 0.5, %v1418_v61  ;;  %v1591_v61 = vld [vmem:[#allocation10 + $0x250] sm:$0xff] }
 0x8a4   : > { %v1423_v63 = vmul.f32 0.5, %v1419_v62  ;;  %v1627_v62 = vpack.c.bf16 %v1593_v60, %v1590_v58  ;;  %v2745_v60 = vld [vmem:[%s3913_s12] ss:$0 sm:$0xff] }
 0x8a5   : > { %v1426_v52 = vmul.f32 %v1422_v12, %v1376_v37  ;;  %v1602_v37 = vld [vmem:[#allocation10 + $0x2a8] sm:$0xff]  ;;  %v1628_v12 = vpack.c.bf16 %v1594_v15, %v1591_v61 }
 0x8a6   : > { %v1427_v1 = vmul.f32 %v1423_v63, %v1390_v38  ;;  %v1632_v38 = vpack.c.bf16 %v1604_v16, %v1601_v36  ;;  %v1633_v42 = vpack.c.bf16 %v1605_v39, %v1602_v37  ;;  %v1583_v63 = vld [vmem:[#allocation10 + $0x210] sm:$0xff]  ;;  %v1569_v36 = vld [vmem:[#allocation10 + $0x1a0] sm:$0xff]  ;;  %v1570_v37 = vld [vmem:[#allocation10 + $0x1a8] sm:$0xff] }
 0x8a7   : > { %v1460_v2 = vpack.c.bf16 %v1426_v52, %v1424_v0  ;;  %1678 = vmatpush.bf16.msra.mxu0 %v1628_v12  ;;  %v1586_v0 = vld [vmem:[#allocation10 + $0x228] sm:$0xff]  ;;  %v1584_v52 = vld [vmem:[#allocation10 + $0x218] sm:$0xff]  ;;  %v1567_v16 = vld [vmem:[#allocation10 + $0x190] sm:$0xff] }
 0x8a8   : > { %v1461_v3 = vpack.c.bf16 %v1427_v1, %v1425_v53  ;;  %1662 = vmatpush.bf16.msrb.mxu3 %v1633_v42  ;;  %v1623_v53 = vpack.c.bf16 %v1586_v0, %v1583_v63  ;;  %v1587_v1 = vld [vmem:[#allocation10 + $0x230] sm:$0xff]  ;;  %v1616_v39 = vpack.c.bf16 %v1570_v37, %v1567_v16  ;;  %v2746_v63 = vld [vmem:[%s3914_s23] ss:$0 sm:$0xff]  ;;  %s703_s23 = scalar_lea.vmem [#allocation19], %s3521_s6 }
 0x8a9   : > { %1490 = vmatmul.bf16.vlgmr.msrb.gmra.mxu0 %v1460_v2  ;;  %v1585_v2 = vld [vmem:[#allocation10 + $0x220] sm:$0xff]  ;;  %s2351_s3 = sshll.u32 %s703_s23, 4  ;;  %s2352_s3 = int_to_ptr.vmem [resolvable:$true] %s2351_s3 }
 0x8aa   : > { %1504 = vmatmul.bf16.vlgmr.msra.gmra.mxu1 %v1461_v3  ;;  %v1588_v3 = vld [vmem:[#allocation10 + $0x238] sm:$0xff] }
 0x8ac   : > { %1663 = vmatpush.bf16.msrb.mxu3 %v1630_v51 }
 0x8b0   : > { %1664 = vmatpush.bf16.msrb.mxu3 %v1627_v62 }
 0x926   : > { %v1491_v5 = vpop.f32.mrf.mxu0 }
 0x927   : > { %v1492_v6 = vadd.f32 %v2744_v4, %v1491_v5  ;;  %v1505_v7 = vpop.f32.mrf.mxu1  ;;  %v1625_v5 = vpack.c.bf16 %v1588_v3, %v1585_v2  ;;  %v1639_v2 = vld [vmem:[#allocation11 + $0x3] sm:$0x7] }
 0x928   : > { %v1643_v3 = vperm.slane %v1639_v2, 2 }
 0x929   : > { %v1506_v10 = vadd.f32 %v1505_v7, %v1492_v6  ;;  %1679 = vmatpush.bf16.msra.mxu0 %v1625_v5  ;;  %v1577_v6 = vld [vmem:[#allocation10 + $0x1e0] sm:$0xff]  ;;  %v1580_v7 = vld [vmem:[#allocation10 + $0x1f8] sm:$0xff] }
 0x92b   : > { %v1510_v13 = vadd.f32 %v1506_v10, %v3669_v31  ;;  %v1578_v10 = vld [vmem:[#allocation10 + $0x1e8] sm:$0xff] }
 0x92d   : > { %1514 = vadd.xlane.f32.xlu1 %v1510_v13 }
 0x92e   : > { %v1493_v14 = vpop.f32.mrf.mxu0 }
 0x92f   : > { %v1494_v54 = vadd.f32 %v2744_v4, %v1493_v14  ;;  %v1507_v55 = vpop.f32.mrf.mxu1  ;;  %v1624_v4 = vpack.c.bf16 %v1587_v1, %v1584_v52  ;;  %v1581_v14 = vld [vmem:[#allocation10 + $0x200] sm:$0xff] }
 0x931   : > { %v1508_v18 = vadd.f32 %v1507_v55, %v1494_v54  ;;  %1665 = vmatpush.bf16.msrb.mxu3 %v1624_v4  ;;  %v1579_v54 = vld [vmem:[#allocation10 + $0x1f0] sm:$0xff]  ;;  %v1582_v55 = vld [vmem:[#allocation10 + $0x208] sm:$0xff] }
 0x933   : > { %v1511_v19 = vadd.f32 %v1508_v18, %v3671_v32  ;;  %v1607_v32 = vld [vmem:[#allocation10 + $0x2d0] sm:$0xff]  ;;  %v1621_v18 = vpack.c.bf16 %v1581_v14, %v1578_v10  ;;  %v1641_v10 = vperm.slane %v1639_v2, 0 }
 0x934   : > { %v1635_v29 = vpack.c.bf16 %v1610_v27, %v1607_v32  ;;  %v1576_v32 = vld [vmem:[#allocation10 + $0x1d8] sm:$0xff] }
 0x935   : > { %1516 = vadd.xlane.f32.xlu2 %v1511_v19  ;;  %1666 = vmatpush.bf16.msrb.mxu3 %v1621_v18 }
 0x936   : > { %1647 = vmatpush.bf16.msra.mxu2 %v1635_v29 }
 0x93a   : > { %1648 = vmatpush.bf16.msra.mxu2 %v1632_v38  ;;  %v1615_v38 = vpack.c.bf16 %v1569_v36, %v1566_v33 }
 0x93e   : > { %1649 = vmatpush.bf16.msra.mxu2 %v1629_v47 }
 0x942   : > { %1650 = vmatpush.bf16.msra.mxu2 %v1626_v59 }
 0x946   : > { %1651 = vmatpush.bf16.msra.mxu2 %v1623_v53 }
 0x9a0   : > { %v1515_v20 = vpop.xlane.xlu1 %1514 }
 0x9a1   : > { %v1518_v21 = vmul.f32 %v1515_v20, %v3555_v8  ;;  %v1571_v20 = vld [vmem:[#allocation10 + $0x1b0] sm:$0xff] }
 0x9a3   : > { %v3684_v22 = vsub.f32 %v1510_v13, %v1518_v21  ;;  %v1620_v13 = vpack.c.bf16 %v1580_v7, %v1577_v6  ;;  %v1574_v21 = vld [vmem:[#allocation10 + $0x1c8] sm:$0xff] }
 0x9a5   : > { %v1522_v23 = vmul.f32 %v3684_v22, %v3684_v22  ;;  %1652 = vmatpush.bf16.msra.mxu2 %v1620_v13  ;;  %v1642_v13 = vperm.slane %v1639_v2, 1 }
 0x9a7   : > { %1524 = vadd.xlane.f32.xlu0 %v1522_v23  ;;  %v1572_v23 = vld [vmem:[#allocation10 + $0x1b8] sm:$0xff] }
 0x9a8   : > { %v1517_v24 = vpop.xlane.xlu2 %1516 }
 0x9a9   : > { %v1519_v31 = vmul.f32 %v1517_v24, %v3555_v8  ;;  %v1617_v24 = vpack.c.bf16 %v1574_v21, %v1571_v20 }
 0x9ab   : > { %v3689_v25 = vsub.f32 %v1511_v19, %v1519_v31  ;;  %v1622_v19 = vpack.c.bf16 %v1582_v55, %v1579_v54  ;;  %v1575_v31 = vld [vmem:[#allocation10 + $0x1d0] sm:$0xff]  ;;  %1653 = vmatpush.bf16.msra.mxu2 %v1617_v24 }
 0x9ac   : > { %v1618_v28 = vpack.c.bf16 %v1575_v31, %v1572_v23 }
 0x9ad   : > { %v1523_v26 = vmul.f32 %v3689_v25, %v3689_v25  ;;  %1680 = vmatpush.bf16.msra.mxu0 %v1622_v19 }
 0x9ae   : > { %1667 = vmatpush.bf16.msrb.mxu3 %v1618_v28 }
 0x9af   : > { %1526 = vadd.xlane.f32.xlu1 %v1523_v26  ;;  %v1573_v26 = vld [vmem:[#allocation10 + $0x1c0] sm:$0xff]  ;;  %1654 = vmatpush.bf16.msra.mxu2 %v1614_v35 }
 0x9b0   : > { %v1619_v29 = vpack.c.bf16 %v1576_v32, %v1573_v26 }
 0x9b2   : > { %1681 = vmatpush.bf16.msra.mxu0 %v1619_v29  ;;  %1668 = vmatpush.bf16.msrb.mxu3 %v1615_v38 }
 0x9b6   : > { %1682 = vmatpush.bf16.msra.mxu0 %v1616_v39 }
 0xa1a   : > { %v1525_v27 = vpop.xlane.xlu0 %1524 }
 0xa1b   : > { %v1528_v34 = vmul.f32 %v1525_v27, %v3555_v8 }
 0xa1d   : > { %v1530_v40 = vadd.f32 1e-12, %v1528_v34 }
 0xa1f   : > { %2803 = vrsqrt.f32 %v1530_v40  ;;  %vm1538_vm2 = vweird.f32 %v1530_v40 }
 0xa22   : > { %v1527_v41 = vpop.xlane.xlu1 %1526 }
 0xa23   : > { %v1529_v42 = vmul.f32 %v1527_v41, %v3555_v8 }
 0xa25   : > { %v2804_v43 = vpop.eup %2803  ;;  %v1531_v44 = vadd.f32 1e-12, %v1529_v42 }
 0xa26   : > { %v1533_v45 = vmul.f32 %v2804_v43, %v1530_v40  ;;  %vm1539_vm1 = vweird.f32 %v2804_v43 }
 0xa27   : > { %2805 = vrsqrt.f32 %v1531_v44  ;;  %vm1540_vm3 = vmor %vm1538_vm2, %vm1539_vm1  ;;  %vm1548_vm5 = vweird.f32 %v1531_v44 }
 0xa28   : > { %v1534_v46 = vmul.f32 %v2804_v43, %v1533_v45 }
 0xa2a   : > { %v1535_v47 = vmul.f32 0.5, %v1534_v46 }
 0xa2c   : > { %v1536_v48 = vsub.f32 1.5, %v1535_v47 }
 0xa2d   : > { %v2806_v49 = vpop.eup %2805 }
 0xa2e   : > { %v1537_v50 = vmul.f32 %v2804_v43, %v1536_v48  ;;  %v1543_v51 = vmul.f32 %v2806_v49, %v1531_v44  ;;  %vm1549_vm4 = vweird.f32 %v2806_v49 }
 0xa2f   : > { %vm1550_vm6 = vmor %vm1548_vm5, %vm1549_vm4 }
 0xa30   : > { %v1544_v56 = vmul.f32 %v2806_v49, %v1543_v51  ;;  %v1541_v11 = vsel %vm1540_vm3, %v2804_v43, %v1537_v50 }
 0xa31   : > { %v1552_v59 = vmul.f32 %v1541_v11, %v3684_v22 }
 0xa32   : > { %v1545_v57 = vmul.f32 0.5, %v1544_v56 }
 0xa33   : > { %v1557_v12 = vmul.f32 %v2745_v60, %v1552_v59 }
 0xa34   : > { %v1546_v58 = vsub.f32 1.5, %v1545_v57 }
 0xa35   : > { %v3703_v52 = vadd.f32 %v2746_v63, %v1557_v12 }
 0xa36   : > { %v1547_v61 = vmul.f32 %v2806_v49, %v1546_v58 }
 0xa38   : > { %v1551_v15 = vsel %vm1550_vm6, %v2806_v49, %v1547_v61 }
 0xa39   : > { %v1553_v62 = vmul.f32 %v1551_v15, %v3689_v25 }
 0xa3b   : > { %v1558_v0 = vmul.f32 %v2745_v60, %v1553_v62 }
 0xa3d   : > { %v3705_v53 = vadd.f32 %v2746_v63, %v1558_v0 }
 0xa3f   : > { %v1613_v22 = vpack.c.bf16 %v3705_v53, %v3703_v52 }
 0xa41   : > { %1655 = vmatmul.bf16.vlgmr.msra.gmra.mxu2 %v1613_v22  ;;  %1669 = vmatmul.bf16.vlgmr.msrb.gmra.mxu3 %v1613_v22 }
 0xa42   : > { %1683 = vmatmul.bf16.vlgmr.msra.gmra.mxu0 %v1613_v22 }
 0xabf   : > { %v1684_v1 = vpop.f32.mrf.mxu0 }
 0xac0   : > { %v1685_v6 = vadd.f32 %v1684_v1, %v1643_v3 }
 0xac4   : > { %v1656_v25 = vpop.f32.mrf.mxu2  ;;  %v1670_v4 = vpop.f32.mrf.mxu3 }
 0xac5   : > { %v1657_v18 = vadd.f32 %v1656_v25, %v1641_v10  ;;  %v1671_v19 = vadd.f32 %v1670_v4, %v1642_v13 }
 0xac7   : > { %v1686_v5 = vpop.f32.mrf.mxu0 }
 0xac8   : > { %v1687_v7 = vadd.f32 %v1686_v5, %v1643_v3 }
 0xaca   : > { %v3709_v14 = vpack.c.bf16 %v1687_v7, %v1685_v6 }
 0xacc   : > { %1749 = vmatpush.bf16.msrb.mxu2 %v3709_v14  ;;  %v1658_v54 = vpop.f32.mrf.mxu2  ;;  %v1672_v55 = vpop.f32.mrf.mxu3 }
 0xacd   : > { %v1659_v20 = vadd.f32 %v1658_v54, %v1641_v10  ;;  %v1673_v21 = vadd.f32 %v1672_v55, %v1642_v13 }
 0xacf   : > { %v1689_v23 = vpack.c.bf16 %v1659_v20, %v1657_v18  ;;  %v1690_v24 = vpack.c.bf16 %v1673_v21, %v1671_v19 }
 0xad1   : > { %1832 = vrot.lane.b32.xlu1 %v1690_v24, %s3265_s5  ;;  %1760 = vrot.lane.b32.xlu2 %v1690_v24, %s3263_s26  ;;  %v1695_v31 = vsel %vm894_vm7, %v1690_v24, 0 }
 0xad2   : > { %1757 = vrot.lane.b32.xlu0 %v1689_v23, %s3263_s26  ;;  %1704 = vmatpush.bf16.xpose.msrb.mxu1 %v1695_v31 }
 0xad9   : > { %1901 = vrot.lane.b32.xlu1 %v1689_v23, %s3264_s17  ;;  %1830 = vrot.lane.b32.xlu2 %v1689_v23, %s3265_s5 }
 0xada   : > { %1903 = vrot.lane.b32.xlu0 %v1690_v24, %s3264_s17  ;;  %2547 = vmatmul.msk.bf16.vlgmr.msrb.gmra.mxu1 %vm894_vm7, %v1689_v23 }
 0xb2b   : > { %v1761_v26 = vpop.permute.xlu2 %1760 }
 0xb2c   : > { %v1766_v32 = vsel %vm894_vm7, %v1761_v26, 0 }
 0xb2d   : > { %1775 = vmatpush.bf16.xpose.msra.mxu3 %v1766_v32 }
 0xb33   : > { %v1831_v30 = vpop.permute.xlu2 %1830 }
 0xb43   : > { %v1833_v27 = vpop.permute.xlu1 %1832 }
 0xb44   : > { %v1838_v28 = vsel %vm894_vm7, %v1833_v27, 0  ;;  %v1758_v29 = vpop.permute.xlu0 %1757 }
 0xb45   : > { %2549 = vmatmul.msk.bf16.vlgmr.msra.gmra.mxu3 %vm894_vm7, %v1758_v29  ;;  %1847 = vmatpush.bf16.xpose.msra.mxu1 %v1838_v28 }
 0xb4b   : > { %v1902_v34 = vpop.permute.xlu1 %1901 }
 0xb4c   : > { %v1904_v9 = vpop.permute.xlu0 %1903  ;;  %2551 = vmatmul.msk.bf16.vlgmr.msra.gmra.mxu1 %vm894_vm7, %v1831_v30 }
 0xb4d   : > { %v1909_v33 = vsel %vm894_vm7, %v1904_v9, 0 }
 0xb4e   : > { %1918 = vmatpush.bf16.xpose.msrb.mxu3 %v1909_v33 }
 0xb55   : > { %2553 = vmatmul.msk.bf16.vlgmr.msrb.gmra.mxu3 %vm894_vm7, %v1902_v34 }
 0xb57   : > { %v1706_v35 = vpop.f32.mrf.mxu1 }
 0xb58   : > { %v1711_v36 = vmul.f32 0.17677669, %v1706_v35 }
 0xb5a   : > { %v1713_v16 = vadd.f32 %v1711_v36, %v3585_v17 }
 0xb5c   : > { %v1715_v37 = vsel %vm922_vm8, %v1713_v16, -inf }
 0xb5d   : > { %1716 = vmax.xlane.f32.xlu0 %v1715_v37 }
 0xb5f   : > { %v1708_v38 = vpop.f32.mrf.mxu1 }
 0xb60   : > { %v1712_v39 = vmul.f32 0.17677669, %v1708_v38 }
 0xb62   : > { %v1714_v40 = vadd.f32 %v1712_v39, %v3585_v17 }
 0xb64   : > { %v1718_v41 = vsel %vm922_vm8, %v1714_v40, -inf }
 0xb65   : > { %1719 = vmax.xlane.f32.xlu2 %v1718_v41 }
 0xbc8   : > { %v1777_v42 = vpop.f32.mrf.mxu3 }
 0xbc9   : > { %v1782_v43 = vmul.f32 0.17677669, %v1777_v42  ;;  %v1849_v44 = vpop.f32.mrf.mxu1 }
 0xbca   : > { %v1854_v45 = vmul.f32 0.17677669, %v1849_v44 }
 0xbcb   : > { %v1784_v46 = vadd.f32 %v1782_v43, %v3585_v17 }
 0xbcc   : > { %v1856_v47 = vadd.f32 %v1854_v45, %v3585_v17 }
 0xbcd   : > { %v1786_v48 = vsel %vm922_vm8, %v1784_v46, -inf }
 0xbce   : > { %1787 = vmax.xlane.f32.xlu1 %v1786_v48  ;;  %v1858_v49 = vsel %vm922_vm8, %v1856_v47, -inf }
 0xbcf   : > { %1859 = vmax.xlane.f32.xlu2 %v1858_v49 }
 0xbd0   : > { %v1779_v50 = vpop.f32.mrf.mxu3  ;;  %v1717_v51 = vpop.xlane.xlu0 %1716 }
 0xbd1   : > { %v1783_v56 = vmul.f32 0.17677669, %v1779_v50  ;;  %v1721_v11 = vsub.f32 %v1713_v16, %v1717_v51  ;;  %v1851_v57 = vpop.f32.mrf.mxu1 }
 0xbd2   : > { %v1855_v58 = vmul.f32 0.17677669, %v1851_v57 }
 0xbd3   : > { %v1723_v59 = vmul.f32 1.442695, %v1721_v11  ;;  %v1785_v60 = vadd.f32 %v1783_v56, %v3585_v17 }
 0xbd4   : > { %v1857_v61 = vadd.f32 %v1855_v58, %v3585_v17 }
 0xbd5   : > { %2807 = vpow2.f32 %v1723_v59  ;;  %v1789_v15 = vsel %vm922_vm8, %v1785_v60, -inf }
 0xbd6   : > { %1790 = vmax.xlane.f32.xlu0 %v1789_v15  ;;  %v1861_v62 = vsel %vm922_vm8, %v1857_v61, -inf }
 0xbd7   : > { %1862 = vmax.xlane.f32.xlu1 %v1861_v62 }
 0xbd8   : > { %v1920_v12 = vpop.f32.mrf.mxu3  ;;  %v1720_v63 = vpop.xlane.xlu2 %1719 }
 0xbd9   : > { %v1925_v0 = vmul.f32 0.17677669, %v1920_v12  ;;  %v1722_v22 = vsub.f32 %v1714_v40, %v1720_v63 }
 0xbdb   : > { %v3738_v1 = vpop.eup %2807  ;;  %v1725_v2 = vmul.f32 1.442695, %v1722_v22  ;;  %v1927_v3 = vadd.f32 %v1925_v0, %v3585_v17 }
 0xbdc   : > { %v1727_v4 = vsel %vm922_vm8, %v3738_v1, 0.0 }
 0xbdd   : > { %2809 = vpow2.f32 %v1725_v2  ;;  %v1929_v25 = vsel %vm922_vm8, %v1927_v3, -inf }
 0xbde   : > { %1930 = vmax.xlane.f32.xlu0 %v1929_v25 }
 0xbdf   : > { %1728 = vadd.xlane.f32.xlu1 %v1727_v4 }
 0xbe0   : > { %v1922_v5 = vpop.f32.mrf.mxu3 }
 0xbe1   : > { %v1926_v6 = vmul.f32 0.17677669, %v1922_v5 }
 0xbe3   : > { %v2810_v7 = vpop.eup %2809  ;;  %v1928_v10 = vadd.f32 %v1926_v6, %v3585_v17 }
 0xbe4   : > { %v1730_v13 = vsel %vm922_vm8, %v2810_v7, 0.0 }
 0xbe5   : > { %v1932_v54 = vsel %vm922_vm8, %v1928_v10, -inf }
 0xbe6   : > { %1933 = vmax.xlane.f32.xlu2 %v1932_v54  ;;  %1731 = vadd.xlane.f32.xlu0 %v1730_v13 }
 0xbfa   : > { %1810 = vrot.lane.b32.xlu0 %v3709_v14, %s3263_s26 }
 0xc02   : > { %1952 = vrot.lane.b32.xlu0 %v3709_v14, %s3264_s17 }
 0xc41   : > { %v1788_v55 = vpop.xlane.xlu1 %1787 }
 0xc42   : > { %v1860_v18 = vpop.xlane.xlu2 %1859  ;;  %v1792_v20 = vsub.f32 %v1784_v46, %v1788_v55 }
 0xc43   : > { %v1864_v19 = vsub.f32 %v1856_v47, %v1860_v18 }
 0xc44   : > { %v1794_v23 = vmul.f32 1.442695, %v1792_v20  ;;  %v2018_v20 = vld [vmem:[#allocation13 + $0xf8] sm:$0xff] }
 0xc45   : > { %v1866_v21 = vmul.f32 1.442695, %v1864_v19  ;;  %v2017_v19 = vld [vmem:[#allocation13 + $0xf0] sm:$0xff] }
 0xc47   : > { %2811 = vpow2.f32 %v1866_v21  ;;  %v2027_v21 = vpack.c.bf16 %v2018_v20, %v2017_v19 }
 0xc48   : > { %2813 = vpow2.f32 %v1794_v23 }
 0xc49   : > { %v1791_v17 = vpop.xlane.xlu0 %1790  ;;  %2033 = vmatpush.bf16.msrb.mxu1 %v2027_v21  ;;  %v2134_v21 = vld [vmem:[#allocation16 + $0x1f0] sm:$0xff] }
 0xc4a   : > { %v1793_v24 = vsub.f32 %v1785_v60, %v1791_v17  ;;  %v1863_v31 = vpop.xlane.xlu1 %1862 }
 0xc4b   : > { %v1865_v32 = vsub.f32 %v1857_v61, %v1863_v31 }
 0xc4c   : > { %v1796_v26 = vmul.f32 1.442695, %v1793_v24 }
 0xc4d   : > { %v3751_v27 = vpop.eup %2811  ;;  %v1868_v29 = vmul.f32 1.442695, %v1865_v32 }
 0xc4e   : > { %2815 = vpow2.f32 %v1796_v26  ;;  %v1870_v28 = vsel %vm922_vm8, %v3751_v27, 0.0  ;;  %v2814_v33 = vpop.eup %2813 }
 0xc4f   : > { %1871 = vadd.xlane.f32.xlu2 %v1870_v28  ;;  %2817 = vpow2.f32 %v1868_v29  ;;  %v1798_v37 = vsel %vm922_vm8, %v2814_v33, 0.0 }
 0xc51   : > { %v1931_v30 = vpop.xlane.xlu0 %1930 }
 0xc52   : > { %v1935_v9 = vsub.f32 %v1927_v3, %v1931_v30  ;;  %v1729_v36 = vpop.xlane.xlu1 %1728  ;;  %v2015_v30 = vld [vmem:[#allocation13 + $0xe0] sm:$0xff] }
 0xc54   : > { %v2816_v34 = vpop.eup %2815  ;;  %v1937_v35 = vmul.f32 1.442695, %v1935_v9  ;;  %v2016_v9 = vld [vmem:[#allocation13 + $0xe8] sm:$0xff] }
 0xc55   : > { %v1801_v16 = vsel %vm922_vm8, %v2816_v34, 0.0  ;;  %v2818_v40 = vpop.eup %2817 }
 0xc56   : > { %2819 = vpow2.f32 %v1937_v35  ;;  %1802 = vadd.xlane.f32.xlu1 %v1801_v16  ;;  %v1873_v44 = vsel %vm922_vm8, %v2818_v40, 0.0  ;;  %v2014_v35 = vld [vmem:[#allocation13 + $0xd8] sm:$0xff] }
 0xc57   : > { %1799 = vadd.xlane.f32.xlu2 %v1798_v37  ;;  %2821 = vrcp.f32 %v1729_v36  ;;  %v2011_v36 = vld [vmem:[#allocation13 + $0xc0] sm:$0xff]  ;;  %v2012_v37 = vld [vmem:[#allocation13 + $0xc8] sm:$0xff] }
 0xc59   : > { %v1732_v38 = vpop.xlane.xlu0 %1731  ;;  %v1934_v39 = vpop.xlane.xlu2 %1933 }
 0xc5a   : > { %2823 = vrcp.f32 %v1732_v38  ;;  %v1936_v41 = vsub.f32 %v1928_v10, %v1934_v39  ;;  %v2024_v38 = vpack.c.bf16 %v2012_v37, %v2011_v36  ;;  %v2009_v39 = vld [vmem:[#allocation13 + $0xb0] sm:$0xff]  ;;  %v2127_v36 = vld [vmem:[#allocation16 + $0x1b8] sm:$0xff]  ;;  %v2120_v37 = vld [vmem:[#allocation16 + $0x180] sm:$0xff] }
 0xc5c   : > { %v2820_v42 = vpop.eup %2819  ;;  %v1939_v43 = vmul.f32 1.442695, %v1936_v41 }
 0xc5d   : > { %v2822_v45 = vpop.eup %2821  ;;  %v1941_v46 = vsel %vm922_vm8, %v2820_v42, 0.0 }
 0xc5e   : > { %2825 = vpow2.f32 %v1939_v43  ;;  %1874 = vadd.xlane.f32.xlu1 %v1873_v44  ;;  %v1735_v48 = vmul.f32 %v2822_v45, %v3738_v1  ;;  %v2008_v43 = vld [vmem:[#allocation13 + $0xa8] sm:$0xff]  ;;  %v2005_v45 = vld [vmem:[#allocation13 + $0x90] sm:$0xff] }
 0xc5f   : > { %1942 = vadd.xlane.f32.xlu2 %v1941_v46  ;;  %v2006_v46 = vld [vmem:[#allocation13 + $0x98] sm:$0xff] }
 0xc60   : > { %v2824_v47 = vpop.eup %2823 }
 0xc61   : > { %v1736_v49 = vmul.f32 %v2824_v47, %v2810_v7  ;;  %v2021_v47 = vpack.c.bf16 %v2006_v46, %v2005_v45  ;;  %v2117_v45 = vld [vmem:[#allocation16 + $0x168] sm:$0xff] }
 0xc63   : > { %v1737_v50 = vpack.c.bf16 %v1736_v49, %v1735_v48  ;;  %v2003_v48 = vld [vmem:[#allocation13 + $0x80] sm:$0xff]  ;;  %v2004_v49 = vld [vmem:[#allocation13 + $0x88] sm:$0xff] }
 0xc64   : > { %v2826_v51 = vpop.eup %2825 }
 0xc65   : > { %2548 = vmatmul.msk.bf16.vlgmr.msrb.gmra.mxu2 %vm922_vm8, %v1737_v50  ;;  %v1944_v56 = vsel %vm922_vm8, %v2826_v51, 0.0  ;;  %v2020_v50 = vpack.c.bf16 %v2004_v49, %v2003_v48  ;;  %v2112_v49 = vld [vmem:[#allocation16 + $0x140] sm:$0xff] }
 0xc66   : > { %1945 = vadd.xlane.f32.xlu1 %v1944_v56 }
 0xc6c   : > { %v1811_v11 = vpop.permute.xlu0 %1810 }
 0xc6d   : > { %1823 = vmatpush.bf16.msrb.mxu0 %v1811_v11 }
 0xc74   : > { %v1953_v57 = vpop.permute.xlu0 %1952 }
 0xc75   : > { %1965 = vmatpush.bf16.msra.mxu0 %v1953_v57 }
 0xc77   : > { %1881 = vrot.lane.b32.xlu2 %v3709_v14, %s3265_s5 }
 0xcc2   : > { %v1872_v58 = vpop.xlane.xlu2 %1871 }
 0xcc9   : > { %v1803_v59 = vpop.xlane.xlu1 %1802 }
 0xcca   : > { %2827 = vrcp.f32 %v1803_v59  ;;  %v1800_v60 = vpop.xlane.xlu2 %1799 }
 0xccb   : > { %2829 = vrcp.f32 %v1800_v60 }
 0xccc   : > { %2831 = vrcp.f32 %v1872_v58 }
 0xcd0   : > { %v2828_v61 = vpop.eup %2827 }
 0xcd1   : > { %v2830_v15 = vpop.eup %2829  ;;  %v1875_v62 = vpop.xlane.xlu1 %1874  ;;  %v1807_v12 = vmul.f32 %v2828_v61, %v2816_v34  ;;  %v2013_v34 = vld [vmem:[#allocation13 + $0xd0] sm:$0xff] }
 0xcd2   : > { %v1806_v63 = vmul.f32 %v2830_v15, %v2814_v33  ;;  %2833 = vrcp.f32 %v1875_v62  ;;  %v1943_v0 = vpop.xlane.xlu2 %1942  ;;  %v2832_v1 = vpop.eup %2831  ;;  %v2026_v33 = vpack.c.bf16 %v2016_v9, %v2015_v30  ;;  %v2025_v16 = vpack.c.bf16 %v2014_v35, %v2013_v34  ;;  %v2124_v9 = vld [vmem:[#allocation16 + $0x1a0] sm:$0xff]  ;;  %v2125_v34 = vld [vmem:[#allocation16 + $0x1a8] sm:$0xff] }
 0xcd3   : > { %2835 = vrcp.f32 %v1943_v0  ;;  %v1878_v25 = vmul.f32 %v2832_v1, %v3751_v27 }
 0xcd4   : > { %v1808_v22 = vpack.c.bf16 %v1807_v12, %v1806_v63  ;;  %2034 = vmatpush.bf16.msrb.mxu1 %v2026_v33  ;;  %v2126_v33 = vld [vmem:[#allocation16 + $0x1b0] sm:$0xff] }
 0xcd5   : > { %v2147_v35 = vpack.c.bf16 %v2126_v33, %v2124_v9 }
 0xcd6   : > { %2550 = vmatmul.msk.bf16.vlgmr.msrb.gmra.mxu0 %vm922_vm8, %v1808_v22 }
 0xcd8   : > { %v2834_v2 = vpop.eup %2833  ;;  %2035 = vmatpush.bf16.msrb.mxu1 %v2025_v16  ;;  %v2148_v16 = vpack.c.bf16 %v2127_v36, %v2125_v34  ;;  %v2240_v36 = vld [vmem:[#allocation17 + $0x178] sm:$0xff] }
 0xcd9   : > { %v1879_v3 = vmul.f32 %v2834_v2, %v2818_v40  ;;  %v1946_v14 = vpop.xlane.xlu1 %1945  ;;  %v2836_v6 = vpop.eup %2835  ;;  %v2010_v40 = vld [vmem:[#allocation13 + $0xb8] sm:$0xff] }
 0xcda   : > { %2837 = vrcp.f32 %v1946_v14  ;;  %v1882_v4 = vpop.permute.xlu2 %1881  ;;  %v1949_v13 = vmul.f32 %v2836_v6, %v2820_v42  ;;  %v2023_v41 = vpack.c.bf16 %v2010_v40, %v2009_v39  ;;  %v2007_v42 = vld [vmem:[#allocation13 + $0xa0] sm:$0xff]  ;;  %v2121_v39 = vld [vmem:[#allocation16 + $0x188] sm:$0xff] }
 0xcdb   : > { %1894 = vmatpush.bf16.msra.mxu2 %v1882_v4  ;;  %v1880_v5 = vpack.c.bf16 %v1879_v3, %v1878_v25  ;;  %v2022_v44 = vpack.c.bf16 %v2008_v43, %v2007_v42  ;;  %v2747_v3 = vld [vmem:[%s3857_s7 + $0x1] ss:$0 sm:$0xff]  ;;  %v2116_v43 = vld [vmem:[#allocation16 + $0x160] sm:$0xff] }
 0xcdc   : > { %2036 = vmatpush.bf16.msrb.mxu1 %v2024_v38  ;;  %v2122_v38 = vld [vmem:[#allocation16 + $0x190] sm:$0xff] }
 0xcdd   : > { %v2145_v40 = vpack.c.bf16 %v2122_v38, %v2120_v37  ;;  %v2256_v38 = vld [vmem:[#allocation17 + $0x1f8] sm:$0xff] }
 0xcde   : > { %2552 = vmatmul.msk.bf16.vlgmr.msra.gmra.mxu2 %vm922_vm8, %v1880_v5 }
 0xce0   : > { %v2838_v7 = vpop.eup %2837  ;;  %2037 = vmatpush.bf16.msrb.mxu1 %v2023_v41  ;;  %v2123_v41 = vld [vmem:[#allocation16 + $0x198] sm:$0xff] }
 0xce1   : > { %v1950_v10 = vmul.f32 %v2838_v7, %v2826_v51  ;;  %v2146_v42 = vpack.c.bf16 %v2123_v41, %v2121_v39  ;;  %v2253_v41 = vld [vmem:[#allocation17 + $0x1e0] sm:$0xff] }
 0xce3   : > { %v1951_v54 = vpack.c.bf16 %v1950_v10, %v1949_v13 }
 0xce4   : > { %2038 = vmatpush.bf16.msrb.mxu1 %v2022_v44  ;;  %v2118_v44 = vld [vmem:[#allocation16 + $0x170] sm:$0xff] }
 0xce5   : > { %v2143_v46 = vpack.c.bf16 %v2118_v44, %v2116_v43  ;;  %v2254_v43 = vld [vmem:[#allocation17 + $0x1e8] sm:$0xff] }
 0xce6   : > { %2554 = vmatmul.msk.bf16.vlgmr.msra.gmra.mxu0 %vm922_vm8, %v1951_v54  ;;  %v2273_v44 = vpack.c.bf16 %v2254_v43, %v2253_v41 }
 0xce8   : > { %v1751_v55 = vpop.f32.mrf.mxu2  ;;  %2039 = vmatpush.bf16.msrb.mxu1 %v2021_v47  ;;  %v2119_v47 = vld [vmem:[#allocation16 + $0x178] sm:$0xff] }
 0xce9   : > { %v2144_v48 = vpack.c.bf16 %v2119_v47, %v2117_v45  ;;  %v2235_v45 = vld [vmem:[#allocation17 + $0x150] sm:$0xff] }
 0xcea   : > { %v2251_v47 = vld [vmem:[#allocation17 + $0x1d0] sm:$0xff] }
 0xcec   : > { %2040 = vmatpush.bf16.msrb.mxu1 %v2020_v50  ;;  %v2114_v50 = vld [vmem:[#allocation16 + $0x150] sm:$0xff] }
 0xcf0   : > { %v1753_v23 = vpop.f32.mrf.mxu2 }
 0xd53   : > { %v1825_v18 = vpop.f32.mrf.mxu0 }
 0xd5b   : > { %v1827_v17 = vpop.f32.mrf.mxu0 }
 0xd5c   : > { %v2724_v24 = vpack.i.bf16 %v1827_v17, %v1825_v18 }
 0xd5e   : > { %2725 = vrot.lane.b32.xlu1 %v2724_v24, %s3264_s17  ;;  %v2135_v24 = vld [vmem:[#allocation16 + $0x1f8] sm:$0xff]  ;;  %s2341_s17 = scalar_lea.sflag [#allocation4], %s3521_s6 }
 0xd61   : > { %v1896_v31 = vpop.f32.mrf.mxu2 }
 0xd63   : > { %v1967_v26 = vpop.f32.mrf.mxu0 }
 0xd69   : > { %v1898_v32 = vpop.f32.mrf.mxu2 }
 0xd6a   : > { %v2729_v27 = vpack.i.bf16 %v1898_v32, %v1896_v31  ;;  %v2130_v32 = vld [vmem:[#allocation16 + $0x1d0] sm:$0xff] }
 0xd6b   : > { %v1969_v28 = vpop.f32.mrf.mxu0 }
 0xd6c   : > { %2730 = vrot.lane.b32.xlu0 %v2729_v27, %s3265_s5  ;;  %v2734_v29 = vpack.i.bf16 %v1969_v28, %v1967_v26  ;;  %v2128_v26 = vld [vmem:[#allocation16 + $0x1c0] sm:$0xff]  ;;  %v2129_v27 = vld [vmem:[#allocation16 + $0x1c8] sm:$0xff] }
 0xd6d   : > { %v2149_v28 = vpack.c.bf16 %v2130_v32, %v2128_v26  ;;  %v2748_v26 = vld [vmem:[#allocation14 + $0x1] ss:$0 sm:$0xff] }
 0xd74   : > { %2735 = vrot.lane.b32.xlu0 %v2734_v29, %s3263_s26  ;;  %v2131_v29 = vld [vmem:[#allocation16 + $0x1d8] sm:$0xff]  ;;  %s2353_s26 = sshll.u32 %s2349_s4, 4  ;;  %s2354_s26 = int_to_ptr.hbm [resolvable:$true] %s2353_s26 }
 0xd75   : > { %v2150_v30 = vpack.c.bf16 %v2131_v29, %v2129_v27  ;;  %s3167_s5 = sshra.s32 %s2354_s26, 4  ;;  %s3168_s5 = int_to_ptr.hbm [resolvable:$true] %s3167_s5 }
 0xd76   : > { %s3169_s2 = scalar_lea.hbm %s3168_s5, 1  ;;  %p3174_p5 = scmp.lt.s32.totalorder %s3168_s5, %s3916_s19 }
 0xd77   : > { %p3170_p1 = scmp.ne.s32.totalorder %s3168_s5, %s3169_s2  ;;  %p3175_p7 = scmp.lt.s32.totalorder %s3173_s10, %s3169_s2 }
 0xd79   : > { %p3171_p3 = pnand %p3170_p1, %p3461_p13  ;;  %p3176_p6 = por %p3175_p7, %p3174_p5 }
 0xd7b   : > { %p3172_p12 = pneg %p3171_p3 }
 0xd7d   : > { %p3177_p8 = pnand %p3176_p6, %p3172_p12 }
 0xdd0   : > { %v2726_v56 = vpop.permute.xlu1 %2725 }
 0xdd1   : > { %v2728_v11 = vunpack.i.h.bf16 %v2726_v56  ;;  %v2727_v57 = vunpack.i.l.bf16 %v2726_v56  ;;  %v2141_v56 = vpack.c.bf16 %v2114_v50, %v2112_v49  ;;  %v2252_v49 = vld [vmem:[#allocation17 + $0x1d8] sm:$0xff] }
 0xdd2   : > { %v2272_v50 = vpack.c.bf16 %v2252_v49, %v2251_v47 }
 0xdd3   : > { %v1997_v61 = vsel %vm894_vm7, %v1753_v23, %v2728_v11  ;;  %v1996_v15 = vsel %vm894_vm7, %v1751_v55, %v2727_v57  ;;  %v2133_v23 = vld [vmem:[#allocation16 + $0x1e8] sm:$0xff]  ;;  %v2115_v11 = vld [vmem:[#allocation16 + $0x158] sm:$0xff] }
 0xdd4   : > { %v2152_v31 = vpack.c.bf16 %v2135_v24, %v2133_v23 }
 0xdd6   : > { %2174 = vmatpush.bf16.msra.mxu3 %v2152_v31 }
 0xdda   : > { %2175 = vmatpush.bf16.msra.mxu3 %v2150_v30  ;;  %v2749_v30 = vld [vmem:[%s3859_s9 + $0x1] ss:$0 sm:$0xff] }
 0xdde   : > { %v2731_v51 = vpop.permute.xlu0 %2730  ;;  %2176 = vmatpush.bf16.msra.mxu3 %v2148_v16  ;;  %v2255_v16 = vld [vmem:[#allocation17 + $0x1f0] sm:$0xff] }
 0xddf   : > { %v2733_v58 = vunpack.i.h.bf16 %v2731_v51  ;;  %v2732_v59 = vunpack.i.l.bf16 %v2731_v51  ;;  %v2113_v51 = vld [vmem:[#allocation16 + $0x148] sm:$0xff]  ;;  %v2274_v39 = vpack.c.bf16 %v2256_v38, %v2255_v16 }
 0xde0   : > { %v2142_v57 = vpack.c.bf16 %v2115_v11, %v2113_v51  ;;  %v2233_v51 = vld [vmem:[#allocation17 + $0x140] sm:$0xff] }
 0xde1   : > { %v1999_v63 = vsel %vm1206_vm9, %v1997_v61, %v2733_v58  ;;  %v1998_v0 = vsel %vm1206_vm9, %v1996_v15, %v2732_v59  ;;  %v2108_v58 = vld [vmem:[#allocation16 + $0x120] sm:$0xff]  ;;  %v2110_v59 = vld [vmem:[#allocation16 + $0x130] sm:$0xff]  ;;  %v2111_v15 = vld [vmem:[#allocation16 + $0x138] sm:$0xff]  ;;  %2293 = vmatpush.bf16.msra.mxu1 %v2274_v39 }
 0xde2   : > { %2177 = vmatpush.bf16.msra.mxu3 %v2146_v42  ;;  %v2139_v61 = vpack.c.bf16 %v2110_v59, %v2108_v58  ;;  %v2249_v11 = vld [vmem:[#allocation17 + $0x1c0] sm:$0xff]  ;;  %v2250_v58 = vld [vmem:[#allocation17 + $0x1c8] sm:$0xff] }
 0xde3   : > { %v2271_v59 = vpack.c.bf16 %v2250_v58, %v2249_v11 }
 0xde5   : > { %2294 = vmatpush.bf16.msra.mxu1 %v2273_v44 }
 0xde6   : > { %v2736_v60 = vpop.permute.xlu0 %2735  ;;  %2178 = vmatpush.bf16.msra.mxu3 %v2144_v48 }
 0xde7   : > { %v2738_v62 = vunpack.i.h.bf16 %v2736_v60  ;;  %v2737_v12 = vunpack.i.l.bf16 %v2736_v60  ;;  %v2109_v60 = vld [vmem:[#allocation16 + $0x128] sm:$0xff] }
 0xde9   : > { %v2000_v22 = vsel %vm1209_vm10, %v1998_v0, %v2737_v12  ;;  %v2001_v1 = vsel %vm1209_vm10, %v1999_v63, %v2738_v62  ;;  %v2104_v62 = vld [vmem:[#allocation16 + $0x100] sm:$0xff]  ;;  %v2106_v12 = vld [vmem:[#allocation16 + $0x110] sm:$0xff]  ;;  %v2140_v0 = vpack.c.bf16 %v2111_v15, %v2109_v60  ;;  %2295 = vmatpush.bf16.msra.mxu1 %v2272_v50 }
 0xdea   : > { %v2019_v2 = vpack.c.bf16 %v2001_v1, %v2000_v22  ;;  %2179 = vmatpush.bf16.msra.mxu3 %v2142_v57  ;;  %v2105_v22 = vld [vmem:[#allocation16 + $0x108] sm:$0xff]  ;;  %v2107_v1 = vld [vmem:[#allocation16 + $0x118] sm:$0xff]  ;;  %v2231_v60 = vld [vmem:[#allocation17 + $0x130] sm:$0xff] }
 0xdeb   : > { %v2247_v15 = vld [vmem:[#allocation17 + $0x1b0] sm:$0xff] }
 0xdec   : > { %2041 = vmatmul.bf16.vlgmr.msrb.gmra.mxu1 %v2019_v2 }
 0xded   : > { %2296 = vmatpush.bf16.msra.mxu1 %v2271_v59 }
 0xdee   : > { %2180 = vmatpush.bf16.msra.mxu3 %v2140_v0  ;;  %v2229_v0 = vld [vmem:[#allocation17 + $0x120] sm:$0xff] }
 0xe69   : > { %v2042_v14 = vpop.f32.mrf.mxu1 }
 0xe6a   : > { %v2043_v25 = vadd.f32 %v2747_v3, %v2042_v14  ;;  %v2138_v14 = vpack.c.bf16 %v2107_v1, %v2105_v22  ;;  %v2230_v22 = vld [vmem:[#allocation17 + $0x128] sm:$0xff]  ;;  %v2245_v1 = vld [vmem:[#allocation17 + $0x1a0] sm:$0xff] }
 0xe6c   : > { %v2047_v4 = vadd.f32 %v2043_v25, %v3703_v52  ;;  %2181 = vmatpush.bf16.msra.mxu3 %v2138_v14 }
 0xe6e   : > { %2053 = vadd.xlane.f32.xlu2 %v2047_v4 }
 0xe71   : > { %v2044_v5 = vpop.f32.mrf.mxu1 }
 0xe72   : > { %v2045_v6 = vadd.f32 %v2747_v3, %v2044_v5  ;;  %v2137_v3 = vpack.c.bf16 %v2106_v12, %v2104_v62  ;;  %v2248_v12 = vld [vmem:[#allocation17 + $0x1b8] sm:$0xff] }
 0xe74   : > { %v2048_v7 = vadd.f32 %v2045_v6, %v3705_v53  ;;  %v2132_v53 = vld [vmem:[#allocation16 + $0x1e0] sm:$0xff] }
 0xe75   : > { %v2151_v17 = vpack.c.bf16 %v2134_v21, %v2132_v53 }
 0xe76   : > { %2055 = vadd.xlane.f32.xlu0 %v2048_v7 }
 0xe77   : > { %2160 = vmatpush.bf16.msrb.mxu2 %v2151_v17 }
 0xe7b   : > { %2161 = vmatpush.bf16.msrb.mxu2 %v2149_v28 }
 0xe7f   : > { %2162 = vmatpush.bf16.msrb.mxu2 %v2147_v35 }
 0xe83   : > { %2163 = vmatpush.bf16.msrb.mxu2 %v2145_v40  ;;  %v2238_v40 = vld [vmem:[#allocation17 + $0x168] sm:$0xff] }
 0xe87   : > { %2164 = vmatpush.bf16.msrb.mxu2 %v2143_v46  ;;  %v2236_v46 = vld [vmem:[#allocation17 + $0x158] sm:$0xff] }
 0xe88   : > { %v2264_v48 = vpack.c.bf16 %v2236_v46, %v2235_v45 }
 0xe8b   : > { %2165 = vmatpush.bf16.msrb.mxu2 %v2141_v56  ;;  %v2234_v56 = vld [vmem:[#allocation17 + $0x148] sm:$0xff] }
 0xe8c   : > { %v2263_v57 = vpack.c.bf16 %v2234_v56, %v2233_v51 }
 0xe8f   : > { %2166 = vmatpush.bf16.msrb.mxu2 %v2139_v61  ;;  %v2232_v61 = vld [vmem:[#allocation17 + $0x138] sm:$0xff] }
 0xe90   : > { %v2262_v62 = vpack.c.bf16 %v2232_v61, %v2231_v60 }
 0xe93   : > { %2167 = vmatpush.bf16.msrb.mxu2 %v2137_v3  ;;  %v2246_v3 = vld [vmem:[#allocation17 + $0x1a8] sm:$0xff] }
 0xe94   : > { %v2269_v14 = vpack.c.bf16 %v2246_v3, %v2245_v1 }
 0xee1   : > { %v2054_v10 = vpop.xlane.xlu2 %2053 }
 0xee2   : > { %v2057_v13 = vmul.f32 %v2054_v10, %v3555_v8 }
 0xee4   : > { %v3783_v54 = vsub.f32 %v2047_v4, %v2057_v13 }
 0xee6   : > { %v2061_v55 = vmul.f32 %v3783_v54, %v3783_v54 }
 0xee8   : > { %2063 = vadd.xlane.f32.xlu1 %v2061_v55 }
 0xee9   : > { %v2056_v18 = vpop.xlane.xlu0 %2055 }
 0xeea   : > { %v2058_v19 = vmul.f32 %v2056_v18, %v3555_v8 }
 0xeec   : > { %v3788_v20 = vsub.f32 %v2048_v7, %v2058_v19 }
 0xeee   : > { %v2062_v52 = vmul.f32 %v3788_v20, %v3788_v20 }
 0xef0   : > { %2065 = vadd.xlane.f32.xlu2 %v2062_v52 }
 0xf5b   : > { %v2064_v63 = vpop.xlane.xlu1 %2063 }
 0xf5c   : > { %v2067_v2 = vmul.f32 %v2064_v63, %v3555_v8  ;;  %v2270_v63 = vpack.c.bf16 %v2248_v12, %v2247_v15 }
 0xf5e   : > { %v2069_v25 = vadd.f32 1e-12, %v2067_v2  ;;  %2297 = vmatpush.bf16.msra.mxu1 %v2270_v63  ;;  %v2261_v2 = vpack.c.bf16 %v2230_v22, %v2229_v0 }
 0xf60   : > { %2839 = vrsqrt.f32 %v2069_v25  ;;  %vm2077_vm8 = vweird.f32 %v2069_v25 }
 0xf62   : > { %2298 = vmatpush.bf16.msra.mxu1 %v2269_v14  ;;  %v2750_v14 = vld [vmem:[%s3912_s16 + $0x1] ss:$0 sm:$0xff] }
 0xf63   : > { %v2066_v4 = vpop.xlane.xlu2 %2065 }
 0xf64   : > { %v2068_v5 = vmul.f32 %v2066_v4, %v3555_v8  ;;  %v2227_v4 = vld [vmem:[#allocation17 + $0x110] sm:$0xff] }
 0xf66   : > { %v2840_v6 = vpop.eup %2839  ;;  %v2070_v7 = vadd.f32 1e-12, %v2068_v5  ;;  %v2228_v5 = vld [vmem:[#allocation17 + $0x118] sm:$0xff] }
 0xf67   : > { %v2072_v10 = vmul.f32 %v2840_v6, %v2069_v25  ;;  %vm2078_vm7 = vweird.f32 %v2840_v6  ;;  %v2557_v25 = vld [vmem:[%s3861_s11 + $0x2] sm:$0x3] }
 0xf68   : > { %2841 = vrsqrt.f32 %v2070_v7  ;;  %vm2079_vm9 = vmor %vm2077_vm8, %vm2078_vm7  ;;  %vm2087_vm11 = vweird.f32 %v2070_v7 }
 0xf69   : > { %v2073_v13 = vmul.f32 %v2840_v6, %v2072_v10  ;;  %v2244_v10 = vld [vmem:[#allocation17 + $0x198] sm:$0xff] }
 0xf6b   : > { %v2074_v55 = vmul.f32 0.5, %v2073_v13  ;;  %v2156_v13 = vperm.slane %v2557_v25, 0 }
 0xf6d   : > { %v2075_v18 = vsub.f32 1.5, %v2074_v55  ;;  %v2157_v55 = vperm.slane %v2557_v25, 1 }
 0xf6e   : > { %v2842_v19 = vpop.eup %2841 }
 0xf6f   : > { %v2076_v52 = vmul.f32 %v2840_v6, %v2075_v18  ;;  %v2082_v53 = vmul.f32 %v2842_v19, %v2070_v7  ;;  %vm2088_vm10 = vweird.f32 %v2842_v19  ;;  %v2260_v7 = vpack.c.bf16 %v2228_v5, %v2227_v4 }
 0xf70   : > { %vm2089_vm12 = vmor %vm2087_vm11, %vm2088_vm10 }
 0xf71   : > { %v2083_v21 = vmul.f32 %v2842_v19, %v2082_v53  ;;  %v2080_v23 = vsel %vm2079_vm9, %v2840_v6, %v2076_v52  ;;  %v2243_v6 = vld [vmem:[#allocation17 + $0x190] sm:$0xff]  ;;  %v2226_v52 = vld [vmem:[#allocation17 + $0x108] sm:$0xff]  ;;  %v2241_v53 = vld [vmem:[#allocation17 + $0x180] sm:$0xff] }
 0xf72   : > { %v2091_v31 = vmul.f32 %v2080_v23, %v3783_v54  ;;  %v2239_v54 = vld [vmem:[#allocation17 + $0x170] sm:$0xff]  ;;  %v2268_v18 = vpack.c.bf16 %v2244_v10, %v2243_v6 }
 0xf73   : > { %v2084_v17 = vmul.f32 0.5, %v2083_v21  ;;  %v2266_v37 = vpack.c.bf16 %v2240_v36, %v2239_v54 }
 0xf74   : > { %v2096_v29 = vmul.f32 %v2748_v26, %v2091_v31  ;;  %2299 = vmatpush.bf16.msra.mxu1 %v2268_v18 }
 0xf75   : > { %v2085_v24 = vsub.f32 1.5, %v2084_v17  ;;  %2280 = vmatpush.bf16.msrb.mxu0 %v2266_v37 }
 0xf76   : > { %v3799_v33 = vadd.f32 %v2749_v30, %v2096_v29 }
 0xf77   : > { %v2086_v32 = vmul.f32 %v2842_v19, %v2085_v24  ;;  %v2242_v24 = vld [vmem:[#allocation17 + $0x188] sm:$0xff] }
 0xf79   : > { %v2090_v27 = vsel %vm2089_vm12, %v2842_v19, %v2086_v32  ;;  %v2225_v19 = vld [vmem:[#allocation17 + $0x100] sm:$0xff]  ;;  %v2267_v32 = vpack.c.bf16 %v2242_v24, %v2241_v53 }
 0xf7a   : > { %v2092_v28 = vmul.f32 %v2090_v27, %v3788_v20  ;;  %v2237_v20 = vld [vmem:[#allocation17 + $0x160] sm:$0xff]  ;;  %v2259_v17 = vpack.c.bf16 %v2226_v52, %v2225_v19 }
 0xf7b   : > { %v2265_v42 = vpack.c.bf16 %v2238_v40, %v2237_v20  ;;  %2300 = vmatpush.bf16.msra.mxu1 %v2267_v32 }
 0xf7c   : > { %v2097_v9 = vmul.f32 %v2748_v26, %v2092_v28 }
 0xf7d   : > { %2281 = vmatpush.bf16.msrb.mxu0 %v2265_v42 }
 0xf7e   : > { %v2102_v34 = vadd.f32 %v2749_v30, %v2097_v9 }
 0xf80   : > { %v2136_v35 = vpack.c.bf16 %v2102_v34, %v3799_v33 }
 0xf81   : > { %2282 = vmatpush.bf16.msrb.mxu0 %v2264_v48 }
 0xf82   : > { %2168 = vmatmul.bf16.vlgmr.msrb.gmra.mxu2 %v2136_v35  ;;  %2182 = vmatmul.bf16.vlgmr.msra.gmra.mxu3 %v2136_v35 }
 0xf85   : > { %2283 = vmatpush.bf16.msrb.mxu0 %v2263_v57 }
 0xf89   : > { %2284 = vmatpush.bf16.msrb.mxu0 %v2262_v62 }
 0xf8d   : > { %2285 = vmatpush.bf16.msrb.mxu0 %v2261_v2 }
 0xf91   : > { %2286 = vmatpush.bf16.msrb.mxu0 %v2260_v7 }
 0xf95   : > { %2287 = vmatpush.bf16.msrb.mxu0 %v2259_v17 }
0x1005   : > { %v2169_v21 = vpop.f32.mrf.mxu2  ;;  %v2183_v23 = vpop.f32.mrf.mxu3 }
0x1006   : > { %v2170_v31 = vadd.f32 %v2169_v21, %v2156_v13  ;;  %v2184_v26 = vadd.f32 %v2183_v23, %v2157_v55 }
0x1008   : > { %v2188_v27 = vmul.f32 %v2170_v31, %v2170_v31  ;;  %v2189_v28 = vmul.f32 %v2184_v26, %v2184_v26 }
0x100a   : > { %v2192_v29 = vmul.f32 %v2188_v27, %v2170_v31  ;;  %v2193_v30 = vmul.f32 %v2189_v28, %v2184_v26  ;;  %v2751_v27 = vld [vmem:[%s3913_s12 + $0x1] ss:$0 sm:$0xff] }
0x100c   : > { %v2196_v9 = vmul.f32 0.044715, %v2192_v29  ;;  %v2197_v34 = vmul.f32 0.044715, %v2193_v30  ;;  %v2752_v29 = vld [vmem:[%s3915_s29 + $0x1] ss:$0 sm:$0xff] }
0x100d   : > { %v2171_v35 = vpop.f32.mrf.mxu2  ;;  %v2185_v54 = vpop.f32.mrf.mxu3 }
0x100e   : > { %v2200_v36 = vadd.f32 %v2196_v9, %v2170_v31  ;;  %v2201_v16 = vadd.f32 %v2197_v34, %v2184_v26  ;;  %v2172_v37 = vadd.f32 %v2171_v35, %v2156_v13  ;;  %v2186_v38 = vadd.f32 %v2185_v54, %v2157_v55 }
0x1010   : > { %v2204_v39 = vmul.f32 0.7978846, %v2200_v36  ;;  %v2190_v20 = vmul.f32 %v2172_v37, %v2172_v37  ;;  %v2191_v40 = vmul.f32 %v2186_v38, %v2186_v38  ;;  %v2205_v41 = vmul.f32 0.7978846, %v2201_v16 }
0x1012   : > { %v2194_v42 = vmul.f32 %v2190_v20, %v2172_v37  ;;  %v2195_v43 = vmul.f32 %v2191_v40, %v2186_v38  ;;  %2843 = vtanh.f32 %v2204_v39 }
0x1013   : > { %2845 = vtanh.f32 %v2205_v41 }
0x1014   : > { %v2198_v44 = vmul.f32 0.044715, %v2194_v42  ;;  %v2199_v45 = vmul.f32 0.044715, %v2195_v43 }
0x1016   : > { %v2202_v46 = vadd.f32 %v2198_v44, %v2172_v37  ;;  %v2203_v47 = vadd.f32 %v2199_v45, %v2186_v38 }
0x1018   : > { %v2206_v48 = vmul.f32 0.7978846, %v2202_v46  ;;  %v2207_v49 = vmul.f32 0.7978846, %v2203_v47  ;;  %v2844_v50 = vpop.eup %2843 }
0x1019   : > { %v2846_v51 = vpop.eup %2845  ;;  %v2212_v56 = vadd.f32 1.0, %v2844_v50 }
0x101a   : > { %2847 = vtanh.f32 %v2206_v48  ;;  %v2213_v11 = vadd.f32 1.0, %v2846_v51 }
0x101b   : > { %2849 = vtanh.f32 %v2207_v49  ;;  %v2216_v59 = vmul.f32 0.5, %v2212_v56 }
0x101c   : > { %v2217_v61 = vmul.f32 0.5, %v2213_v11 }
0x101d   : > { %v2220_v63 = vmul.f32 %v2216_v59, %v2170_v31 }
0x101e   : > { %v2221_v22 = vmul.f32 %v2217_v61, %v2184_v26 }
0x1020   : > { %v2848_v57 = vpop.eup %2847 }
0x1021   : > { %v2850_v58 = vpop.eup %2849  ;;  %v2214_v60 = vadd.f32 1.0, %v2848_v57 }
0x1022   : > { %v2215_v15 = vadd.f32 1.0, %v2850_v58 }
0x1023   : > { %v2218_v62 = vmul.f32 0.5, %v2214_v60 }
0x1024   : > { %v2219_v12 = vmul.f32 0.5, %v2215_v15 }
0x1025   : > { %v2222_v0 = vmul.f32 %v2218_v62, %v2172_v37 }
0x1026   : > { %v2223_v1 = vmul.f32 %v2219_v12, %v2186_v38 }
0x1027   : > { %v2257_v2 = vpack.c.bf16 %v2222_v0, %v2220_v63 }
0x1028   : > { %v2258_v3 = vpack.c.bf16 %v2223_v1, %v2221_v22 }
0x1029   : > { %2288 = vmatmul.bf16.vlgmr.msrb.gmra.mxu0 %v2257_v2 }
0x102a   : > { %2301 = vmatmul.bf16.vlgmr.msra.gmra.mxu1 %v2258_v3 }
0x10a6   : > { %v2289_v25 = vpop.f32.mrf.mxu0 }
0x10a7   : > { %v2290_v4 = vadd.f32 %v2750_v14, %v2289_v25  ;;  %v2302_v5 = vpop.f32.mrf.mxu1 }
0x10a9   : > { %v2303_v6 = vadd.f32 %v2302_v5, %v2290_v4 }
0x10ab   : > { %v2306_v7 = vadd.f32 %v2303_v6, %v3799_v33 }
0x10ad   : > { %2311 = vadd.xlane.f32.xlu0 %v2306_v7 }
0x10ae   : > { %v2291_v10 = vpop.f32.mrf.mxu0 }
0x10af   : > { %v2304_v13 = vpop.f32.mrf.mxu1 }
0x1120   : > { %v2312_v55 = vpop.xlane.xlu0 %2311 }
0x1121   : > { %v2313_v18 = vmul.f32 %v2312_v55, %v3555_v8 }
0x1123   : > { %v2314_v19 = vsub.f32 %v2306_v7, %v2313_v18 }
0x1125   : > { %v2315_v52 = vmul.f32 %v2314_v19, %v2314_v19 }
0x1127   : > { %2316 = vadd.xlane.f32.xlu1 %v2315_v52 }
0x119a   : > { %v2317_v53 = vpop.xlane.xlu1 %2316 }
0x119b   : > { %v2318_v21 = vmul.f32 %v2317_v53, %v3555_v8 }
0x119d   : > { %v2319_v23 = vadd.f32 1e-12, %v2318_v21 }
0x119f   : > { %2851 = vrsqrt.f32 %v2319_v23  ;;  %vm2326_vm14 = vweird.f32 %v2319_v23 }
0x11a5   : > { %v2852_v17 = vpop.eup %2851 }
0x11a6   : > { %v2321_v24 = vmul.f32 %v2852_v17, %v2319_v23  ;;  %vm2327_vm13 = vweird.f32 %v2852_v17 }
0x11a7   : > { %vm2328_vm15 = vmor %vm2326_vm14, %vm2327_vm13 }
0x11a8   : > { %v2322_v31 = vmul.f32 %v2852_v17, %v2321_v24 }
0x11aa   : > { %v2323_v33 = vmul.f32 0.5, %v2322_v31 }
0x11ac   : > { %v2324_v26 = vsub.f32 1.5, %v2323_v33 }
0x11ae   : > { %v2325_v32 = vmul.f32 %v2852_v17, %v2324_v26 }
0x11b0   : > { %v2329_v8 = vsel %vm2328_vm15, %v2852_v17, %v2325_v32 }
0x11b1   : > { %v2330_v28 = vmul.f32 %v2329_v8, %v2314_v19 }
0x11b3   : > { %v2334_v30 = vmul.f32 %v2751_v27, %v2330_v28 }
0x11b5   : > { %v2338_v9 = vadd.f32 %v2752_v29, %v2334_v30 }
0x11b7   : > { %2339 = vst [vmem:[%s703_s23] sm:$0x1] %v2338_v9 }
0x11b8   : > { %3180 = shalt.err (!%p3177_p8)
}
0x11b9   : > { %2600 = dma.vmem_to_hbm [thread:$0]  (%p3461_p13), %s2352_s3, 16, %s2354_s26, %s2341_s17  }
0x11ba PF: > { %p2655_p9 = scmp.ge.s32.totalorder %s3243_s24, 2  ;;  %s2365_s6 = sand.u32 1, %s3231_s21  }
0x11bb   : > { %s2366_s14 = scalar_lea.sflag [#allocation4], %s2365_s6 }
0x11bc   : > { %p2635_p10 = pnand %p2655_p9, %p3469_p4 }
0x11be   : > { %p2636_p11 = pneg %p2635_p10 }
0x11c0   : > { %3226 = dma.done.wait (%p2636_p11), %s2366_s14, 16  }
0x11c1   : > { %3228 = vsyncadd (%p2636_p11), %s2366_s14, 4294967280  ;;  %s3917_s24 = sld [smem:[#allocation29_spill]]  ;;  %s3920_s21 = smov %s3235_s22 }
0x11c2   : > { %s3918_s25 = sld [smem:[#allocation28_spill]] }
0x11c3   : > { %s3919_s23 = sld [smem:[#allocation30_spill]] }
0x11c7   : > { %p36_p0 = scmp.ge.s32.totalorder %s3917_s24, 8  }
0x11c8   : > { %s3921_s22 = smov %s3918_s25 }
0x11c9   :  { %38 = sbr.rel (!%p36_p0) target bundleno = 25 (0x19), region = 186 }
0x11ce   :  { %2371 = vsyncpa [#allocation3], 1 }
0x11cf   :  { %2373 = vsyncpa [#allocation3 + $0x1], 1 }
0x11d0   :  { %2374 = vsyncpa [#allocation6], 1 }
0x11d1   :  { %2376 = vsyncpa [#allocation6 + $0x1], 1 }
0x11d2   :  { %2377 = vsyncpa [#allocation9], 1 }
0x11d3   :  { %2378 = vsyncpa [#allocation12], 1 }
0x11d4   :  { %2379 = vsyncpa [#allocation15], 1 }
0x11d5   :  { %2380 = vsyncpa [#allocation18], 1 }
0x11d6   :  { %2381 = vsyncpa [#allocation4], 1 }
0x11d7   :  { %2383 = vsyncpa [#allocation4 + $0x1], 1 }

</bundles_post_ra>
